<compile_context>
chip_gen: v7x
topology: tpu7x:2x2x1
jax: 0.10.0
libtpu: 0.0.40
codegen_flags: <defaults>
</compile_context>

<pallas_src>
import jax
import jax.numpy as jnp
from jax.experimental import pallas as pl
from jax.experimental.pallas import tpu as pltpu

POOL_OUT = 4                  # adaptive_avg_pool2d(output_size=4)
S = POOL_OUT * POOL_OUT       # 16 pooled spatial positions
CONV_OUT = 128
FC1_IN = CONV_OUT * S         # 2048
FC1_OUT = 1024
LANE = 128
N_CORE_SPLIT = 2              # split fc1 output across 2 grid steps / TCs


def _aux_kernel(xs_ref, cwp_ref, cb_ref, w1_ref, b1_ref, w2_ref, out_ref):
    """One grid step computes one FC1_OUT/2 slice of fc1 and its fc2 partial."""
    s_total = xs_ref.shape[0]          # 16 pooled positions
    n = xs_ref.shape[1]                # batch
    half = w1_ref.shape[2]             # fc1 output slice handled by this step

    cwp = cwp_ref[...]                 # (C*P, 128) f32, pool mean folded in
    cb = cb_ref[...]                   # (1, 128)   f32

    acc = jnp.zeros((n, half), jnp.float32)
    for s in range(s_total):           # unrolled: 16 small matmuls, no grid cost
        # pool-mean + 1x1 conv fused into one MXU contraction over C*P
        y = jnp.dot(xs_ref[s], cwp, preferred_element_type=jnp.float32)   # (N,128)
        y = jnp.maximum(y + cb, 0.0)                                      # ReLU (f32)
        # fc1 partial: bf16 operands, f32 accumulate
        acc = acc + jnp.dot(y.astype(jnp.bfloat16), w1_ref[s],
                            preferred_element_type=jnp.float32)           # (N,half)

    h = jnp.maximum(acc + b1_ref[...], 0.0)          # fc1 bias + ReLU (f32)
    # dropout(p=0.7): eval-mode identity
    out = jnp.dot(h.astype(jnp.bfloat16), w2_ref[...],
                  preferred_element_type=jnp.float32)                     # (N,NC_PAD)
    out_ref[0] = out.astype(out_ref.dtype)


def prepare_params(params, num_classes, pool_window):
    """One-time weight re-layout (hoisted out of the per-call forward path)."""
    C = params["conv_w"].shape[1]
    P = pool_window
    # conv weight with the 1/P pool-mean folded in, replicated over window pixels
    cw = params["conv_w"].reshape(CONV_OUT, C).astype(jnp.float32)        # (128, C)
    cwp = jnp.repeat(cw.T / P, P, axis=0)                                 # (C*P, 128)
    cb = params["conv_b"].reshape(1, CONV_OUT).astype(jnp.float32)

    # fc1 weight (1024, 2048), flat col k*16+s  ->  (S, 128, 1024), bf16 stream
    w1p = (params["w1"].T.reshape(CONV_OUT, S, FC1_OUT)
           .transpose(1, 0, 2).astype(jnp.bfloat16))
    b1 = params["b1"].reshape(1, FC1_OUT).astype(jnp.float32)

    # fc2 weight transposed and lane-padded to a multiple of 128, bf16 stream
    nc_pad = max(LANE, ((num_classes + LANE - 1) // LANE) * LANE)
    w2p = jnp.zeros((FC1_OUT, nc_pad), jnp.bfloat16)
    w2p = w2p.at[:, :num_classes].set(params["w2"].T.astype(jnp.bfloat16))
    b2 = params["b2"].astype(jnp.float32)

    return {"cwp": cwp, "cb": cb, "w1p": w1p, "b1": b1, "w2p": w2p, "b2": b2,
            "num_classes": num_classes, "nc_pad": nc_pad}


def inception_aux_forward(x, prep):
    """x: (N, C, H, W) float32 with H, W divisible by POOL_OUT."""
    N, C, H, W = x.shape
    ph, pw = H // POOL_OUT, W // POOL_OUT
    P = ph * pw
    nc_pad = prep["nc_pad"]
    num_classes = prep["num_classes"]
    half = FC1_OUT // N_CORE_SPLIT

    # per-call glue: gather pooling windows, lane-dense last dim C*P
    xs = (x.reshape(N, C, POOL_OUT, ph, POOL_OUT, pw)
            .transpose(2, 4, 0, 1, 3, 5)
            .reshape(S, N, C * P).astype(jnp.float32))

    grid_spec = pltpu.PrefetchScalarGridSpec(
        num_scalar_prefetch=0,
        grid=(N_CORE_SPLIT,),
        in_specs=[
            pl.BlockSpec((S, N, C * P), lambda c: (0, 0, 0)),       # xs
            pl.BlockSpec((C * P, CONV_OUT), lambda c: (0, 0)),      # cwp
            pl.BlockSpec((1, CONV_OUT), lambda c: (0, 0)),          # cb
            pl.BlockSpec((S, CONV_OUT, half), lambda c: (0, 0, c)),  # w1 half
            pl.BlockSpec((1, half), lambda c: (0, c)),              # b1 half
            pl.BlockSpec((half, nc_pad), lambda c: (c, 0)),         # w2 half
        ],
        out_specs=pl.BlockSpec((1, N, nc_pad), lambda c: (c, 0, 0)),
    )

    parts = pl.pallas_call(
        _aux_kernel,
        out_shape=jax.ShapeDtypeStruct((N_CORE_SPLIT, N, nc_pad), jnp.float32),
        grid_spec=grid_spec,
        compiler_params=pltpu.CompilerParams(
            dimension_semantics=("parallel",),
            vmem_limit_bytes=16 << 20,
        ),
    )(xs, prep["cwp"], prep["cb"], prep["w1p"], prep["b1"], prep["w2p"])

    # combine the two fc2 partial products, add fc2 bias, drop lane padding
    return parts.sum(axis=0)[:, :num_classes] + prep["b2"]


def inception_aux_reference(x, params, num_classes):
    """Pure-JAX reference mirroring the (intended) PyTorch forward, f32."""
    N, C, H, W = x.shape
    ph, pw = H // POOL_OUT, W // POOL_OUT
    pooled = x.reshape(N, C, POOL_OUT, ph, POOL_OUT, pw).mean(axis=(3, 5))
    cw = params["conv_w"].reshape(CONV_OUT, C)
    conv = jnp.einsum("kc,ncij->nkij", cw, pooled)
    conv = jnp.maximum(conv + params["conv_b"].reshape(1, CONV_OUT, 1, 1), 0.0)
    flat = conv.reshape(N, FC1_IN)                     # channel-major view()
    h = jnp.maximum(flat @ params["w1"].T + params["b1"], 0.0)
    return h @ params["w2"].T + params["b2"]


if __name__ == "__main__":
    N, C, H, W = 2, 4, 16, 16
    num_classes = 10

    key = jax.random.PRNGKey(0)
    k = jax.random.split(key, 7)
    params = {
        "conv_w": jax.random.normal(k[0], (CONV_OUT, C, 1, 1), jnp.float32)
                  * (1.0 / jnp.sqrt(C)),
        "conv_b": jax.random.normal(k[1], (CONV_OUT,), jnp.float32) * 0.01,
        "w1": jax.random.normal(k[2], (FC1_OUT, FC1_IN), jnp.float32)
              * (1.0 / jnp.sqrt(FC1_IN)),
        "b1": jax.random.normal(k[3], (FC1_OUT,), jnp.float32) * 0.01,
        "w2": jax.random.normal(k[4], (num_classes, FC1_OUT), jnp.float32)
              * (1.0 / jnp.sqrt(FC1_OUT)),
        "b2": jax.random.normal(k[5], (num_classes,), jnp.float32) * 0.01,
    }
    x = jax.random.normal(k[6], (N, C, H, W), jnp.float32)

    # weight re-layout hoisted: done once, reused by every forward call
    prep = prepare_params(params, num_classes, pool_window=(H // 4) * (W // 4))

    out = jax.block_until_ready(inception_aux_forward(x, prep))
    ref = inception_aux_reference(x, params, num_classes)

    assert out.shape == (N, num_classes)
    max_diff = float(jnp.max(jnp.abs(out - ref)))
    assert jnp.allclose(out, ref, atol=5e-2, rtol=5e-2), f"max abs diff {max_diff}"
    print("KERNEL_OK")
</pallas_src>

<mosaic_0001>
module attributes {stable_mosaic.version = 11 : i64} {
  func.func @_aux_kernel(%arg0: i32, %arg1: memref<16x2x64xf32, #tpu.memory_space<vmem>>, %arg2: memref<64x128xf32, #tpu.memory_space<vmem>>, %arg3: memref<1x128xf32, #tpu.memory_space<vmem>>, %arg4: memref<16x128x512xbf16, #tpu.memory_space<vmem>>, %arg5: memref<1x512xf32, #tpu.memory_space<vmem>>, %arg6: memref<512x128xbf16, #tpu.memory_space<vmem>>, %arg7: memref<1x2x128xf32, #tpu.memory_space<vmem>>) attributes {dimension_semantics = [#tpu.dimension_semantics<parallel>], iteration_bounds = array<i64: 2>, scalar_prefetch = 0 : i64, scratch_operands = 0 : i64, tpu.core_type = #tpu.core_type<tc>, window_params = [{pipeline_mode = #tpu.pipeline_mode<synchronous>, transform_indices = @transform_0, window_bounds = array<i64: 16, 2, 64>}, {pipeline_mode = #tpu.pipeline_mode<synchronous>, transform_indices = @transform_1, window_bounds = array<i64: 64, 128>}, {pipeline_mode = #tpu.pipeline_mode<synchronous>, transform_indices = @transform_2, window_bounds = array<i64: 1, 128>}, {transform_indices = @transform_3, window_bounds = array<i64: 16, 128, 512>}, {transform_indices = @transform_4, window_bounds = array<i64: 1, 512>}, {transform_indices = @transform_5, window_bounds = array<i64: 512, 128>}, {transform_indices = @transform_6, window_bounds = array<i64: 1, 2, 128>}]} {
    %c0 = arith.constant 0 : index
    %c0_0 = arith.constant 0 : index
    %0 = vector.load %arg2[%c0, %c0_0] : memref<64x128xf32, #tpu.memory_space<vmem>>, vector<64x128xf32>
    %c0_1 = arith.constant 0 : index
    %c0_2 = arith.constant 0 : index
    %1 = vector.load %arg3[%c0_1, %c0_2] : memref<1x128xf32, #tpu.memory_space<vmem>>, vector<1x128xf32>
    %cst = arith.constant 0.000000e+00 : f32
    %2 = vector.broadcast %cst : f32 to vector<2x512xf32>
    %c0_3 = arith.constant 0 : index
    %c0_4 = arith.constant 0 : index
    %c0_5 = arith.constant 0 : index
    %3 = vector.load %arg1[%c0_3, %c0_4, %c0_5] : memref<16x2x64xf32, #tpu.memory_space<vmem>>, vector<1x2x64xf32>
    %4 = vector.shape_cast %3 : vector<1x2x64xf32> to vector<2x64xf32>
    %cst_6 = arith.constant dense<0.000000e+00> : vector<2x128xf32>
    %5 = tpu.matmul %4, %0, %cst_6 {dimension_numbers = #tpu.dot_dimension_numbers<[1], [0], [0], [1], [0, 0, 1, 1], [], []>} : vector<2x64xf32>, vector<64x128xf32>, vector<2x128xf32> -> vector<2x128xf32>
    %6 = vector.broadcast %1 : vector<1x128xf32> to vector<2x128xf32>
    %7 = arith.addf %5, %6 : vector<2x128xf32>
    %cst_7 = arith.constant 0.000000e+00 : f32
    %8 = vector.broadcast %cst_7 : f32 to vector<2x128xf32>
    %9 = arith.maximumf %7, %8 : vector<2x128xf32>
    %10 = arith.truncf %9 : vector<2x128xf32> to vector<2x128xbf16>
    %c0_8 = arith.constant 0 : index
    %c0_9 = arith.constant 0 : index
    %c0_10 = arith.constant 0 : index
    %11 = vector.load %arg4[%c0_8, %c0_9, %c0_10] : memref<16x128x512xbf16, #tpu.memory_space<vmem>>, vector<1x128x512xbf16>
    %12 = vector.shape_cast %11 : vector<1x128x512xbf16> to vector<128x512xbf16>
    %cst_11 = arith.constant dense<0.000000e+00> : vector<2x512xf32>
    %13 = tpu.matmul %10, %12, %cst_11 {dimension_numbers = #tpu.dot_dimension_numbers<[1], [0], [0], [1], [0, 0, 1, 1], [], []>} : vector<2x128xbf16>, vector<128x512xbf16>, vector<2x512xf32> -> vector<2x512xf32>
    %14 = arith.addf %2, %13 : vector<2x512xf32>
    %c1 = arith.constant 1 : index
    %c0_12 = arith.constant 0 : index
    %c0_13 = arith.constant 0 : index
    %15 = vector.load %arg1[%c1, %c0_12, %c0_13] : memref<16x2x64xf32, #tpu.memory_space<vmem>>, vector<1x2x64xf32>
    %16 = vector.shape_cast %15 : vector<1x2x64xf32> to vector<2x64xf32>
    %cst_14 = arith.constant dense<0.000000e+00> : vector<2x128xf32>
    %17 = tpu.matmul %16, %0, %cst_14 {dimension_numbers = #tpu.dot_dimension_numbers<[1], [0], [0], [1], [0, 0, 1, 1], [], []>} : vector<2x64xf32>, vector<64x128xf32>, vector<2x128xf32> -> vector<2x128xf32>
    %18 = vector.broadcast %1 : vector<1x128xf32> to vector<2x128xf32>
    %19 = arith.addf %17, %18 : vector<2x128xf32>
    %cst_15 = arith.constant 0.000000e+00 : f32
    %20 = vector.broadcast %cst_15 : f32 to vector<2x128xf32>
    %21 = arith.maximumf %19, %20 : vector<2x128xf32>
    %22 = arith.truncf %21 : vector<2x128xf32> to vector<2x128xbf16>
    %c1_16 = arith.constant 1 : index
    %c0_17 = arith.constant 0 : index
    %c0_18 = arith.constant 0 : index
    %23 = vector.load %arg4[%c1_16, %c0_17, %c0_18] : memref<16x128x512xbf16, #tpu.memory_space<vmem>>, vector<1x128x512xbf16>
    %24 = vector.shape_cast %23 : vector<1x128x512xbf16> to vector<128x512xbf16>
    %cst_19 = arith.constant dense<0.000000e+00> : vector<2x512xf32>
    %25 = tpu.matmul %22, %24, %cst_19 {dimension_numbers = #tpu.dot_dimension_numbers<[1], [0], [0], [1], [0, 0, 1, 1], [], []>} : vector<2x128xbf16>, vector<128x512xbf16>, vector<2x512xf32> -> vector<2x512xf32>
    %26 = arith.addf %14, %25 : vector<2x512xf32>
    %c2 = arith.constant 2 : index
    %c0_20 = arith.constant 0 : index
    %c0_21 = arith.constant 0 : index
    %27 = vector.load %arg1[%c2, %c0_20, %c0_21] : memref<16x2x64xf32, #tpu.memory_space<vmem>>, vector<1x2x64xf32>
    %28 = vector.shape_cast %27 : vector<1x2x64xf32> to vector<2x64xf32>
    %cst_22 = arith.constant dense<0.000000e+00> : vector<2x128xf32>
    %29 = tpu.matmul %28, %0, %cst_22 {dimension_numbers = #tpu.dot_dimension_numbers<[1], [0], [0], [1], [0, 0, 1, 1], [], []>} : vector<2x64xf32>, vector<64x128xf32>, vector<2x128xf32> -> vector<2x128xf32>
    %30 = vector.broadcast %1 : vector<1x128xf32> to vector<2x128xf32>
    %31 = arith.addf %29, %30 : vector<2x128xf32>
    %cst_23 = arith.constant 0.000000e+00 : f32
    %32 = vector.broadcast %cst_23 : f32 to vector<2x128xf32>
    %33 = arith.maximumf %31, %32 : vector<2x128xf32>
    %34 = arith.truncf %33 : vector<2x128xf32> to vector<2x128xbf16>
    %c2_24 = arith.constant 2 : index
    %c0_25 = arith.constant 0 : index
    %c0_26 = arith.constant 0 : index
    %35 = vector.load %arg4[%c2_24, %c0_25, %c0_26] : memref<16x128x512xbf16, #tpu.memory_space<vmem>>, vector<1x128x512xbf16>
    %36 = vector.shape_cast %35 : vector<1x128x512xbf16> to vector<128x512xbf16>
    %cst_27 = arith.constant dense<0.000000e+00> : vector<2x512xf32>
    %37 = tpu.matmul %34, %36, %cst_27 {dimension_numbers = #tpu.dot_dimension_numbers<[1], [0], [0], [1], [0, 0, 1, 1], [], []>} : vector<2x128xbf16>, vector<128x512xbf16>, vector<2x512xf32> -> vector<2x512xf32>
    %38 = arith.addf %26, %37 : vector<2x512xf32>
    %c3 = arith.constant 3 : index
    %c0_28 = arith.constant 0 : index
    %c0_29 = arith.constant 0 : index
    %39 = vector.load %arg1[%c3, %c0_28, %c0_29] : memref<16x2x64xf32, #tpu.memory_space<vmem>>, vector<1x2x64xf32>
    %40 = vector.shape_cast %39 : vector<1x2x64xf32> to vector<2x64xf32>
    %cst_30 = arith.constant dense<0.000000e+00> : vector<2x128xf32>
    %41 = tpu.matmul %40, %0, %cst_30 {dimension_numbers = #tpu.dot_dimension_numbers<[1], [0], [0], [1], [0, 0, 1, 1], [], []>} : vector<2x64xf32>, vector<64x128xf32>, vector<2x128xf32> -> vector<2x128xf32>
    %42 = vector.broadcast %1 : vector<1x128xf32> to vector<2x128xf32>
    %43 = arith.addf %41, %42 : vector<2x128xf32>
    %cst_31 = arith.constant 0.000000e+00 : f32
    %44 = vector.broadcast %cst_31 : f32 to vector<2x128xf32>
    %45 = arith.maximumf %43, %44 : vector<2x128xf32>
    %46 = arith.truncf %45 : vector<2x128xf32> to vector<2x128xbf16>
    %c3_32 = arith.constant 3 : index
    %c0_33 = arith.constant 0 : index
    %c0_34 = arith.constant 0 : index
    %47 = vector.load %arg4[%c3_32, %c0_33, %c0_34] : memref<16x128x512xbf16, #tpu.memory_space<vmem>>, vector<1x128x512xbf16>
    %48 = vector.shape_cast %47 : vector<1x128x512xbf16> to vector<128x512xbf16>
    %cst_35 = arith.constant dense<0.000000e+00> : vector<2x512xf32>
    %49 = tpu.matmul %46, %48, %cst_35 {dimension_numbers = #tpu.dot_dimension_numbers<[1], [0], [0], [1], [0, 0, 1, 1], [], []>} : vector<2x128xbf16>, vector<128x512xbf16>, vector<2x512xf32> -> vector<2x512xf32>
    %50 = arith.addf %38, %49 : vector<2x512xf32>
    %c4 = arith.constant 4 : index
    %c0_36 = arith.constant 0 : index
    %c0_37 = arith.constant 0 : index
    %51 = vector.load %arg1[%c4, %c0_36, %c0_37] : memref<16x2x64xf32, #tpu.memory_space<vmem>>, vector<1x2x64xf32>
    %52 = vector.shape_cast %51 : vector<1x2x64xf32> to vector<2x64xf32>
    %cst_38 = arith.constant dense<0.000000e+00> : vector<2x128xf32>
    %53 = tpu.matmul %52, %0, %cst_38 {dimension_numbers = #tpu.dot_dimension_numbers<[1], [0], [0], [1], [0, 0, 1, 1], [], []>} : vector<2x64xf32>, vector<64x128xf32>, vector<2x128xf32> -> vector<2x128xf32>
    %54 = vector.broadcast %1 : vector<1x128xf32> to vector<2x128xf32>
    %55 = arith.addf %53, %54 : vector<2x128xf32>
    %cst_39 = arith.constant 0.000000e+00 : f32
    %56 = vector.broadcast %cst_39 : f32 to vector<2x128xf32>
    %57 = arith.maximumf %55, %56 : vector<2x128xf32>
    %58 = arith.truncf %57 : vector<2x128xf32> to vector<2x128xbf16>
    %c4_40 = arith.constant 4 : index
    %c0_41 = arith.constant 0 : index
    %c0_42 = arith.constant 0 : index
    %59 = vector.load %arg4[%c4_40, %c0_41, %c0_42] : memref<16x128x512xbf16, #tpu.memory_space<vmem>>, vector<1x128x512xbf16>
    %60 = vector.shape_cast %59 : vector<1x128x512xbf16> to vector<128x512xbf16>
    %cst_43 = arith.constant dense<0.000000e+00> : vector<2x512xf32>
    %61 = tpu.matmul %58, %60, %cst_43 {dimension_numbers = #tpu.dot_dimension_numbers<[1], [0], [0], [1], [0, 0, 1, 1], [], []>} : vector<2x128xbf16>, vector<128x512xbf16>, vector<2x512xf32> -> vector<2x512xf32>
    %62 = arith.addf %50, %61 : vector<2x512xf32>
    %c5 = arith.constant 5 : index
    %c0_44 = arith.constant 0 : index
    %c0_45 = arith.constant 0 : index
    %63 = vector.load %arg1[%c5, %c0_44, %c0_45] : memref<16x2x64xf32, #tpu.memory_space<vmem>>, vector<1x2x64xf32>
    %64 = vector.shape_cast %63 : vector<1x2x64xf32> to vector<2x64xf32>
    %cst_46 = arith.constant dense<0.000000e+00> : vector<2x128xf32>
    %65 = tpu.matmul %64, %0, %cst_46 {dimension_numbers = #tpu.dot_dimension_numbers<[1], [0], [0], [1], [0, 0, 1, 1], [], []>} : vector<2x64xf32>, vector<64x128xf32>, vector<2x128xf32> -> vector<2x128xf32>
    %66 = vector.broadcast %1 : vector<1x128xf32> to vector<2x128xf32>
    %67 = arith.addf %65, %66 : vector<2x128xf32>
    %cst_47 = arith.constant 0.000000e+00 : f32
    %68 = vector.broadcast %cst_47 : f32 to vector<2x128xf32>
    %69 = arith.maximumf %67, %68 : vector<2x128xf32>
    %70 = arith.truncf %69 : vector<2x128xf32> to vector<2x128xbf16>
    %c5_48 = arith.constant 5 : index
    %c0_49 = arith.constant 0 : index
    %c0_50 = arith.constant 0 : index
    %71 = vector.load %arg4[%c5_48, %c0_49, %c0_50] : memref<16x128x512xbf16, #tpu.memory_space<vmem>>, vector<1x128x512xbf16>
    %72 = vector.shape_cast %71 : vector<1x128x512xbf16> to vector<128x512xbf16>
    %cst_51 = arith.constant dense<0.000000e+00> : vector<2x512xf32>
    %73 = tpu.matmul %70, %72, %cst_51 {dimension_numbers = #tpu.dot_dimension_numbers<[1], [0], [0], [1], [0, 0, 1, 1], [], []>} : vector<2x128xbf16>, vector<128x512xbf16>, vector<2x512xf32> -> vector<2x512xf32>
    %74 = arith.addf %62, %73 : vector<2x512xf32>
    %c6 = arith.constant 6 : index
    %c0_52 = arith.constant 0 : index
    %c0_53 = arith.constant 0 : index
    %75 = vector.load %arg1[%c6, %c0_52, %c0_53] : memref<16x2x64xf32, #tpu.memory_space<vmem>>, vector<1x2x64xf32>
    %76 = vector.shape_cast %75 : vector<1x2x64xf32> to vector<2x64xf32>
    %cst_54 = arith.constant dense<0.000000e+00> : vector<2x128xf32>
    %77 = tpu.matmul %76, %0, %cst_54 {dimension_numbers = #tpu.dot_dimension_numbers<[1], [0], [0], [1], [0, 0, 1, 1], [], []>} : vector<2x64xf32>, vector<64x128xf32>, vector<2x128xf32> -> vector<2x128xf32>
    %78 = vector.broadcast %1 : vector<1x128xf32> to vector<2x128xf32>
    %79 = arith.addf %77, %78 : vector<2x128xf32>
    %cst_55 = arith.constant 0.000000e+00 : f32
    %80 = vector.broadcast %cst_55 : f32 to vector<2x128xf32>
    %81 = arith.maximumf %79, %80 : vector<2x128xf32>
    %82 = arith.truncf %81 : vector<2x128xf32> to vector<2x128xbf16>
    %c6_56 = arith.constant 6 : index
    %c0_57 = arith.constant 0 : index
    %c0_58 = arith.constant 0 : index
    %83 = vector.load %arg4[%c6_56, %c0_57, %c0_58] : memref<16x128x512xbf16, #tpu.memory_space<vmem>>, vector<1x128x512xbf16>
    %84 = vector.shape_cast %83 : vector<1x128x512xbf16> to vector<128x512xbf16>
    %cst_59 = arith.constant dense<0.000000e+00> : vector<2x512xf32>
    %85 = tpu.matmul %82, %84, %cst_59 {dimension_numbers = #tpu.dot_dimension_numbers<[1], [0], [0], [1], [0, 0, 1, 1], [], []>} : vector<2x128xbf16>, vector<128x512xbf16>, vector<2x512xf32> -> vector<2x512xf32>
    %86 = arith.addf %74, %85 : vector<2x512xf32>
    %c7 = arith.constant 7 : index
    %c0_60 = arith.constant 0 : index
    %c0_61 = arith.constant 0 : index
    %87 = vector.load %arg1[%c7, %c0_60, %c0_61] : memref<16x2x64xf32, #tpu.memory_space<vmem>>, vector<1x2x64xf32>
    %88 = vector.shape_cast %87 : vector<1x2x64xf32> to vector<2x64xf32>
    %cst_62 = arith.constant dense<0.000000e+00> : vector<2x128xf32>
    %89 = tpu.matmul %88, %0, %cst_62 {dimension_numbers = #tpu.dot_dimension_numbers<[1], [0], [0], [1], [0, 0, 1, 1], [], []>} : vector<2x64xf32>, vector<64x128xf32>, vector<2x128xf32> -> vector<2x128xf32>
    %90 = vector.broadcast %1 : vector<1x128xf32> to vector<2x128xf32>
    %91 = arith.addf %89, %90 : vector<2x128xf32>
    %cst_63 = arith.constant 0.000000e+00 : f32
    %92 = vector.broadcast %cst_63 : f32 to vector<2x128xf32>
    %93 = arith.maximumf %91, %92 : vector<2x128xf32>
    %94 = arith.truncf %93 : vector<2x128xf32> to vector<2x128xbf16>
    %c7_64 = arith.constant 7 : index
    %c0_65 = arith.constant 0 : index
    %c0_66 = arith.constant 0 : index
    %95 = vector.load %arg4[%c7_64, %c0_65, %c0_66] : memref<16x128x512xbf16, #tpu.memory_space<vmem>>, vector<1x128x512xbf16>
    %96 = vector.shape_cast %95 : vector<1x128x512xbf16> to vector<128x512xbf16>
    %cst_67 = arith.constant dense<0.000000e+00> : vector<2x512xf32>
    %97 = tpu.matmul %94, %96, %cst_67 {dimension_numbers = #tpu.dot_dimension_numbers<[1], [0], [0], [1], [0, 0, 1, 1], [], []>} : vector<2x128xbf16>, vector<128x512xbf16>, vector<2x512xf32> -> vector<2x512xf32>
    %98 = arith.addf %86, %97 : vector<2x512xf32>
    %c8 = arith.constant 8 : index
    %c0_68 = arith.constant 0 : index
    %c0_69 = arith.constant 0 : index
    %99 = vector.load %arg1[%c8, %c0_68, %c0_69] : memref<16x2x64xf32, #tpu.memory_space<vmem>>, vector<1x2x64xf32>
    %100 = vector.shape_cast %99 : vector<1x2x64xf32> to vector<2x64xf32>
    %cst_70 = arith.constant dense<0.000000e+00> : vector<2x128xf32>
    %101 = tpu.matmul %100, %0, %cst_70 {dimension_numbers = #tpu.dot_dimension_numbers<[1], [0], [0], [1], [0, 0, 1, 1], [], []>} : vector<2x64xf32>, vector<64x128xf32>, vector<2x128xf32> -> vector<2x128xf32>
    %102 = vector.broadcast %1 : vector<1x128xf32> to vector<2x128xf32>
    %103 = arith.addf %101, %102 : vector<2x128xf32>
    %cst_71 = arith.constant 0.000000e+00 : f32
    %104 = vector.broadcast %cst_71 : f32 to vector<2x128xf32>
    %105 = arith.maximumf %103, %104 : vector<2x128xf32>
    %106 = arith.truncf %105 : vector<2x128xf32> to vector<2x128xbf16>
    %c8_72 = arith.constant 8 : index
    %c0_73 = arith.constant 0 : index
    %c0_74 = arith.constant 0 : index
    %107 = vector.load %arg4[%c8_72, %c0_73, %c0_74] : memref<16x128x512xbf16, #tpu.memory_space<vmem>>, vector<1x128x512xbf16>
    %108 = vector.shape_cast %107 : vector<1x128x512xbf16> to vector<128x512xbf16>
    %cst_75 = arith.constant dense<0.000000e+00> : vector<2x512xf32>
    %109 = tpu.matmul %106, %108, %cst_75 {dimension_numbers = #tpu.dot_dimension_numbers<[1], [0], [0], [1], [0, 0, 1, 1], [], []>} : vector<2x128xbf16>, vector<128x512xbf16>, vector<2x512xf32> -> vector<2x512xf32>
    %110 = arith.addf %98, %109 : vector<2x512xf32>
    %c9 = arith.constant 9 : index
    %c0_76 = arith.constant 0 : index
    %c0_77 = arith.constant 0 : index
    %111 = vector.load %arg1[%c9, %c0_76, %c0_77] : memref<16x2x64xf32, #tpu.memory_space<vmem>>, vector<1x2x64xf32>
    %112 = vector.shape_cast %111 : vector<1x2x64xf32> to vector<2x64xf32>
    %cst_78 = arith.constant dense<0.000000e+00> : vector<2x128xf32>
    %113 = tpu.matmul %112, %0, %cst_78 {dimension_numbers = #tpu.dot_dimension_numbers<[1], [0], [0], [1], [0, 0, 1, 1], [], []>} : vector<2x64xf32>, vector<64x128xf32>, vector<2x128xf32> -> vector<2x128xf32>
    %114 = vector.broadcast %1 : vector<1x128xf32> to vector<2x128xf32>
    %115 = arith.addf %113, %114 : vector<2x128xf32>
    %cst_79 = arith.constant 0.000000e+00 : f32
    %116 = vector.broadcast %cst_79 : f32 to vector<2x128xf32>
    %117 = arith.maximumf %115, %116 : vector<2x128xf32>
    %118 = arith.truncf %117 : vector<2x128xf32> to vector<2x128xbf16>
    %c9_80 = arith.constant 9 : index
    %c0_81 = arith.constant 0 : index
    %c0_82 = arith.constant 0 : index
    %119 = vector.load %arg4[%c9_80, %c0_81, %c0_82] : memref<16x128x512xbf16, #tpu.memory_space<vmem>>, vector<1x128x512xbf16>
    %120 = vector.shape_cast %119 : vector<1x128x512xbf16> to vector<128x512xbf16>
    %cst_83 = arith.constant dense<0.000000e+00> : vector<2x512xf32>
    %121 = tpu.matmul %118, %120, %cst_83 {dimension_numbers = #tpu.dot_dimension_numbers<[1], [0], [0], [1], [0, 0, 1, 1], [], []>} : vector<2x128xbf16>, vector<128x512xbf16>, vector<2x512xf32> -> vector<2x512xf32>
    %122 = arith.addf %110, %121 : vector<2x512xf32>
    %c10 = arith.constant 10 : index
    %c0_84 = arith.constant 0 : index
    %c0_85 = arith.constant 0 : index
    %123 = vector.load %arg1[%c10, %c0_84, %c0_85] : memref<16x2x64xf32, #tpu.memory_space<vmem>>, vector<1x2x64xf32>
    %124 = vector.shape_cast %123 : vector<1x2x64xf32> to vector<2x64xf32>
    %cst_86 = arith.constant dense<0.000000e+00> : vector<2x128xf32>
    %125 = tpu.matmul %124, %0, %cst_86 {dimension_numbers = #tpu.dot_dimension_numbers<[1], [0], [0], [1], [0, 0, 1, 1], [], []>} : vector<2x64xf32>, vector<64x128xf32>, vector<2x128xf32> -> vector<2x128xf32>
    %126 = vector.broadcast %1 : vector<1x128xf32> to vector<2x128xf32>
    %127 = arith.addf %125, %126 : vector<2x128xf32>
    %cst_87 = arith.constant 0.000000e+00 : f32
    %128 = vector.broadcast %cst_87 : f32 to vector<2x128xf32>
    %129 = arith.maximumf %127, %128 : vector<2x128xf32>
    %130 = arith.truncf %129 : vector<2x128xf32> to vector<2x128xbf16>
    %c10_88 = arith.constant 10 : index
    %c0_89 = arith.constant 0 : index
    %c0_90 = arith.constant 0 : index
    %131 = vector.load %arg4[%c10_88, %c0_89, %c0_90] : memref<16x128x512xbf16, #tpu.memory_space<vmem>>, vector<1x128x512xbf16>
    %132 = vector.shape_cast %131 : vector<1x128x512xbf16> to vector<128x512xbf16>
    %cst_91 = arith.constant dense<0.000000e+00> : vector<2x512xf32>
    %133 = tpu.matmul %130, %132, %cst_91 {dimension_numbers = #tpu.dot_dimension_numbers<[1], [0], [0], [1], [0, 0, 1, 1], [], []>} : vector<2x128xbf16>, vector<128x512xbf16>, vector<2x512xf32> -> vector<2x512xf32>
    %134 = arith.addf %122, %133 : vector<2x512xf32>
    %c11 = arith.constant 11 : index
    %c0_92 = arith.constant 0 : index
    %c0_93 = arith.constant 0 : index
    %135 = vector.load %arg1[%c11, %c0_92, %c0_93] : memref<16x2x64xf32, #tpu.memory_space<vmem>>, vector<1x2x64xf32>
    %136 = vector.shape_cast %135 : vector<1x2x64xf32> to vector<2x64xf32>
    %cst_94 = arith.constant dense<0.000000e+00> : vector<2x128xf32>
    %137 = tpu.matmul %136, %0, %cst_94 {dimension_numbers = #tpu.dot_dimension_numbers<[1], [0], [0], [1], [0, 0, 1, 1], [], []>} : vector<2x64xf32>, vector<64x128xf32>, vector<2x128xf32> -> vector<2x128xf32>
    %138 = vector.broadcast %1 : vector<1x128xf32> to vector<2x128xf32>
    %139 = arith.addf %137, %138 : vector<2x128xf32>
    %cst_95 = arith.constant 0.000000e+00 : f32
    %140 = vector.broadcast %cst_95 : f32 to vector<2x128xf32>
    %141 = arith.maximumf %139, %140 : vector<2x128xf32>
    %142 = arith.truncf %141 : vector<2x128xf32> to vector<2x128xbf16>
    %c11_96 = arith.constant 11 : index
    %c0_97 = arith.constant 0 : index
    %c0_98 = arith.constant 0 : index
    %143 = vector.load %arg4[%c11_96, %c0_97, %c0_98] : memref<16x128x512xbf16, #tpu.memory_space<vmem>>, vector<1x128x512xbf16>
    %144 = vector.shape_cast %143 : vector<1x128x512xbf16> to vector<128x512xbf16>
    %cst_99 = arith.constant dense<0.000000e+00> : vector<2x512xf32>
    %145 = tpu.matmul %142, %144, %cst_99 {dimension_numbers = #tpu.dot_dimension_numbers<[1], [0], [0], [1], [0, 0, 1, 1], [], []>} : vector<2x128xbf16>, vector<128x512xbf16>, vector<2x512xf32> -> vector<2x512xf32>
    %146 = arith.addf %134, %145 : vector<2x512xf32>
    %c12 = arith.constant 12 : index
    %c0_100 = arith.constant 0 : index
    %c0_101 = arith.constant 0 : index
    %147 = vector.load %arg1[%c12, %c0_100, %c0_101] : memref<16x2x64xf32, #tpu.memory_space<vmem>>, vector<1x2x64xf32>
    %148 = vector.shape_cast %147 : vector<1x2x64xf32> to vector<2x64xf32>
    %cst_102 = arith.constant dense<0.000000e+00> : vector<2x128xf32>
    %149 = tpu.matmul %148, %0, %cst_102 {dimension_numbers = #tpu.dot_dimension_numbers<[1], [0], [0], [1], [0, 0, 1, 1], [], []>} : vector<2x64xf32>, vector<64x128xf32>, vector<2x128xf32> -> vector<2x128xf32>
    %150 = vector.broadcast %1 : vector<1x128xf32> to vector<2x128xf32>
    %151 = arith.addf %149, %150 : vector<2x128xf32>
    %cst_103 = arith.constant 0.000000e+00 : f32
    %152 = vector.broadcast %cst_103 : f32 to vector<2x128xf32>
    %153 = arith.maximumf %151, %152 : vector<2x128xf32>
    %154 = arith.truncf %153 : vector<2x128xf32> to vector<2x128xbf16>
    %c12_104 = arith.constant 12 : index
    %c0_105 = arith.constant 0 : index
    %c0_106 = arith.constant 0 : index
    %155 = vector.load %arg4[%c12_104, %c0_105, %c0_106] : memref<16x128x512xbf16, #tpu.memory_space<vmem>>, vector<1x128x512xbf16>
    %156 = vector.shape_cast %155 : vector<1x128x512xbf16> to vector<128x512xbf16>
    %cst_107 = arith.constant dense<0.000000e+00> : vector<2x512xf32>
    %157 = tpu.matmul %154, %156, %cst_107 {dimension_numbers = #tpu.dot_dimension_numbers<[1], [0], [0], [1], [0, 0, 1, 1], [], []>} : vector<2x128xbf16>, vector<128x512xbf16>, vector<2x512xf32> -> vector<2x512xf32>
    %158 = arith.addf %146, %157 : vector<2x512xf32>
    %c13 = arith.constant 13 : index
    %c0_108 = arith.constant 0 : index
    %c0_109 = arith.constant 0 : index
    %159 = vector.load %arg1[%c13, %c0_108, %c0_109] : memref<16x2x64xf32, #tpu.memory_space<vmem>>, vector<1x2x64xf32>
    %160 = vector.shape_cast %159 : vector<1x2x64xf32> to vector<2x64xf32>
    %cst_110 = arith.constant dense<0.000000e+00> : vector<2x128xf32>
    %161 = tpu.matmul %160, %0, %cst_110 {dimension_numbers = #tpu.dot_dimension_numbers<[1], [0], [0], [1], [0, 0, 1, 1], [], []>} : vector<2x64xf32>, vector<64x128xf32>, vector<2x128xf32> -> vector<2x128xf32>
    %162 = vector.broadcast %1 : vector<1x128xf32> to vector<2x128xf32>
    %163 = arith.addf %161, %162 : vector<2x128xf32>
    %cst_111 = arith.constant 0.000000e+00 : f32
    %164 = vector.broadcast %cst_111 : f32 to vector<2x128xf32>
    %165 = arith.maximumf %163, %164 : vector<2x128xf32>
    %166 = arith.truncf %165 : vector<2x128xf32> to vector<2x128xbf16>
    %c13_112 = arith.constant 13 : index
    %c0_113 = arith.constant 0 : index
    %c0_114 = arith.constant 0 : index
    %167 = vector.load %arg4[%c13_112, %c0_113, %c0_114] : memref<16x128x512xbf16, #tpu.memory_space<vmem>>, vector<1x128x512xbf16>
    %168 = vector.shape_cast %167 : vector<1x128x512xbf16> to vector<128x512xbf16>
    %cst_115 = arith.constant dense<0.000000e+00> : vector<2x512xf32>
    %169 = tpu.matmul %166, %168, %cst_115 {dimension_numbers = #tpu.dot_dimension_numbers<[1], [0], [0], [1], [0, 0, 1, 1], [], []>} : vector<2x128xbf16>, vector<128x512xbf16>, vector<2x512xf32> -> vector<2x512xf32>
    %170 = arith.addf %158, %169 : vector<2x512xf32>
    %c14 = arith.constant 14 : index
    %c0_116 = arith.constant 0 : index
    %c0_117 = arith.constant 0 : index
    %171 = vector.load %arg1[%c14, %c0_116, %c0_117] : memref<16x2x64xf32, #tpu.memory_space<vmem>>, vector<1x2x64xf32>
    %172 = vector.shape_cast %171 : vector<1x2x64xf32> to vector<2x64xf32>
    %cst_118 = arith.constant dense<0.000000e+00> : vector<2x128xf32>
    %173 = tpu.matmul %172, %0, %cst_118 {dimension_numbers = #tpu.dot_dimension_numbers<[1], [0], [0], [1], [0, 0, 1, 1], [], []>} : vector<2x64xf32>, vector<64x128xf32>, vector<2x128xf32> -> vector<2x128xf32>
    %174 = vector.broadcast %1 : vector<1x128xf32> to vector<2x128xf32>
    %175 = arith.addf %173, %174 : vector<2x128xf32>
    %cst_119 = arith.constant 0.000000e+00 : f32
    %176 = vector.broadcast %cst_119 : f32 to vector<2x128xf32>
    %177 = arith.maximumf %175, %176 : vector<2x128xf32>
    %178 = arith.truncf %177 : vector<2x128xf32> to vector<2x128xbf16>
    %c14_120 = arith.constant 14 : index
    %c0_121 = arith.constant 0 : index
    %c0_122 = arith.constant 0 : index
    %179 = vector.load %arg4[%c14_120, %c0_121, %c0_122] : memref<16x128x512xbf16, #tpu.memory_space<vmem>>, vector<1x128x512xbf16>
    %180 = vector.shape_cast %179 : vector<1x128x512xbf16> to vector<128x512xbf16>
    %cst_123 = arith.constant dense<0.000000e+00> : vector<2x512xf32>
    %181 = tpu.matmul %178, %180, %cst_123 {dimension_numbers = #tpu.dot_dimension_numbers<[1], [0], [0], [1], [0, 0, 1, 1], [], []>} : vector<2x128xbf16>, vector<128x512xbf16>, vector<2x512xf32> -> vector<2x512xf32>
    %182 = arith.addf %170, %181 : vector<2x512xf32>
    %c15 = arith.constant 15 : index
    %c0_124 = arith.constant 0 : index
    %c0_125 = arith.constant 0 : index
    %183 = vector.load %arg1[%c15, %c0_124, %c0_125] : memref<16x2x64xf32, #tpu.memory_space<vmem>>, vector<1x2x64xf32>
    %184 = vector.shape_cast %183 : vector<1x2x64xf32> to vector<2x64xf32>
    %cst_126 = arith.constant dense<0.000000e+00> : vector<2x128xf32>
    %185 = tpu.matmul %184, %0, %cst_126 {dimension_numbers = #tpu.dot_dimension_numbers<[1], [0], [0], [1], [0, 0, 1, 1], [], []>} : vector<2x64xf32>, vector<64x128xf32>, vector<2x128xf32> -> vector<2x128xf32>
    %186 = vector.broadcast %1 : vector<1x128xf32> to vector<2x128xf32>
    %187 = arith.addf %185, %186 : vector<2x128xf32>
    %cst_127 = arith.constant 0.000000e+00 : f32
    %188 = vector.broadcast %cst_127 : f32 to vector<2x128xf32>
    %189 = arith.maximumf %187, %188 : vector<2x128xf32>
    %190 = arith.truncf %189 : vector<2x128xf32> to vector<2x128xbf16>
    %c15_128 = arith.constant 15 : index
    %c0_129 = arith.constant 0 : index
    %c0_130 = arith.constant 0 : index
    %191 = vector.load %arg4[%c15_128, %c0_129, %c0_130] : memref<16x128x512xbf16, #tpu.memory_space<vmem>>, vector<1x128x512xbf16>
    %192 = vector.shape_cast %191 : vector<1x128x512xbf16> to vector<128x512xbf16>
    %cst_131 = arith.constant dense<0.000000e+00> : vector<2x512xf32>
    %193 = tpu.matmul %190, %192, %cst_131 {dimension_numbers = #tpu.dot_dimension_numbers<[1], [0], [0], [1], [0, 0, 1, 1], [], []>} : vector<2x128xbf16>, vector<128x512xbf16>, vector<2x512xf32> -> vector<2x512xf32>
    %194 = arith.addf %182, %193 : vector<2x512xf32>
    %c0_132 = arith.constant 0 : index
    %c0_133 = arith.constant 0 : index
    %195 = vector.load %arg5[%c0_132, %c0_133] : memref<1x512xf32, #tpu.memory_space<vmem>>, vector<1x512xf32>
    %196 = vector.broadcast %195 : vector<1x512xf32> to vector<2x512xf32>
    %197 = arith.addf %194, %196 : vector<2x512xf32>
    %cst_134 = arith.constant 0.000000e+00 : f32
    %198 = vector.broadcast %cst_134 : f32 to vector<2x512xf32>
    %199 = arith.maximumf %197, %198 : vector<2x512xf32>
    %200 = arith.truncf %199 : vector<2x512xf32> to vector<2x512xbf16>
    %c0_135 = arith.constant 0 : index
    %c0_136 = arith.constant 0 : index
    %201 = vector.load %arg6[%c0_135, %c0_136] : memref<512x128xbf16, #tpu.memory_space<vmem>>, vector<512x128xbf16>
    %cst_137 = arith.constant dense<0.000000e+00> : vector<2x128xf32>
    %202 = tpu.matmul %200, %201, %cst_137 {dimension_numbers = #tpu.dot_dimension_numbers<[1], [0], [0], [1], [0, 0, 1, 1], [], []>} : vector<2x512xbf16>, vector<512x128xbf16>, vector<2x128xf32> -> vector<2x128xf32>
    %c0_138 = arith.constant 0 : index
    %c0_139 = arith.constant 0 : index
    %c0_140 = arith.constant 0 : index
    %203 = vector.load %arg7[%c0_138, %c0_139, %c0_140] : memref<1x2x128xf32, #tpu.memory_space<vmem>>, vector<1x2x128xf32>
    %204 = vector.shape_cast %203 : vector<1x2x128xf32> to vector<2x128xf32>
    %205 = vector.shape_cast %202 : vector<2x128xf32> to vector<1x2x128xf32>
    tpu.vector_store %arg7[%c0_138, %c0_139, %c0_140], %205 {strides = array<i32>} : memref<1x2x128xf32, #tpu.memory_space<vmem>>, vector<1x2x128xf32>,
    return
  }
  func.func @transform_0(%arg0: i32) -> (i32, i32, i32) {
    %c0_i32 = arith.constant 0 : i32
    %c0_i32_0 = arith.constant 0 : i32
    %c0_i32_1 = arith.constant 0 : i32
    %c0_i32_2 = arith.constant 0 : i32
    return %c0_i32, %c0_i32_0, %c0_i32_1 : i32, i32, i32
  }
  func.func @transform_1(%arg0: i32) -> (i32, i32) {
    %c0_i32 = arith.constant 0 : i32
    %c0_i32_0 = arith.constant 0 : i32
    %c0_i32_1 = arith.constant 0 : i32
    return %c0_i32, %c0_i32_0 : i32, i32
  }
  func.func @transform_2(%arg0: i32) -> (i32, i32) {
    %c0_i32 = arith.constant 0 : i32
    %c0_i32_0 = arith.constant 0 : i32
    %c0_i32_1 = arith.constant 0 : i32
    return %c0_i32, %c0_i32_0 : i32, i32
  }
  func.func @transform_3(%arg0: i32) -> (i32, i32, i32) {
    %c0_i32 = arith.constant 0 : i32
    %c0_i32_0 = arith.constant 0 : i32
    %c0_i32_1 = arith.constant 0 : i32
    return %c0_i32, %c0_i32_0, %arg0 : i32, i32, i32
  }
  func.func @transform_4(%arg0: i32) -> (i32, i32) {
    %c0_i32 = arith.constant 0 : i32
    %c0_i32_0 = arith.constant 0 : i32
    return %c0_i32, %arg0 : i32, i32
  }
  func.func @transform_5(%arg0: i32) -> (i32, i32) {
    %c0_i32 = arith.constant 0 : i32
    %c0_i32_0 = arith.constant 0 : i32
    return %arg0, %c0_i32 : i32, i32
  }
  func.func @transform_6(%arg0: i32) -> (i32, i32, i32) {
    %c0_i32 = arith.constant 0 : i32
    %c0_i32_0 = arith.constant 0 : i32
    %c0_i32_1 = arith.constant 0 : i32
    return %arg0, %c0_i32, %c0_i32_0 : i32, i32, i32
  }
}

</mosaic_0001>

<bundles_post_ra>
// kernel: tpu_custom_call.1
= control target key start
LH: loop header
LB: loop body
LE: loop exit
PB: predicated region body
PF: predicated region fallthrough
CT: control target
= control target key end

     0   :  { %s10856_s0 = inlined_call_operand.hbm [shape: f32[16,2,64], index: 0, kind: input, shape index: {}]   ;;  %s10857_s1 = inlined_call_operand.hbm [shape: f32[64,128], index: 1, kind: input, shape index: {}]   ;;  %s10858_s2 = inlined_call_operand.hbm [shape: f32[1,128], index: 2, kind: input, shape index: {}]   ;;  %s10859_s3 = inlined_call_operand.hbm [shape: bf16[16,128,1024], index: 3, kind: input, shape index: {}]   ;;  %s10860_s4 = inlined_call_operand.hbm [shape: f32[1,1024], index: 4, kind: input, shape index: {}]   ;;  %s10861_s5 = inlined_call_operand.hbm [shape: bf16[1024,128], index: 5, kind: input, shape index: {}]   ;;  %s10862_s6 = inlined_call_operand.hbm [shape: f32[2,2,128], index: 6, kind: output, shape index: {}]  }
   0x1   :  { %10881 = sst [smem:[#allocation24_spill]] %s10857_s1 }
   0x2   :  { %10882 = sst [smem:[#allocation25_spill]] %s10859_s3 }
   0x3   :  { %10883 = sst [smem:[#allocation26_spill]] %s10862_s6 }
   0x4   :  { %11 = vsyncpa [#allocation3], 0 }
   0x5   :  { %12 = vsyncpa [#allocation6], 0 }
   0x6   :  { %13 = vsyncpa [#allocation9], 0 }
   0x7   :  { %15 = vsyncpa [#allocation9 + $0x1], 0 }
   0x8   :  { %16 = vsyncpa [#allocation12], 0 }
   0x9   :  { %18 = vsyncpa [#allocation12 + $0x1], 0 }
   0xa   :  { %19 = vsyncpa [#allocation4], 0 }
   0xb   :  { %21 = vsyncpa [#allocation4 + $0x1], 0  ;;  %s9588_s21 = smov 0   ;;  %s9590_s22 = smov 0  }
   0xc   :  { %s9592_s23 = smov 0   ;;  %s9594_s24 = smov 0  }
   0xd LB: > { %10884 = sst [smem:[#allocation19_spill]] %s9519_s21  ;;  %s9609_s25 = sadd.s32 4294967295, %s9531_s24   ;;  %s9531_s24 = sphi %s9594_s24, %s10918_s24   ;;  %s9527_s23 = sphi %s9592_s23, %s10920_s23   ;;  %s9523_s22 = sphi %s9590_s22, %s10922_s22   ;;  %s9519_s21 = sphi %s9588_s21, %s10921_s21  }
   0xe   : > { %10885 = sst [smem:[#allocation20_spill]] %s9527_s23  ;;  %s6622_s26 = sadd.s32 4294967294, %s9531_s24  }
   0xf   : > { %s9613_s27 = sadd.s32 1, %s9531_s24   ;;  %s97_s28 = sadd.s32 1, %s9527_s23 }
  0x10   : > { %10886 = sst [smem:[#allocation21_spill]] %s9613_s27  ;;  %s94_s29 = ssub.s32 %s9531_s24, %s9613_s27 }
  0x11   : > { %p104_p0 = scmp.ne.s32.totalorder %s9527_s23, %s9523_s22  ;;  %p95_p1 = scmp.eq.s32.totalorder %s94_s29, 0 }
  0x12   : > { %p105_p2 = scmp.eq.s32.totalorder %s9531_s24, 0  ;;  %p110_p3 = scmp.ne.s32.totalorder %s9523_s22, %s9519_s21 }
  0x13   : > { %p10863_p4 = scmp.eq.s32.totalorder %s9609_s25, 0  ;;  %p186_p7 = scmp.eq.s32.totalorder %s9609_s25, 1 }
  0x14   : > { %s9625_s30 = scalar_select %p95_p1, %s9527_s23, %s97_s28  }
  0x15   : > { %p9627_p5 = por %p105_p2, %p104_p0  ;;  %p9633_p6 = por %p10863_p4, %p110_p3 }
  0x16   : > { %10887 = sst [smem:[#allocation22_spill]] %s9625_s30  ;;  %p192_p8 = scmp.eq.s32.totalorder %s6622_s26, 1 }
  0x17   : > { %s10888_s7 = scalar_select %p9627_p5, 1, 0 }
  0x18   : > { %s10889_s8 = scalar_select %p9633_p6, 1, 0 }
  0x19   : > { %p6623_p9 = scmp.ge.s32.totalorder %s9531_s24, 1  ;;  %p199_p10 = scmp.lt.s32.totalorder %s9531_s24, 3 }
  0x1a   : > { %p9640_p11 = por %p186_p7, %p104_p0  ;;  %p9644_p12 = por %p192_p8, %p110_p3 }
  0x1b   : > { %p9648_p13 = pnand %p6623_p9, %p199_p10  ;;  %s9533_s12 = smov [#allocation5]  }
  0x1c   : > { %s10890_s9 = scalar_select %p9640_p11, 1, 0 }
  0x1d   : > { %s10891_s10 = scalar_select %p9644_p12, 1, 0 }
  0x1e   : > { %s10893_s11 = scalar_select %p9648_p13, 1, 0 }
  0x1f   : > { %10892 = sst [smem:[#allocation23_spill]] %s10891_s10  ;;  %p8397_p1 = pneg %p9648_p13 }
  0x20   : > { %s224_s13 = sshll.u32 %s9533_s12, 4  ;;  %s249_s15 = sand.u32 1, %s9531_s24   ;;  %s225_s13 = int_to_ptr.vmem [resolvable:$true] %s224_s13 }
  0x21   : > { %p9656_p2 = pnand %p8397_p1, %p10863_p4  ;;  %s10895_s1 = sld [smem:[#allocation24_spill]] }
  0x23   : > { %s10894_s14 = scalar_select %p9656_p2, 1, 0 }
  0x24   : > { %p9671_p8 = pneg %p9656_p2 }
  0x26   : > { %s10896_s26 = scalar_select %p9671_p8, 1, 0 }
  0x27   : > { %s9279_s18 = scalar_lea.hbm %s10895_s1, 1024 }
  0x28   : > { %p9280_p7 = scmp.ne.s32.totalorder %s10895_s1, %s9279_s18  ;;  %p9286_p1 = scmp.lt.u32.totalorder %s9279_s18, %s10895_s1 }
  0x2a   : > { %p9282_p9 = pnand %p9671_p8, %p9280_p7 }
  0x2c   : > { %p9283_p10 = pneg %p9282_p9 }
  0x2e   : > { %p9288_p0 = pnand %p9286_p1, %p9283_p10 }
  0x30   : > { %9291 = shalt.err (!%p9288_p0)
}
  0x31   : > { %s9292_s12 = scalar_lea.vmem %s225_s13, 1024  ;;  %p9300_p11 = scmp.lt.s32.totalorder %s225_s13, %s225_s13 }
  0x32   : > { %p9293_p4 = scmp.ne.s32.totalorder %s225_s13, %s9292_s12  ;;  %p9301_p6 = scmp.lt.s32.totalorder %s9292_s12, %s9292_s12 }
  0x34   : > { %p9295_p3 = pnand %p9293_p4, %p9671_p8  ;;  %p9302_p13 = por %p9301_p6, %p9300_p11 }
  0x36   : > { %p9296_p12 = pneg %p9295_p3 }
  0x38   : > { %p9303_p5 = pnand %p9302_p13, %p9296_p12 }
  0x3a   : > { %9306 = shalt.err (!%p9303_p5)
}
  0x3b   : > { %s9534_s16 = smov 128   ;;  %s9535_s17 = smov 8  }
  0x3c   : > { %8403 = dma.hbm_to_vmem [thread:$0]  (!%p9656_p2), %s10895_s1, 1024, %s225_s13, [#allocation6], %s9534_s16, %s9534_s16, %s9535_s17  }
  0x3d   : > { %p10897_p0 = scmp.ne.s32.totalorder %s10888_s7, 0  ;;  %p10898_p4 = scmp.lt.s32.totalorder %s9531_s24, 2 }
  0x3e   : > { %s9696_s28 = sand.u32 1, %s9527_s23   ;;  %s7690_s12 = sshll.u32 %s9531_s24, 8 }
  0x3f   : > { %p9691_p3 = pnand %p10898_p4, %p10897_p0  ;;  %s6628_s29 = sshll.u32 %s9696_s28, 12 }
  0x40   : > { %s10900_s3 = sld [smem:[#allocation25_spill]]  ;;  %s253_s7 = scalar_lea.vmem [#allocation8], %s6628_s29 }
  0x41   : > { %s10899_s20 = scalar_select %p9691_p3, 1, 0 }
  0x42   : > { %s260_s13 = sshll.u32 %s253_s7, 4  ;;  %s9707_s16 = scalar_lea.sflag [#allocation9], %s249_s15  ;;  %s9705_s13 = int_to_ptr.vmem [resolvable:$true] %s260_s13 }
  0x43   : > { %p9713_p6 = pneg %p9691_p3 }
  0x45   : > { %s10901_s18 = scalar_select %p9713_p6, 1, 0 }
  0x46   : > { %s9703_s10 = scalar_lea.hbm %s10900_s3, %s7690_s12  ;;  %s9312_s19 = scalar_lea.hbm %s10900_s3, 131072 }
  0x47   : > { %s9307_s17 = scalar_lea.hbm %s9703_s10, 65536  ;;  %p9313_p13 = scmp.lt.u32.totalorder %s9703_s10, %s10900_s3 }
  0x48   : > { %p9308_p5 = scmp.ne.s32.totalorder %s9703_s10, %s9307_s17  ;;  %p9314_p7 = scmp.lt.u32.totalorder %s9312_s19, %s9307_s17 }
  0x49   : > { %p9316_p10 = scmp.lt.u32.totalorder %s9307_s17, %s9703_s10 }
  0x4a   : > { %p9310_p11 = pnand %p9713_p6, %p9308_p5  ;;  %p9315_p9 = por %p9314_p7, %p9313_p13 }
  0x4c   : > { %p9311_p12 = pneg %p9310_p11  ;;  %p9317_p1 = por %p9316_p10, %p9315_p9 }
  0x4e   : > { %p9318_p0 = pnand %p9317_p1, %p9311_p12 }
  0x50   : > { %9321 = shalt.err (!%p9318_p0)
}
  0x51   : > { %s9322_s15 = scalar_lea.vmem %s9705_s13, 65536  ;;  %s9536_s7 = smov [#allocation8]  }
  0x52   : > { %p9323_p4 = scmp.ne.s32.totalorder %s9705_s13, %s9322_s15  ;;  %s9327_s27 = sshll.u32 %s9536_s7, 4  ;;  %s9328_s27 = int_to_ptr.vmem [resolvable:$false] %s9327_s27 }
  0x53   : > { %s9329_s30 = scalar_lea.vmem %s9328_s27, 131072  ;;  %p9330_p2 = scmp.lt.s32.totalorder %s9705_s13, %s9328_s27 }
  0x54   : > { %p9325_p5 = pnand %p9323_p4, %p9713_p6  ;;  %p9331_p8 = scmp.lt.s32.totalorder %s9329_s30, %s9322_s15 }
  0x56   : > { %p9326_p11 = pneg %p9325_p5  ;;  %p9332_p13 = por %p9331_p8, %p9330_p2 }
  0x58   : > { %p9333_p7 = pnand %p9332_p13, %p9326_p11 }
  0x5a   : > { %9336 = shalt.err (!%p9333_p7)
}
  0x5b   : > { %s9537_s17 = smov 512   ;;  %s9538_s19 = smov 256  }
  0x5c   : > { %s9539_s29 = smov 16   ;;  %s9540_s12 = smov [#allocation2]  }
  0x5d   : > { %8410 = dma.hbm_to_vmem [thread:$0]  (!%p9691_p3), %s9703_s10, 65536, %s9705_s13, %s9707_s16, %s9537_s17, %s9538_s19, %s9539_s29  }
  0x5e   : > { %s211_s1 = sshll.u32 %s9540_s12, 4  ;;  %s9337_s15 = scalar_lea.hbm %s10856_s0, 512  ;;  %s212_s1 = int_to_ptr.vmem [resolvable:$true] %s211_s1 }
  0x5f   : > { %p9338_p2 = scmp.ne.s32.totalorder %s10856_s0, %s9337_s15  ;;  %p10902_p8 = scmp.ne.s32.totalorder %s10896_s26, 0 }
  0x60   : > { %p9344_p10 = scmp.lt.u32.totalorder %s9337_s15, %s10856_s0 }
  0x61   : > { %p9340_p12 = pnand %p9338_p2, %p10902_p8 }
  0x63   : > { %p9341_p9 = pneg %p9340_p12 }
  0x65   : > { %p9346_p1 = pnand %p9344_p10, %p9341_p9 }
  0x67   : > { %9349 = shalt.err (!%p9346_p1)
}
  0x68   : > { %s9350_s10 = scalar_lea.vmem %s212_s1, 512  ;;  %p9358_p11 = scmp.lt.s32.totalorder %s212_s1, %s212_s1 }
  0x69   : > { %p9351_p0 = scmp.ne.s32.totalorder %s212_s1, %s9350_s10  ;;  %p9359_p13 = scmp.lt.s32.totalorder %s9350_s10, %s9350_s10 }
  0x6b   : > { %p9353_p4 = pnand %p9351_p0, %p10902_p8  ;;  %p9360_p7 = por %p9359_p13, %p9358_p11 }
  0x6d   : > { %p9354_p5 = pneg %p9353_p4 }
  0x6f   : > { %p9361_p3 = pnand %p9360_p7, %p9354_p5 }
  0x71   : > { %9364 = shalt.err (!%p9361_p3)
}
  0x72   : > { %s9541_s3 = smov 32   ;;  %s9542_s13 = smov 2  }
  0x73   : > { %p10903_p2 = scmp.ne.s32.totalorder %s10894_s14, 0  ;;  %s9543_s17 = smov [#allocation7]  }
  0x74   : > { %s238_s19 = sshll.u32 %s9543_s17, 4  ;;  %s6631_s29 = sshll.u32 %s9696_s28, 2  ;;  %s239_s19 = int_to_ptr.vmem [resolvable:$true] %s238_s19 }
  0x75   : > { %8400 = dma.hbm_to_vmem [thread:$0]  (!%p10903_p2), %s10856_s0, 512, %s212_s1, [#allocation3], %s9541_s3, %s9541_s3, %s9542_s13  }
  0x76   : > { %s9365_s15 = scalar_lea.hbm %s10858_s2, 16 }
  0x77   : > { %p9366_p3 = scmp.ne.s32.totalorder %s10858_s2, %s9365_s15  ;;  %p9372_p10 = scmp.lt.u32.totalorder %s9365_s15, %s10858_s2 }
  0x79   : > { %p9368_p12 = pnand %p9366_p3, %p10902_p8 }
  0x7b   : > { %p9369_p9 = pneg %p9368_p12 }
  0x7d   : > { %p9374_p1 = pnand %p9372_p10, %p9369_p9 }
  0x7f   : > { %9377 = shalt.err (!%p9374_p1)
}
  0x80   : > { %s9378_s1 = scalar_lea.vmem %s239_s19, 16  ;;  %s9385_s3 = scalar_lea.vmem %s239_s19, 32 }
  0x81   : > { %p9379_p0 = scmp.ne.s32.totalorder %s239_s19, %s9378_s1  ;;  %p9386_p11 = scmp.lt.s32.totalorder %s239_s19, %s239_s19 }
  0x82   : > { %p9387_p13 = scmp.lt.s32.totalorder %s9385_s3, %s9378_s1 }
  0x83   : > { %p9381_p4 = pnand %p9379_p0, %p10902_p8 }
  0x84   : > { %p9388_p7 = por %p9387_p13, %p9386_p11 }
  0x85   : > { %p9382_p5 = pneg %p9381_p4 }
  0x87   : > { %p9389_p6 = pnand %p9388_p7, %p9382_p5 }
  0x89   : > { %9392 = shalt.err (!%p9389_p6)
}
  0x8a   : > { %8406 = dma.hbm_to_vmem [thread:$0]  (!%p10903_p2), %s10858_s2, 16, %s239_s19, [#allocation6]  }
  0x8b   : > { %s7691_s6 = sshll.u32 %s9531_s24, 6  ;;  %s274_s23 = scalar_lea.vmem [#allocation10], %s6631_s29 }
  0x8c   : > { %s282_s17 = sshll.u32 %s274_s23, 4  ;;  %s280_s7 = scalar_lea.hbm %s10860_s4, %s7691_s6  ;;  %s283_s17 = int_to_ptr.vmem [resolvable:$true] %s282_s17 }
  0x8d   : > { %s9393_s15 = scalar_lea.hbm %s280_s7, 64  ;;  %p10904_p3 = scmp.ne.s32.totalorder %s10901_s18, 0 }
  0x8e   : > { %p9394_p8 = scmp.ne.s32.totalorder %s280_s7, %s9393_s15  ;;  %s9398_s30 = scalar_lea.hbm %s10860_s4, 128 }
  0x8f   : > { %p9399_p2 = scmp.lt.u32.totalorder %s280_s7, %s10860_s4  ;;  %p9400_p9 = scmp.lt.u32.totalorder %s9398_s30, %s9393_s15 }
  0x90   : > { %p9396_p6 = pnand %p9394_p8, %p10904_p3  ;;  %p9402_p1 = scmp.lt.u32.totalorder %s9393_s15, %s280_s7 }
  0x91   : > { %p9401_p10 = por %p9400_p9, %p9399_p2 }
  0x92   : > { %p9397_p12 = pneg %p9396_p6 }
  0x93   : > { %p9403_p0 = por %p9402_p1, %p9401_p10 }
  0x95   : > { %p9404_p4 = pnand %p9403_p0, %p9397_p12 }
  0x97   : > { %9407 = shalt.err (!%p9404_p4)
}
  0x98   : > { %s9408_s19 = scalar_lea.vmem %s283_s17, 64  ;;  %s9544_s29 = smov [#allocation10]  }
  0x99   : > { %p9409_p5 = scmp.ne.s32.totalorder %s283_s17, %s9408_s19  ;;  %s9413_s3 = sshll.u32 %s9544_s29, 4  ;;  %s9414_s3 = int_to_ptr.vmem [resolvable:$false] %s9413_s3 }
  0x9a   : > { %s9415_s13 = scalar_lea.vmem %s9414_s3, 128  ;;  %p9416_p7 = scmp.lt.s32.totalorder %s283_s17, %s9414_s3 }
  0x9b   : > { %p9411_p11 = pnand %p9409_p5, %p10904_p3  ;;  %p9417_p8 = scmp.lt.s32.totalorder %s9415_s13, %s9408_s19 }
  0x9d   : > { %p9412_p13 = pneg %p9411_p11  ;;  %p9418_p6 = por %p9417_p8, %p9416_p7 }
  0x9f   : > { %p9419_p2 = pnand %p9418_p6, %p9412_p13 }
  0xa1   : > { %9422 = shalt.err (!%p9419_p2)
}
  0xa2   : > { %p10905_p9 = scmp.ne.s32.totalorder %s10899_s20, 0  ;;  %s6634_s21 = sshll.u32 %s9696_s28, 8 }
  0xa3   : > { %s7692_s6 = sshll.u32 %s9531_s24, 12  ;;  %s293_s15 = scalar_lea.vmem [#allocation11], %s6634_s21 }
  0xa4   : > { %8413 = dma.hbm_to_vmem [thread:$0]  (!%p10905_p9), %s280_s7, 64, %s283_s17, %s9707_s16  }
  0xa5   : > { %s9796_s12 = scalar_lea.hbm %s10861_s5, %s7692_s6  ;;  %s300_s14 = sshll.u32 %s293_s15, 4  ;;  %s9798_s14 = int_to_ptr.vmem [resolvable:$true] %s300_s14 }
  0xa6   : > { %s290_s27 = scalar_lea.sflag [#allocation12], %s9696_s28  ;;  %s9423_s30 = scalar_lea.hbm %s9796_s12, 4096 }
  0xa7   : > { %p9424_p12 = scmp.ne.s32.totalorder %s9796_s12, %s9423_s30  ;;  %s9428_s7 = scalar_lea.hbm %s10861_s5, 8192 }
  0xa8   : > { %p9429_p0 = scmp.lt.u32.totalorder %s9796_s12, %s10861_s5  ;;  %p9430_p4 = scmp.lt.u32.totalorder %s9428_s7, %s9423_s30 }
  0xa9   : > { %p9426_p10 = pnand %p9424_p12, %p10904_p3  ;;  %p9432_p11 = scmp.lt.u32.totalorder %s9423_s30, %s9796_s12 }
  0xaa   : > { %p9431_p5 = por %p9430_p4, %p9429_p0 }
  0xab   : > { %p9427_p1 = pneg %p9426_p10 }
  0xac   : > { %p9433_p13 = por %p9432_p11, %p9431_p5 }
  0xae   : > { %p9434_p7 = pnand %p9433_p13, %p9427_p1 }
  0xb0   : > { %9437 = shalt.err (!%p9434_p7)
}
  0xb1   : > { %s9438_s19 = scalar_lea.vmem %s9798_s14, 4096  ;;  %s9545_s29 = smov [#allocation11]  }
  0xb2   : > { %p9439_p8 = scmp.ne.s32.totalorder %s9798_s14, %s9438_s19  ;;  %s9443_s3 = sshll.u32 %s9545_s29, 4  ;;  %s9444_s3 = int_to_ptr.vmem [resolvable:$false] %s9443_s3 }
  0xb3   : > { %s9445_s13 = scalar_lea.vmem %s9444_s3, 8192  ;;  %p9446_p12 = scmp.lt.s32.totalorder %s9798_s14, %s9444_s3 }
  0xb4   : > { %p9441_p6 = pnand %p9439_p8, %p10904_p3  ;;  %p9447_p10 = scmp.lt.s32.totalorder %s9445_s13, %s9438_s19 }
  0xb6   : > { %p9442_p2 = pneg %p9441_p6  ;;  %p9448_p0 = por %p9447_p10, %p9446_p12 }
  0xb8   : > { %p9449_p4 = pnand %p9448_p0, %p9442_p2 }
  0xba   : > { %9452 = shalt.err (!%p9449_p4)
}
  0xbb   : > { %s9546_s21 = smov 64   ;;  %s9547_s6 = smov 4  }
  0xbc   : > { %8416 = dma.hbm_to_vmem [thread:$0]  (!%p10905_p9), %s9796_s12, 4096, %s9798_s14, %s290_s27, %s9546_s21, %s9546_s21, %s9547_s6  }
  0xbd   : > { %p10906_p3 = scmp.ne.s32.totalorder %s10893_s11, 0 }
  0xbe   : > { %p10907_p1 = scmp.eq.s32.totalorder (!%p10906_p3), %s9609_s25, 0 }
  0xbf   : > { %312 = sbr.rel (%p10906_p3) target bundleno = 4208 (0x1070), region = 44 }
  0xc6   : > { %9498 = dma.done.wait (%p10907_p1), [#allocation3], 512   ;;  %p10908_p5 = pmov %p10907_p1 }
  0xc7   : > { %p10909_p11 = pmov %p10907_p1 }
  0xc8   : > { %9500 = vsyncadd (%p10908_p5), [#allocation3], 4294966784 }
  0xc9   : > { %9502 = dma.done.wait (%p10909_p11), [#allocation6], 1040   ;;  %p10910_p13 = pmov %p10907_p1 }
  0xca   : > { %s326_s20 = sand.u32 1, %s9609_s25   ;;  %s9836_s28 = sand.u32 1, %s9523_s22  }
  0xcb   : > { %9504 = vsyncadd (%p10910_p13), [#allocation6], 4294966256  ;;  %s6641_s11 = sshll.u32 %s9836_s28, 12  ;;  %s327_s18 = scalar_lea.sflag [#allocation9], %s326_s20 }
  0xcc   : > { %s9839_s23 = scalar_lea.vmem [#allocation8], %s6641_s11  ;;  %p10911_p9 = scmp.ne.s32.totalorder %s10889_s8, 0 }
  0xce   : > { %9506 = dma.done.wait (%p10911_p9), %s327_s18, 65600  }
  0xcf   : > { %9508 = vsyncadd (%p10911_p9), %s327_s18, 4294901696  ;;  %s6642_s26 = sshll.u32 %s9836_s28, 2  ;;  %s6643_s12 = sshll.u32 %s9836_s28, 8 }
  0xd0   : > { %s9847_s15 = scalar_lea.vmem [#allocation10], %s6642_s26  ;;  %s345_s14 = scalar_lea.sflag [#allocation12], %s9836_s28 }
  0xd1   : > { %s9850_s27 = scalar_lea.vmem [#allocation11], %s6643_s12 }
  0xd2   : > { %9510 = dma.done.wait (%p10911_p9), %s345_s14, 4096  }
  0xd3   : > { %9512 = vsyncadd (%p10911_p9), %s345_s14, 4294963200  ;;  %v9548_v0 = vmov 0.0|0.0   ;;  %vm9549_vm0 = vmmov 0   ;;  %v9550_v1 = vmov 0.0   ;;  %v391_v2 = vld [vmem:[#allocation5] sm:$0xff]  ;;  %v392_v3 = vld [vmem:[#allocation5 + $0x8] sm:$0xff] }
  0xd4   : > { %8197 = vmatprep.subr.bf16.mxu1 %v9548_v0  ;;  %7916 = vmatprep.mubr.msk.f32.mxu1 %vm9549_vm0, %v9550_v1  ;;  %v393_v4 = vld [vmem:[#allocation5 + $0x10] sm:$0xff]  ;;  %v9862_v5 = vpack.c.bf16 %v392_v3, %v391_v2  ;;  %v394_v6 = vld [vmem:[#allocation5 + $0x18] sm:$0xff]  ;;  %v395_v8 = vld [vmem:[#allocation5 + $0x20] sm:$0xff]  ;;  %vm407_vm1 = vcmask 523264   ;;  %v9551_v50 = vmov 0   ;;  %s6644_s8 = sshll.u32 %s9836_s28, 1 }
  0xd5   : > { %8185 = vmatprep.subr.bf16.mxu0 %v9548_v0  ;;  %7897 = vmatprep.mubr.msk.f32.mxu0 %vm9549_vm0, %v9550_v1  ;;  %v9865_v7 = vpack.c.bf16 %v394_v6, %v393_v4  ;;  %v396_v9 = vld [vmem:[#allocation5 + $0x28] sm:$0xff]  ;;  %v397_v11 = vld [vmem:[#allocation5 + $0x30] sm:$0xff]  ;;  %v398_v12 = vld [vmem:[#allocation5 + $0x38] sm:$0xff]  ;;  %s7687_s30 = sshll.u32 %s9609_s25, 5  ;;  %s386_s16 = scalar_lea.vmem [#allocation13], %s6644_s8 }
  0xd6   : > { %8199 = vmatpush3.bf16.msra.mxu1 %v9862_v5  ;;  %8187 = vmatpush3.bf16.msra.mxu0 %v9862_v5  ;;  %v9871_v10 = vpack.c.bf16 %v396_v9, %v395_v8  ;;  %v9877_v13 = vpack.c.bf16 %v398_v12, %v397_v11  ;;  %v8479_v14 = vld [vmem:[%s9839_s23 + $0x104] ss:$16 sps:$4 sm:$0xff]   ;;  %v8482_v15 = vld [vmem:[%s9839_s23 + $0x10c] ss:$16 sps:$4 sm:$0xff]   ;;  %v516_v16 = vld [vmem:[#allocation2 + $0x2] sm:$0x3] }
  0xd7   : > { %8200 = vmatprep.subr.bf16.mxu1 %v9548_v0  ;;  %8188 = vmatprep.subr.bf16.mxu0 %v9548_v0  ;;  %v400_v17 = vld [vmem:[#allocation2] sm:$0x3]  ;;  %v8477_v18 = vld [vmem:[%s9839_s23 + $0x100] ss:$16 sps:$4 sm:$0xff]   ;;  %v8480_v19 = vld [vmem:[%s9839_s23 + $0x108] ss:$16 sps:$4 sm:$0xff]  }
  0xd8   : > { %v8485_v20 = vld [vmem:[%s9839_s23 + $0x124] ss:$16 sps:$4 sm:$0xff]   ;;  %v8488_v21 = vld [vmem:[%s9839_s23 + $0x12c] ss:$16 sps:$4 sm:$0xff]   ;;  %v8483_v22 = vld [vmem:[%s9839_s23 + $0x120] ss:$16 sps:$4 sm:$0xff]  }
  0xd9   : > { %v8486_v23 = vld [vmem:[%s9839_s23 + $0x128] ss:$16 sps:$4 sm:$0xff]   ;;  %v8491_v24 = vld [vmem:[%s9839_s23 + $0x144] ss:$16 sps:$4 sm:$0xff]   ;;  %v8494_v25 = vld [vmem:[%s9839_s23 + $0x14c] ss:$16 sps:$4 sm:$0xff]  }
  0xda   : > { %8202 = vmatpush3.bf16.msra.mxu1 %v9865_v7  ;;  %8190 = vmatpush3.bf16.msra.mxu0 %v9865_v7  ;;  %v8489_v26 = vld [vmem:[%s9839_s23 + $0x140] ss:$16 sps:$4 sm:$0xff]   ;;  %v8492_v27 = vld [vmem:[%s9839_s23 + $0x148] ss:$16 sps:$4 sm:$0xff]   ;;  %v8497_v28 = vld [vmem:[%s9839_s23 + $0x164] ss:$16 sps:$4 sm:$0xff]  }
  0xdb   : > { %8203 = vmatprep.subr.bf16.mxu1 %v9548_v0  ;;  %8191 = vmatprep.subr.bf16.mxu0 %v9548_v0  ;;  %v8500_v29 = vld [vmem:[%s9839_s23 + $0x16c] ss:$16 sps:$4 sm:$0xff]   ;;  %v8495_v30 = vld [vmem:[%s9839_s23 + $0x160] ss:$16 sps:$4 sm:$0xff]   ;;  %v8498_v31 = vld [vmem:[%s9839_s23 + $0x168] ss:$16 sps:$4 sm:$0xff]  }
  0xdc   : > { %v8503_v32 = vld [vmem:[%s9839_s23 + $0x184] ss:$16 sps:$4 sm:$0xff]   ;;  %v8506_v33 = vld [vmem:[%s9839_s23 + $0x18c] ss:$16 sps:$4 sm:$0xff]   ;;  %v8501_v34 = vld [vmem:[%s9839_s23 + $0x180] ss:$16 sps:$4 sm:$0xff]  }
  0xdd   : > { %v8504_v35 = vld [vmem:[%s9839_s23 + $0x188] ss:$16 sps:$4 sm:$0xff]   ;;  %v8509_v36 = vld [vmem:[%s9839_s23 + $0x1a4] ss:$16 sps:$4 sm:$0xff]   ;;  %v8512_v37 = vld [vmem:[%s9839_s23 + $0x1ac] ss:$16 sps:$4 sm:$0xff]  }
  0xde   : > { %8205 = vmatpush3.bf16.msra.mxu1 %v9871_v10  ;;  %8193 = vmatpush3.bf16.msra.mxu0 %v9871_v10  ;;  %v8507_v38 = vld [vmem:[%s9839_s23 + $0x1a0] ss:$16 sps:$4 sm:$0xff]   ;;  %v8510_v39 = vld [vmem:[%s9839_s23 + $0x1a8] ss:$16 sps:$4 sm:$0xff]   ;;  %v8515_v40 = vld [vmem:[%s9839_s23 + $0x1c4] ss:$16 sps:$4 sm:$0xff]  }
  0xdf   : > { %8206 = vmatprep.subr.bf16.mxu1 %v9548_v0  ;;  %8194 = vmatprep.subr.bf16.mxu0 %v9548_v0  ;;  %v8518_v41 = vld [vmem:[%s9839_s23 + $0x1cc] ss:$16 sps:$4 sm:$0xff]   ;;  %v8513_v42 = vld [vmem:[%s9839_s23 + $0x1c0] ss:$16 sps:$4 sm:$0xff]   ;;  %v8516_v43 = vld [vmem:[%s9839_s23 + $0x1c8] ss:$16 sps:$4 sm:$0xff]  }
  0xe0   : > { %v8521_v44 = vld [vmem:[%s9839_s23 + $0x1e4] ss:$16 sps:$4 sm:$0xff]   ;;  %v8524_v45 = vld [vmem:[%s9839_s23 + $0x1ec] ss:$16 sps:$4 sm:$0xff]   ;;  %v8519_v46 = vld [vmem:[%s9839_s23 + $0x1e0] ss:$16 sps:$4 sm:$0xff]  }
  0xe1   : > { %v8522_v47 = vld [vmem:[%s9839_s23 + $0x1e8] ss:$16 sps:$4 sm:$0xff]   ;;  %v8527_v48 = vld [vmem:[%s9839_s23 + $0x4] ss:$16 sps:$4 sm:$0xff]   ;;  %v8530_v49 = vld [vmem:[%s9839_s23 + $0xc] ss:$16 sps:$4 sm:$0xff]  }
  0xe2   : > { %8208 = vmatpush3.bf16.msra.mxu1 %v9877_v13  ;;  %8196 = vmatpush3.bf16.msra.mxu0 %v9877_v13  ;;  %v9922_v51 = vld [vmem:[#allocation7] ss:$0 sm:$0xff]  ;;  %v8525_v58 = vld [vmem:[%s9839_s23] ss:$16 sps:$4 sm:$0xff]   ;;  %v8528_v59 = vld [vmem:[%s9839_s23 + $0x8] ss:$16 sps:$4 sm:$0xff]  }
  0xe3   : > { %785 = vmatprep.subr.bf16.mxu0 %v8479_v14  ;;  %826 = vmatprep.subr.bf16.mxu1 %v8482_v15  ;;  %v8533_v61 = vld [vmem:[%s9839_s23 + $0x24] ss:$16 sps:$4 sm:$0xff]   ;;  %v8536_v62 = vld [vmem:[%s9839_s23 + $0x2c] ss:$16 sps:$4 sm:$0xff]   ;;  %v8531_v63 = vld [vmem:[%s9839_s23 + $0x20] ss:$16 sps:$4 sm:$0xff]  }
  0xe4   : > { %v8534_v2 = vld [vmem:[%s9839_s23 + $0x28] ss:$16 sps:$4 sm:$0xff]   ;;  %v8539_v3 = vld [vmem:[%s9839_s23 + $0x44] ss:$16 sps:$4 sm:$0xff]   ;;  %v8542_v4 = vld [vmem:[%s9839_s23 + $0x4c] ss:$16 sps:$4 sm:$0xff]  }
  0xe5   : > { %7917 = vmatmul.mubr.msk.f32.vlgmr.msra.gmra.mrb[0].mxu1 %vm407_vm1, %v516_v16  ;;  %7898 = vmatmul.mubr.msk.f32.vlgmr.msra.gmra.mrb[0].mxu0 %vm407_vm1, %v400_v17  ;;  %v8537_v6 = vld [vmem:[%s9839_s23 + $0x40] ss:$16 sps:$4 sm:$0xff]   ;;  %v8540_v8 = vld [vmem:[%s9839_s23 + $0x48] ss:$16 sps:$4 sm:$0xff]   ;;  %v8545_v9 = vld [vmem:[%s9839_s23 + $0x64] ss:$16 sps:$4 sm:$0xff]  }
  0xe6   : > { %786 = vmatpush1.bf16.msra.mxu0 %v8477_v18  ;;  %827 = vmatpush1.bf16.msra.mxu1 %v8480_v19  ;;  %v8548_v11 = vld [vmem:[%s9839_s23 + $0x6c] ss:$16 sps:$4 sm:$0xff]   ;;  %v8543_v12 = vld [vmem:[%s9839_s23 + $0x60] ss:$16 sps:$4 sm:$0xff]   ;;  %v8546_v14 = vld [vmem:[%s9839_s23 + $0x68] ss:$16 sps:$4 sm:$0xff]  }
  0xe7   : > { %787 = vmatprep.subr.bf16.mxu0 %v8485_v20  ;;  %828 = vmatprep.subr.bf16.mxu1 %v8488_v21  ;;  %v8551_v15 = vld [vmem:[%s9839_s23 + $0x84] ss:$16 sps:$4 sm:$0xff]   ;;  %v8554_v16 = vld [vmem:[%s9839_s23 + $0x8c] ss:$16 sps:$4 sm:$0xff]   ;;  %v8549_v17 = vld [vmem:[%s9839_s23 + $0x80] ss:$16 sps:$4 sm:$0xff]  }
  0xe8   : > { %817 = vmatprep.mubr.bf16.mxu0 %v9551_v50  ;;  %858 = vmatprep.mubr.bf16.mxu1 %v9551_v50  ;;  %v8552_v18 = vld [vmem:[%s9839_s23 + $0x88] ss:$16 sps:$4 sm:$0xff]   ;;  %v8557_v19 = vld [vmem:[%s9839_s23 + $0xa4] ss:$16 sps:$4 sm:$0xff]   ;;  %v8560_v20 = vld [vmem:[%s9839_s23 + $0xac] ss:$16 sps:$4 sm:$0xff]  }
  0xe9   : > { %v8555_v21 = vld [vmem:[%s9839_s23 + $0xa0] ss:$16 sps:$4 sm:$0xff]   ;;  %s6478_s17 = sshll.u32 %s386_s16, 4  ;;  %s10912_s1 = sld [smem:[#allocation26_spill]]  ;;  %s10814_s17 = int_to_ptr.vmem [resolvable:$true] %s6478_s17 }
  0xea   : > { %788 = vmatpush1.bf16.msra.mxu0 %v8483_v22  ;;  %829 = vmatpush1.bf16.msra.mxu1 %v8486_v23  ;;  %v8558_v22 = vld [vmem:[%s9839_s23 + $0xa8] ss:$16 sps:$4 sm:$0xff]   ;;  %v8563_v23 = vld [vmem:[%s9839_s23 + $0xc4] ss:$16 sps:$4 sm:$0xff]   ;;  %s6465_s25 = scalar_lea.sflag [#allocation4], %s9836_s28  ;;  %s9453_s29 = scalar_lea.vmem %s10814_s17, 32 }
  0xeb   : > { %789 = vmatprep.subr.bf16.mxu0 %v8491_v24  ;;  %830 = vmatprep.subr.bf16.mxu1 %v8494_v25  ;;  %v8566_v24 = vld [vmem:[%s9839_s23 + $0xcc] ss:$16 sps:$4 sm:$0xff]   ;;  %p9454_p7 = scmp.ne.s32.totalorder %s10814_s17, %s9453_s29  ;;  %p10913_p8 = scmp.ne.s32.totalorder %s10890_s9, 0 }
  0xec   : > { %s9552_s3 = smov [#allocation13]  }
  0xed   : > { %p9455_p6 = pnand %p9454_p7, %p10913_p8  ;;  %s9457_s13 = sshll.u32 %s9552_s3, 4  ;;  %s9458_s13 = int_to_ptr.vmem [resolvable:$false] %s9457_s13 }
  0xee   : > { %790 = vmatpush1.bf16.msra.mxu0 %v8489_v26  ;;  %831 = vmatpush1.bf16.msra.mxu1 %v8492_v27  ;;  %v8561_v26 = vld [vmem:[%s9839_s23 + $0xc0] ss:$16 sps:$4 sm:$0xff]   ;;  %v8564_v27 = vld [vmem:[%s9839_s23 + $0xc8] ss:$16 sps:$4 sm:$0xff]   ;;  %s9459_s21 = scalar_lea.vmem %s9458_s13, 64  ;;  %p9460_p12 = scmp.lt.s32.totalorder %s10814_s17, %s9458_s13 }
  0xef   : > { %791 = vmatprep.subr.bf16.mxu0 %v8497_v28  ;;  %832 = vmatprep.subr.bf16.mxu1 %v8500_v29  ;;  %v8569_v28 = vld [vmem:[%s9839_s23 + $0xe4] ss:$16 sps:$4 sm:$0xff]   ;;  %v8572_v29 = vld [vmem:[%s9839_s23 + $0xec] ss:$16 sps:$4 sm:$0xff]   ;;  %s10812_s19 = scalar_lea.hbm %s10912_s1, %s7687_s30  ;;  %p9456_p2 = pneg %p9455_p6 }
  0xf0   : > { %p9461_p10 = scmp.lt.s32.totalorder %s9459_s21, %s9453_s29 }
  0xf2   : > { %792 = vmatpush1.bf16.msra.mxu0 %v8495_v30  ;;  %833 = vmatpush1.bf16.msra.mxu1 %v8498_v31  ;;  %v8567_v31 = vld [vmem:[%s9839_s23 + $0xe0] ss:$16 sps:$4 sm:$0xff]   ;;  %p9462_p0 = por %p9461_p10, %p9460_p12 }
  0xf3   : > { %793 = vmatprep.subr.bf16.mxu0 %v8503_v32  ;;  %834 = vmatprep.subr.bf16.mxu1 %v8506_v33  ;;  %v8570_v32 = vld [vmem:[%s9839_s23 + $0xe8] ss:$16 sps:$4 sm:$0xff]  }
  0xf4   : > { %p9463_p4 = pnand %p9462_p0, %p9456_p2 }
  0xf6   : > { %794 = vmatpush1.bf16.msra.mxu0 %v8501_v34  ;;  %835 = vmatpush1.bf16.msra.mxu1 %v8504_v35  ;;  %v1110_v34 = vld [vmem:[#allocation2 + $0x4] sm:$0x3] }
  0xf7   : > { %795 = vmatprep.subr.bf16.mxu0 %v8509_v36  ;;  %836 = vmatprep.subr.bf16.mxu1 %v8512_v37  ;;  %v8573_v35 = vld [vmem:[%s9839_s23 + $0x200] ss:$16 sps:$4 sm:$0xff]   ;;  %v8575_v36 = vld [vmem:[%s9839_s23 + $0x204] ss:$16 sps:$4 sm:$0xff]   ;;  %v8576_v37 = vld [vmem:[%s9839_s23 + $0x208] ss:$16 sps:$4 sm:$0xff]  }
  0xfa   : > { %796 = vmatpush1.bf16.msra.mxu0 %v8507_v38  ;;  %837 = vmatpush1.bf16.msra.mxu1 %v8510_v39  ;;  %v8578_v38 = vld [vmem:[%s9839_s23 + $0x20c] ss:$16 sps:$4 sm:$0xff]   ;;  %v8581_v39 = vld [vmem:[%s9839_s23 + $0x224] ss:$16 sps:$4 sm:$0xff]  }
  0xfb   : > { %797 = vmatprep.subr.bf16.mxu0 %v8515_v40  ;;  %838 = vmatprep.subr.bf16.mxu1 %v8518_v41  ;;  %v8584_v40 = vld [vmem:[%s9839_s23 + $0x22c] ss:$16 sps:$4 sm:$0xff]   ;;  %v8579_v41 = vld [vmem:[%s9839_s23 + $0x220] ss:$16 sps:$4 sm:$0xff]  }
  0xfe   : > { %798 = vmatpush1.bf16.msra.mxu0 %v8513_v42  ;;  %839 = vmatpush1.bf16.msra.mxu1 %v8516_v43  ;;  %v8582_v42 = vld [vmem:[%s9839_s23 + $0x228] ss:$16 sps:$4 sm:$0xff]   ;;  %v8587_v43 = vld [vmem:[%s9839_s23 + $0x244] ss:$16 sps:$4 sm:$0xff]  }
  0xff   : > { %799 = vmatprep.subr.bf16.mxu0 %v8521_v44  ;;  %840 = vmatprep.subr.bf16.mxu1 %v8524_v45  ;;  %v8590_v44 = vld [vmem:[%s9839_s23 + $0x24c] ss:$16 sps:$4 sm:$0xff]   ;;  %v8585_v45 = vld [vmem:[%s9839_s23 + $0x240] ss:$16 sps:$4 sm:$0xff]  }
 0x102   : > { %800 = vmatpush1.bf16.msra.mxu0 %v8519_v46  ;;  %841 = vmatpush1.bf16.msra.mxu1 %v8522_v47  ;;  %v8588_v46 = vld [vmem:[%s9839_s23 + $0x248] ss:$16 sps:$4 sm:$0xff]   ;;  %v8593_v47 = vld [vmem:[%s9839_s23 + $0x264] ss:$16 sps:$4 sm:$0xff]  }
 0x103   : > { %1027 = vmatprep.subr.bf16.mxu0 %v8527_v48  ;;  %1068 = vmatprep.subr.bf16.mxu1 %v8530_v49  ;;  %v8591_v48 = vld [vmem:[%s9839_s23 + $0x260] ss:$16 sps:$4 sm:$0xff]   ;;  %v8596_v49 = vld [vmem:[%s9839_s23 + $0x26c] ss:$16 sps:$4 sm:$0xff]  }
 0x1b8   : > { %v586_v52 = vpop.f32.mrb[0].mxu1  ;;  %v477_v53 = vpop.f32.mrb[0].mxu0 }
 0x1b9   : > { %v587_v54 = vadd.f32 %v9922_v51, %v586_v52  ;;  %v7918_v55 = vpop.f32.mrb[1].mxu1  ;;  %v7899_v56 = vpop.f32.mrb[1].mxu0  ;;  %v478_v25 = vadd.f32 %v9922_v51, %v477_v53  ;;  %v8594_v52 = vld [vmem:[%s9839_s23 + $0x268] ss:$16 sps:$4 sm:$0xff]   ;;  %v8597_v53 = vld [vmem:[%s9839_s23 + $0x280] ss:$16 sps:$4 sm:$0xff]  }
 0x1ba   : > { %v8600_v55 = vld [vmem:[%s9839_s23 + $0x288] ss:$16 sps:$4 sm:$0xff]   ;;  %v8602_v56 = vld [vmem:[%s9839_s23 + $0x28c] ss:$16 sps:$4 sm:$0xff]  }
 0x1bb   : > { %v590_v57 = vmax.f32 %v587_v54, 0.0  ;;  %v481_v30 = vmax.f32 %v478_v25, 0.0  ;;  %v8599_v54 = vld [vmem:[%s9839_s23 + $0x284] ss:$16 sps:$4 sm:$0xff]  }
 0x1bd   : > { %v591_v60 = vpack.c.bf16 %v590_v57, %v590_v57  ;;  %v482_v33 = vpack.c.bf16 %v481_v30, %v481_v30  ;;  %v8605_v57 = vld [vmem:[%s9839_s23 + $0x2a4] ss:$16 sps:$4 sm:$0xff]  }
 0x1bf   : > { %818 = vmatmul.mubr.bf16.vlgmr.msra.gmra.mrb[4].mxu0 %v591_v60  ;;  %859 = vmatmul.mubr.bf16.vlgmr.msra.gmra.mrb[4].mxu1 %v591_v60  ;;  %v8606_v60 = vld [vmem:[%s9839_s23 + $0x2a8] ss:$16 sps:$4 sm:$0xff]  }
 0x1c0   : > { %1028 = vmatpush1.bf16.msra.mxu0 %v8525_v58  ;;  %1069 = vmatpush1.bf16.msra.mxu1 %v8528_v59  ;;  %v8608_v58 = vld [vmem:[%s9839_s23 + $0x2ac] ss:$16 sps:$4 sm:$0xff]   ;;  %v8603_v59 = vld [vmem:[%s9839_s23 + $0x2a0] ss:$16 sps:$4 sm:$0xff]  }
 0x1c1   : > { %1029 = vmatprep.subr.bf16.mxu0 %v8533_v61  ;;  %1070 = vmatprep.subr.bf16.mxu1 %v8536_v62  ;;  %v8611_v61 = vld [vmem:[%s9839_s23 + $0x2c4] ss:$16 sps:$4 sm:$0xff]   ;;  %v8614_v62 = vld [vmem:[%s9839_s23 + $0x2cc] ss:$16 sps:$4 sm:$0xff]  }
 0x1c2   : > { %1059 = vmatprep.mubr.bf16.mxu0 %v9551_v50  ;;  %1100 = vmatprep.mubr.bf16.mxu1 %v9551_v50 }
 0x1c4   : > { %1030 = vmatpush1.bf16.msra.mxu0 %v8531_v63  ;;  %1071 = vmatpush1.bf16.msra.mxu1 %v8534_v2  ;;  %v8609_v63 = vld [vmem:[%s9839_s23 + $0x2c0] ss:$16 sps:$4 sm:$0xff]   ;;  %v8612_v2 = vld [vmem:[%s9839_s23 + $0x2c8] ss:$16 sps:$4 sm:$0xff]  }
 0x1c5   : > { %1031 = vmatprep.subr.bf16.mxu0 %v8539_v3  ;;  %1072 = vmatprep.subr.bf16.mxu1 %v8542_v4  ;;  %v8617_v3 = vld [vmem:[%s9839_s23 + $0x2e4] ss:$16 sps:$4 sm:$0xff]   ;;  %v8615_v4 = vld [vmem:[%s9839_s23 + $0x2e0] ss:$16 sps:$4 sm:$0xff]  }
 0x1c8   : > { %1032 = vmatpush1.bf16.msra.mxu0 %v8537_v6  ;;  %1073 = vmatpush1.bf16.msra.mxu1 %v8540_v8  ;;  %v8620_v6 = vld [vmem:[%s9839_s23 + $0x2ec] ss:$16 sps:$4 sm:$0xff]   ;;  %v8618_v8 = vld [vmem:[%s9839_s23 + $0x2e8] ss:$16 sps:$4 sm:$0xff]  }
 0x1c9   : > { %1033 = vmatprep.subr.bf16.mxu0 %v8545_v9  ;;  %1074 = vmatprep.subr.bf16.mxu1 %v8548_v11  ;;  %v8623_v9 = vld [vmem:[%s9839_s23 + $0x304] ss:$16 sps:$4 sm:$0xff]  }
 0x1cc   : > { %1034 = vmatpush1.bf16.msra.mxu0 %v8543_v12  ;;  %1075 = vmatpush1.bf16.msra.mxu1 %v8546_v14 }
 0x1cd   : > { %1035 = vmatprep.subr.bf16.mxu0 %v8551_v15  ;;  %1076 = vmatprep.subr.bf16.mxu1 %v8554_v16 }
 0x1d0   : > { %1036 = vmatpush1.bf16.msra.mxu0 %v8549_v17  ;;  %1077 = vmatpush1.bf16.msra.mxu1 %v8552_v18 }
 0x1d1   : > { %1037 = vmatprep.subr.bf16.mxu0 %v8557_v19  ;;  %1078 = vmatprep.subr.bf16.mxu1 %v8560_v20 }
 0x1d4   : > { %1038 = vmatpush1.bf16.msra.mxu0 %v8555_v21  ;;  %1079 = vmatpush1.bf16.msra.mxu1 %v8558_v22 }
 0x1d5   : > { %1039 = vmatprep.subr.bf16.mxu0 %v8563_v23  ;;  %1080 = vmatprep.subr.bf16.mxu1 %v8566_v24 }
 0x1d8   : > { %1040 = vmatpush1.bf16.msra.mxu0 %v8561_v26  ;;  %1081 = vmatpush1.bf16.msra.mxu1 %v8564_v27 }
 0x1d9   : > { %1041 = vmatprep.subr.bf16.mxu0 %v8569_v28  ;;  %1082 = vmatprep.subr.bf16.mxu1 %v8572_v29 }
 0x1dc   : > { %1042 = vmatpush1.bf16.msra.mxu0 %v8567_v31  ;;  %1083 = vmatpush1.bf16.msra.mxu1 %v8570_v32 }
 0x1dd   : > { %8209 = vmatprep.subr.bf16.mxu0 %v9548_v0  ;;  %1379 = vmatprep.subr.bf16.mxu1 %v8575_v36 }
 0x1df   : > { %1060 = vmatmul.mubr.bf16.vlgmr.msra.gmra.mrb[8].mxu0 %v482_v33  ;;  %1101 = vmatmul.mubr.bf16.vlgmr.msra.gmra.mrb[8].mxu1 %v482_v33 }
 0x1e0   : > { %8211 = vmatpush3.bf16.msra.mxu0 %v9862_v5  ;;  %7935 = vmatprep.mubr.msk.f32.mxu0 %vm9549_vm0, %v9550_v1 }
 0x1e1   : > { %8212 = vmatprep.subr.bf16.mxu0 %v9548_v0  ;;  %1411 = vmatprep.mubr.bf16.mxu1 %v9551_v50 }
 0x1e2   : > { %1380 = vmatpush1.bf16.msra.mxu1 %v8573_v35 }
 0x1e3   : > { %1381 = vmatprep.subr.bf16.mxu1 %v8581_v39  ;;  %v8627_v39 = vld [vmem:[%s9839_s23 + $0x320] ss:$16 sps:$4 sm:$0xff]  }
 0x1e4   : > { %8214 = vmatpush3.bf16.msra.mxu0 %v9865_v7 }
 0x1e5   : > { %8215 = vmatprep.subr.bf16.mxu0 %v9548_v0 }
 0x1e6   : > { %1382 = vmatpush1.bf16.msra.mxu1 %v8579_v41  ;;  %v8633_v41 = vld [vmem:[%s9839_s23 + $0x340] ss:$16 sps:$4 sm:$0xff]  }
 0x1e7   : > { %1383 = vmatprep.subr.bf16.mxu1 %v8587_v43  ;;  %v1466_v43 = vld [vmem:[#allocation2 + $0x6] sm:$0x3] }
 0x1e8   : > { %8217 = vmatpush3.bf16.msra.mxu0 %v9871_v10 }
 0x1e9   : > { %8218 = vmatprep.subr.bf16.mxu0 %v9548_v0 }
 0x1ea   : > { %1384 = vmatpush1.bf16.msra.mxu1 %v8585_v45  ;;  %v8632_v45 = vld [vmem:[%s9839_s23 + $0x32c] ss:$16 sps:$4 sm:$0xff]  }
 0x1eb   : > { %1385 = vmatprep.subr.bf16.mxu1 %v8593_v47  ;;  %v8638_v47 = vld [vmem:[%s9839_s23 + $0x34c] ss:$16 sps:$4 sm:$0xff]  }
 0x1ec   : > { %8220 = vmatpush3.bf16.msra.mxu0 %v9877_v13 }
 0x1ed   : > { %1420 = vmatprep.subr.bf16.mxu0 %v8578_v38  ;;  %v8629_v38 = vld [vmem:[%s9839_s23 + $0x324] ss:$16 sps:$4 sm:$0xff]  }
 0x1ee   : > { %1386 = vmatpush1.bf16.msra.mxu1 %v8591_v48  ;;  %v8636_v48 = vld [vmem:[%s9839_s23 + $0x348] ss:$16 sps:$4 sm:$0xff]  }
 0x1ef   : > { %7936 = vmatmul.mubr.msk.f32.vlgmr.msra.gmra.mrb[2].mxu0 %vm407_vm1, %v1110_v34  ;;  %1387 = vmatprep.subr.bf16.mxu1 %v8599_v54  ;;  %v8642_v54 = vld [vmem:[%s9839_s23 + $0x368] ss:$16 sps:$4 sm:$0xff]  }
 0x1f0   : > { %1452 = vmatprep.mubr.bf16.mxu0 %v9551_v50  ;;  %1421 = vmatpush1.bf16.msra.mxu0 %v8576_v37  ;;  %v8621_v37 = vld [vmem:[%s9839_s23 + $0x300] ss:$16 sps:$4 sm:$0xff]  }
 0x1f1   : > { %1422 = vmatprep.subr.bf16.mxu0 %v8584_v40  ;;  %v8635_v40 = vld [vmem:[%s9839_s23 + $0x344] ss:$16 sps:$4 sm:$0xff]  }
 0x1f2   : > { %1388 = vmatpush1.bf16.msra.mxu1 %v8597_v53  ;;  %v8644_v53 = vld [vmem:[%s9839_s23 + $0x36c] ss:$16 sps:$4 sm:$0xff]  }
 0x1f3   : > { %1389 = vmatprep.subr.bf16.mxu1 %v8605_v57  ;;  %v8648_v57 = vld [vmem:[%s9839_s23 + $0x388] ss:$16 sps:$4 sm:$0xff]  }
 0x1f4   : > { %1423 = vmatpush1.bf16.msra.mxu0 %v8582_v42  ;;  %v8626_v42 = vld [vmem:[%s9839_s23 + $0x30c] ss:$16 sps:$4 sm:$0xff]  }
 0x1f5   : > { %1424 = vmatprep.subr.bf16.mxu0 %v8590_v44  ;;  %v8624_v44 = vld [vmem:[%s9839_s23 + $0x308] ss:$16 sps:$4 sm:$0xff]  }
 0x1f6   : > { %1390 = vmatpush1.bf16.msra.mxu1 %v8603_v59  ;;  %v8653_v59 = vld [vmem:[%s9839_s23 + $0x3a4] ss:$16 sps:$4 sm:$0xff]  }
 0x1f7   : > { %1391 = vmatprep.subr.bf16.mxu1 %v8611_v61  ;;  %v8651_v61 = vld [vmem:[%s9839_s23 + $0x3a0] ss:$16 sps:$4 sm:$0xff]  }
 0x1f8   : > { %1425 = vmatpush1.bf16.msra.mxu0 %v8588_v46  ;;  %v8630_v46 = vld [vmem:[%s9839_s23 + $0x328] ss:$16 sps:$4 sm:$0xff]  }
 0x1f9   : > { %1426 = vmatprep.subr.bf16.mxu0 %v8596_v49  ;;  %v8641_v49 = vld [vmem:[%s9839_s23 + $0x364] ss:$16 sps:$4 sm:$0xff]  }
 0x1fa   : > { %1392 = vmatpush1.bf16.msra.mxu1 %v8609_v63  ;;  %v8659_v63 = vld [vmem:[%s9839_s23 + $0x3c4] ss:$16 sps:$4 sm:$0xff]  }
 0x1fb   : > { %1393 = vmatprep.subr.bf16.mxu1 %v8617_v3  ;;  %v8657_v3 = vld [vmem:[%s9839_s23 + $0x3c0] ss:$16 sps:$4 sm:$0xff]  }
 0x1fc   : > { %1427 = vmatpush1.bf16.msra.mxu0 %v8594_v52  ;;  %v8639_v52 = vld [vmem:[%s9839_s23 + $0x360] ss:$16 sps:$4 sm:$0xff]  }
 0x1fd   : > { %1428 = vmatprep.subr.bf16.mxu0 %v8602_v56  ;;  %v8647_v56 = vld [vmem:[%s9839_s23 + $0x384] ss:$16 sps:$4 sm:$0xff]  }
 0x1fe   : > { %1394 = vmatpush1.bf16.msra.mxu1 %v8615_v4  ;;  %v8660_v4 = vld [vmem:[%s9839_s23 + $0x3c8] ss:$16 sps:$4 sm:$0xff]  }
 0x1ff   : > { %8221 = vmatprep.subr.bf16.mxu1 %v9548_v0 }
 0x200   : > { %1429 = vmatpush1.bf16.msra.mxu0 %v8600_v55  ;;  %v8645_v55 = vld [vmem:[%s9839_s23 + $0x380] ss:$16 sps:$4 sm:$0xff]  }
 0x201   : > { %1430 = vmatprep.subr.bf16.mxu0 %v8608_v58  ;;  %v8650_v58 = vld [vmem:[%s9839_s23 + $0x38c] ss:$16 sps:$4 sm:$0xff]  }
 0x204   : > { %1431 = vmatpush1.bf16.msra.mxu0 %v8606_v60  ;;  %v8656_v60 = vld [vmem:[%s9839_s23 + $0x3ac] ss:$16 sps:$4 sm:$0xff]  }
 0x205   : > { %1432 = vmatprep.subr.bf16.mxu0 %v8614_v62  ;;  %v8654_v62 = vld [vmem:[%s9839_s23 + $0x3a8] ss:$16 sps:$4 sm:$0xff]  }
 0x208   : > { %1433 = vmatpush1.bf16.msra.mxu0 %v8612_v2  ;;  %v8662_v2 = vld [vmem:[%s9839_s23 + $0x3cc] ss:$16 sps:$4 sm:$0xff]  }
 0x209   : > { %1434 = vmatprep.subr.bf16.mxu0 %v8620_v6  ;;  %v8665_v6 = vld [vmem:[%s9839_s23 + $0x3e4] ss:$16 sps:$4 sm:$0xff]  }
 0x20c   : > { %1435 = vmatpush1.bf16.msra.mxu0 %v8618_v8  ;;  %v8663_v8 = vld [vmem:[%s9839_s23 + $0x3e0] ss:$16 sps:$4 sm:$0xff]  }
 0x20d   : > { %1735 = vmatprep.subr.bf16.mxu0 %v8623_v9  ;;  %v8668_v9 = vld [vmem:[%s9839_s23 + $0x3ec] ss:$16 sps:$4 sm:$0xff]  }
 0x292   : > { %v819_v11 = vpop.f32.mrb[4].mxu0  ;;  %v860_v12 = vpop.f32.mrb[4].mxu1 }
 0x293   : > { %v821_v14 = vpop.f32.mrb[5].mxu0  ;;  %v862_v15 = vpop.f32.mrb[5].mxu1 }
 0x294   : > { %v823_v16 = vpop.f32.mrb[6].mxu0  ;;  %v864_v17 = vpop.f32.mrb[6].mxu1 }
 0x295   : > { %v824_v18 = vpop.f32.mrb[7].mxu0  ;;  %v865_v19 = vpop.f32.mrb[7].mxu1 }
 0x2b2   : > { %v1061_v20 = vpop.f32.mrb[8].mxu0  ;;  %v1102_v21 = vpop.f32.mrb[8].mxu1 }
 0x2b3   : > { %v10005_v22 = vadd.f32 %v1061_v20, %v819_v11  ;;  %v10007_v23 = vadd.f32 %v1102_v21, %v860_v12  ;;  %v1063_v24 = vpop.f32.mrb[9].mxu0  ;;  %v1104_v25 = vpop.f32.mrb[9].mxu1  ;;  %v8666_v11 = vld [vmem:[%s9839_s23 + $0x3e8] ss:$16 sps:$4 sm:$0xff]   ;;  %v8671_v12 = vld [vmem:[%s9839_s23 + $0x404] ss:$16 sps:$4 sm:$0xff]  }
 0x2b4   : > { %v10009_v26 = vadd.f32 %v1063_v24, %v821_v14  ;;  %v10011_v27 = vadd.f32 %v1104_v25, %v862_v15  ;;  %v1065_v28 = vpop.f32.mrb[10].mxu0  ;;  %v1106_v29 = vpop.f32.mrb[10].mxu1 }
 0x2b5   : > { %v1066_v30 = vpop.f32.mrb[11].mxu0  ;;  %v1107_v31 = vpop.f32.mrb[11].mxu1 }
 0x2c2   : > { %v1180_v32 = vpop.f32.mrb[2].mxu0 }
 0x2c3   : > { %v1181_v33 = vadd.f32 %v9922_v51, %v1180_v32  ;;  %v7937_v34 = vpop.f32.mrb[3].mxu0 }
 0x2c4   : > { %v8677_v34 = vld [vmem:[%s9839_s23 + $0x424] ss:$16 sps:$4 sm:$0xff]  }
 0x2c5   : > { %v1184_v35 = vmax.f32 %v1181_v33, 0.0  ;;  %v8669_v33 = vld [vmem:[%s9839_s23 + $0x400] ss:$16 sps:$4 sm:$0xff]  }
 0x2c7   : > { %v1185_v36 = vpack.c.bf16 %v1184_v35, %v1184_v35  ;;  %v8681_v35 = vld [vmem:[%s9839_s23 + $0x440] ss:$16 sps:$4 sm:$0xff]  }
 0x2c9   : > { %1412 = vmatmul.mubr.bf16.vlgmr.msra.gmra.mrb[12].mxu1 %v1185_v36  ;;  %1453 = vmatmul.mubr.bf16.vlgmr.msra.gmra.mrb[12].mxu0 %v1185_v36  ;;  %v8674_v36 = vld [vmem:[%s9839_s23 + $0x40c] ss:$16 sps:$4 sm:$0xff]  }
 0x2ca   : > { %8223 = vmatpush3.bf16.msra.mxu1 %v9862_v5  ;;  %7954 = vmatprep.mubr.msk.f32.mxu1 %vm9549_vm0, %v9550_v1 }
 0x2cb   : > { %8224 = vmatprep.subr.bf16.mxu1 %v9548_v0  ;;  %1736 = vmatpush1.bf16.msra.mxu0 %v8621_v37  ;;  %v1822_v37 = vld [vmem:[#allocation2 + $0x8] sm:$0x3] }
 0x2cc   : > { %1737 = vmatprep.subr.bf16.mxu0 %v8629_v38  ;;  %1767 = vmatprep.mubr.bf16.mxu0 %v9551_v50  ;;  %v8672_v38 = vld [vmem:[%s9839_s23 + $0x408] ss:$16 sps:$4 sm:$0xff]  }
 0x2ce   : > { %8226 = vmatpush3.bf16.msra.mxu1 %v9865_v7 }
 0x2cf   : > { %8227 = vmatprep.subr.bf16.mxu1 %v9548_v0  ;;  %1738 = vmatpush1.bf16.msra.mxu0 %v8627_v39  ;;  %v8680_v39 = vld [vmem:[%s9839_s23 + $0x42c] ss:$16 sps:$4 sm:$0xff]  }
 0x2d0   : > { %1739 = vmatprep.subr.bf16.mxu0 %v8635_v40  ;;  %v8678_v40 = vld [vmem:[%s9839_s23 + $0x428] ss:$16 sps:$4 sm:$0xff]  }
 0x2d2   : > { %8229 = vmatpush3.bf16.msra.mxu1 %v9871_v10 }
 0x2d3   : > { %8230 = vmatprep.subr.bf16.mxu1 %v9548_v0  ;;  %1740 = vmatpush1.bf16.msra.mxu0 %v8633_v41  ;;  %v8686_v41 = vld [vmem:[%s9839_s23 + $0x44c] ss:$16 sps:$4 sm:$0xff]  }
 0x2d4   : > { %1741 = vmatprep.subr.bf16.mxu0 %v8641_v49  ;;  %v8696_v49 = vld [vmem:[%s9839_s23 + $0x488] ss:$16 sps:$4 sm:$0xff]  }
 0x2d6   : > { %8232 = vmatpush3.bf16.msra.mxu1 %v9877_v13 }
 0x2d7   : > { %1776 = vmatprep.subr.bf16.mxu1 %v8626_v42  ;;  %1742 = vmatpush1.bf16.msra.mxu0 %v8639_v52  ;;  %v8684_v42 = vld [vmem:[%s9839_s23 + $0x448] ss:$16 sps:$4 sm:$0xff]   ;;  %v8698_v52 = vld [vmem:[%s9839_s23 + $0x48c] ss:$16 sps:$4 sm:$0xff]  }
 0x2d8   : > { %1743 = vmatprep.subr.bf16.mxu0 %v8647_v56  ;;  %v8702_v56 = vld [vmem:[%s9839_s23 + $0x4a8] ss:$16 sps:$4 sm:$0xff]  }
 0x2d9   : > { %7955 = vmatmul.mubr.msk.f32.vlgmr.msra.gmra.mrb[2].mxu1 %vm407_vm1, %v1466_v43  ;;  %v8689_v43 = vld [vmem:[%s9839_s23 + $0x464] ss:$16 sps:$4 sm:$0xff]  }
 0x2da   : > { %1777 = vmatpush1.bf16.msra.mxu1 %v8624_v44  ;;  %1808 = vmatprep.mubr.bf16.mxu1 %v9551_v50  ;;  %v8687_v44 = vld [vmem:[%s9839_s23 + $0x460] ss:$16 sps:$4 sm:$0xff]  }
 0x2db   : > { %1778 = vmatprep.subr.bf16.mxu1 %v8632_v45  ;;  %1744 = vmatpush1.bf16.msra.mxu0 %v8645_v55  ;;  %v8692_v45 = vld [vmem:[%s9839_s23 + $0x46c] ss:$16 sps:$4 sm:$0xff]   ;;  %v8699_v55 = vld [vmem:[%s9839_s23 + $0x4a0] ss:$16 sps:$4 sm:$0xff]  }
 0x2dc   : > { %1745 = vmatprep.subr.bf16.mxu0 %v8653_v59  ;;  %v8705_v59 = vld [vmem:[%s9839_s23 + $0x4c0] ss:$16 sps:$4 sm:$0xff]  }
 0x2de   : > { %1779 = vmatpush1.bf16.msra.mxu1 %v8630_v46  ;;  %v8690_v46 = vld [vmem:[%s9839_s23 + $0x468] ss:$16 sps:$4 sm:$0xff]  }
 0x2df   : > { %1780 = vmatprep.subr.bf16.mxu1 %v8638_v47  ;;  %1746 = vmatpush1.bf16.msra.mxu0 %v8651_v61  ;;  %v8693_v47 = vld [vmem:[%s9839_s23 + $0x480] ss:$16 sps:$4 sm:$0xff]   ;;  %v8713_v61 = vld [vmem:[%s9839_s23 + $0x4e4] ss:$16 sps:$4 sm:$0xff]  }
 0x2e0   : > { %1747 = vmatprep.subr.bf16.mxu0 %v8659_v63  ;;  %v8716_v63 = vld [vmem:[%s9839_s23 + $0x4ec] ss:$16 sps:$4 sm:$0xff]  }
 0x2e2   : > { %1781 = vmatpush1.bf16.msra.mxu1 %v8636_v48  ;;  %v8695_v48 = vld [vmem:[%s9839_s23 + $0x484] ss:$16 sps:$4 sm:$0xff]  }
 0x2e3   : > { %1782 = vmatprep.subr.bf16.mxu1 %v8644_v53  ;;  %1748 = vmatpush1.bf16.msra.mxu0 %v8657_v3  ;;  %v8701_v53 = vld [vmem:[%s9839_s23 + $0x4a4] ss:$16 sps:$4 sm:$0xff]  }
 0x2e4   : > { %1749 = vmatprep.subr.bf16.mxu0 %v8665_v6  ;;  %v8719_v3 = vld [vmem:[%s9839_s23 + $0x504] ss:$16 sps:$4 sm:$0xff]  }
 0x2e6   : > { %1783 = vmatpush1.bf16.msra.mxu1 %v8642_v54  ;;  %v8704_v54 = vld [vmem:[%s9839_s23 + $0x4ac] ss:$16 sps:$4 sm:$0xff]  }
 0x2e7   : > { %1784 = vmatprep.subr.bf16.mxu1 %v8650_v58  ;;  %1750 = vmatpush1.bf16.msra.mxu0 %v8663_v8  ;;  %v8710_v58 = vld [vmem:[%s9839_s23 + $0x4cc] ss:$16 sps:$4 sm:$0xff]  }
 0x2e8   : > { %8233 = vmatprep.subr.bf16.mxu0 %v9548_v0 }
 0x2ea   : > { %1785 = vmatpush1.bf16.msra.mxu1 %v8648_v57  ;;  %v8707_v57 = vld [vmem:[%s9839_s23 + $0x4c4] ss:$16 sps:$4 sm:$0xff]  }
 0x2eb   : > { %1786 = vmatprep.subr.bf16.mxu1 %v8656_v60  ;;  %v8708_v60 = vld [vmem:[%s9839_s23 + $0x4c8] ss:$16 sps:$4 sm:$0xff]  }
 0x2ee   : > { %1787 = vmatpush1.bf16.msra.mxu1 %v8654_v62  ;;  %v8711_v62 = vld [vmem:[%s9839_s23 + $0x4e0] ss:$16 sps:$4 sm:$0xff]  }
 0x2ef   : > { %1788 = vmatprep.subr.bf16.mxu1 %v8662_v2  ;;  %v8714_v2 = vld [vmem:[%s9839_s23 + $0x4e8] ss:$16 sps:$4 sm:$0xff]  }
 0x2f2   : > { %1789 = vmatpush1.bf16.msra.mxu1 %v8660_v4 }
 0x2f3   : > { %1790 = vmatprep.subr.bf16.mxu1 %v8668_v9 }
 0x2f6   : > { %1791 = vmatpush1.bf16.msra.mxu1 %v8666_v11 }
 0x2f7   : > { %2091 = vmatprep.subr.bf16.mxu1 %v8671_v12 }
 0x39c   : > { %v1413_v14 = vpop.f32.mrb[12].mxu1  ;;  %v1454_v15 = vpop.f32.mrb[12].mxu0 }
 0x39d   : > { %v10060_v16 = vadd.f32 %v1413_v14, %v10005_v22  ;;  %v10063_v17 = vadd.f32 %v1454_v15, %v10007_v23  ;;  %v1415_v18 = vpop.f32.mrb[13].mxu1  ;;  %v1456_v19 = vpop.f32.mrb[13].mxu0 }
 0x39e   : > { %v10066_v20 = vadd.f32 %v1415_v18, %v10009_v26  ;;  %v10069_v21 = vadd.f32 %v1456_v19, %v10011_v27  ;;  %v1417_v24 = vpop.f32.mrb[14].mxu1  ;;  %v1458_v25 = vpop.f32.mrb[14].mxu0  ;;  %v8675_v26 = vld [vmem:[%s9839_s23 + $0x420] ss:$16 sps:$4 sm:$0xff]   ;;  %v8683_v27 = vld [vmem:[%s9839_s23 + $0x444] ss:$16 sps:$4 sm:$0xff]  }
 0x39f   : > { %v1418_v28 = vpop.f32.mrb[15].mxu1  ;;  %v1459_v29 = vpop.f32.mrb[15].mxu0 }
 0x3ac   : > { %v1536_v22 = vpop.f32.mrb[2].mxu1 }
 0x3ad   : > { %v1537_v30 = vadd.f32 %v9922_v51, %v1536_v22  ;;  %v7956_v31 = vpop.f32.mrb[3].mxu1 }
 0x3ae   : > { %v8725_v31 = vld [vmem:[%s9839_s23 + $0x524] ss:$16 sps:$4 sm:$0xff]  }
 0x3af   : > { %v1540_v23 = vmax.f32 %v1537_v30, 0.0  ;;  %v8717_v30 = vld [vmem:[%s9839_s23 + $0x500] ss:$16 sps:$4 sm:$0xff]  }
 0x3b1   : > { %v1541_v32 = vpack.c.bf16 %v1540_v23, %v1540_v23  ;;  %v8729_v23 = vld [vmem:[%s9839_s23 + $0x540] ss:$16 sps:$4 sm:$0xff]  }
 0x3b3   : > { %1768 = vmatmul.mubr.bf16.vlgmr.msra.gmra.mrb[16].mxu0 %v1541_v32  ;;  %1809 = vmatmul.mubr.bf16.vlgmr.msra.gmra.mrb[16].mxu1 %v1541_v32  ;;  %v8722_v32 = vld [vmem:[%s9839_s23 + $0x50c] ss:$16 sps:$4 sm:$0xff]  }
 0x3b4   : > { %8235 = vmatpush3.bf16.msra.mxu0 %v9862_v5  ;;  %7973 = vmatprep.mubr.msk.f32.mxu0 %vm9549_vm0, %v9550_v1 }
 0x3b5   : > { %8236 = vmatprep.subr.bf16.mxu0 %v9548_v0  ;;  %2092 = vmatpush1.bf16.msra.mxu1 %v8669_v33  ;;  %v2178_v33 = vld [vmem:[#allocation2 + $0xa] sm:$0x3] }
 0x3b6   : > { %2093 = vmatprep.subr.bf16.mxu1 %v8677_v34  ;;  %2123 = vmatprep.mubr.bf16.mxu1 %v9551_v50  ;;  %v8720_v34 = vld [vmem:[%s9839_s23 + $0x508] ss:$16 sps:$4 sm:$0xff]  }
 0x3b8   : > { %8238 = vmatpush3.bf16.msra.mxu0 %v9865_v7 }
 0x3b9   : > { %8239 = vmatprep.subr.bf16.mxu0 %v9548_v0  ;;  %2094 = vmatpush1.bf16.msra.mxu1 %v8675_v26  ;;  %v8728_v26 = vld [vmem:[%s9839_s23 + $0x52c] ss:$16 sps:$4 sm:$0xff]  }
 0x3ba   : > { %2095 = vmatprep.subr.bf16.mxu1 %v8683_v27  ;;  %v8726_v27 = vld [vmem:[%s9839_s23 + $0x528] ss:$16 sps:$4 sm:$0xff]  }
 0x3bc   : > { %8241 = vmatpush3.bf16.msra.mxu0 %v9871_v10 }
 0x3bd   : > { %8242 = vmatprep.subr.bf16.mxu0 %v9548_v0  ;;  %2096 = vmatpush1.bf16.msra.mxu1 %v8681_v35  ;;  %v8734_v35 = vld [vmem:[%s9839_s23 + $0x54c] ss:$16 sps:$4 sm:$0xff]  }
 0x3be   : > { %2097 = vmatprep.subr.bf16.mxu1 %v8689_v43  ;;  %v8744_v43 = vld [vmem:[%s9839_s23 + $0x588] ss:$16 sps:$4 sm:$0xff]  }
 0x3c0   : > { %8244 = vmatpush3.bf16.msra.mxu0 %v9877_v13 }
 0x3c1   : > { %2132 = vmatprep.subr.bf16.mxu0 %v8674_v36  ;;  %2098 = vmatpush1.bf16.msra.mxu1 %v8687_v44  ;;  %v8732_v36 = vld [vmem:[%s9839_s23 + $0x548] ss:$16 sps:$4 sm:$0xff]   ;;  %v8746_v44 = vld [vmem:[%s9839_s23 + $0x58c] ss:$16 sps:$4 sm:$0xff]  }
 0x3c2   : > { %2099 = vmatprep.subr.bf16.mxu1 %v8695_v48  ;;  %v8750_v48 = vld [vmem:[%s9839_s23 + $0x5a8] ss:$16 sps:$4 sm:$0xff]  }
 0x3c3   : > { %7974 = vmatmul.mubr.msk.f32.vlgmr.msra.gmra.mrb[20].mxu0 %vm407_vm1, %v1822_v37  ;;  %v8737_v37 = vld [vmem:[%s9839_s23 + $0x564] ss:$16 sps:$4 sm:$0xff]  }
 0x3c4   : > { %2133 = vmatpush1.bf16.msra.mxu0 %v8672_v38  ;;  %2164 = vmatprep.mubr.bf16.mxu0 %v9551_v50  ;;  %v8735_v38 = vld [vmem:[%s9839_s23 + $0x560] ss:$16 sps:$4 sm:$0xff]  }
 0x3c5   : > { %2134 = vmatprep.subr.bf16.mxu0 %v8680_v39  ;;  %2100 = vmatpush1.bf16.msra.mxu1 %v8693_v47  ;;  %v8740_v39 = vld [vmem:[%s9839_s23 + $0x56c] ss:$16 sps:$4 sm:$0xff]   ;;  %v8747_v47 = vld [vmem:[%s9839_s23 + $0x5a0] ss:$16 sps:$4 sm:$0xff]  }
 0x3c6   : > { %2101 = vmatprep.subr.bf16.mxu1 %v8701_v53  ;;  %v8753_v53 = vld [vmem:[%s9839_s23 + $0x5c0] ss:$16 sps:$4 sm:$0xff]  }
 0x3c8   : > { %2135 = vmatpush1.bf16.msra.mxu0 %v8678_v40  ;;  %v8738_v40 = vld [vmem:[%s9839_s23 + $0x568] ss:$16 sps:$4 sm:$0xff]  }
 0x3c9   : > { %2136 = vmatprep.subr.bf16.mxu0 %v8686_v41  ;;  %2102 = vmatpush1.bf16.msra.mxu1 %v8699_v55  ;;  %v8741_v41 = vld [vmem:[%s9839_s23 + $0x580] ss:$16 sps:$4 sm:$0xff]   ;;  %v8761_v55 = vld [vmem:[%s9839_s23 + $0x5e4] ss:$16 sps:$4 sm:$0xff]  }
 0x3ca   : > { %2103 = vmatprep.subr.bf16.mxu1 %v8707_v57  ;;  %v8764_v57 = vld [vmem:[%s9839_s23 + $0x5ec] ss:$16 sps:$4 sm:$0xff]  }
 0x3cc   : > { %2137 = vmatpush1.bf16.msra.mxu0 %v8684_v42  ;;  %v8743_v42 = vld [vmem:[%s9839_s23 + $0x584] ss:$16 sps:$4 sm:$0xff]  }
 0x3cd   : > { %2138 = vmatprep.subr.bf16.mxu0 %v8692_v45  ;;  %2104 = vmatpush1.bf16.msra.mxu1 %v8705_v59  ;;  %v8749_v45 = vld [vmem:[%s9839_s23 + $0x5a4] ss:$16 sps:$4 sm:$0xff]  }
 0x3ce   : > { %2105 = vmatprep.subr.bf16.mxu1 %v8713_v61  ;;  %v8767_v59 = vld [vmem:[%s9839_s23 + $0x604] ss:$16 sps:$4 sm:$0xff]  }
 0x3d0   : > { %2139 = vmatpush1.bf16.msra.mxu0 %v8690_v46  ;;  %v8752_v46 = vld [vmem:[%s9839_s23 + $0x5ac] ss:$16 sps:$4 sm:$0xff]  }
 0x3d1   : > { %2140 = vmatprep.subr.bf16.mxu0 %v8698_v52  ;;  %2106 = vmatpush1.bf16.msra.mxu1 %v8711_v62  ;;  %v8758_v52 = vld [vmem:[%s9839_s23 + $0x5cc] ss:$16 sps:$4 sm:$0xff]  }
 0x3d2   : > { %8245 = vmatprep.subr.bf16.mxu1 %v9548_v0 }
 0x3d4   : > { %2141 = vmatpush1.bf16.msra.mxu0 %v8696_v49  ;;  %v8755_v49 = vld [vmem:[%s9839_s23 + $0x5c4] ss:$16 sps:$4 sm:$0xff]  }
 0x3d5   : > { %2142 = vmatprep.subr.bf16.mxu0 %v8704_v54  ;;  %v8756_v54 = vld [vmem:[%s9839_s23 + $0x5c8] ss:$16 sps:$4 sm:$0xff]  }
 0x3d8   : > { %2143 = vmatpush1.bf16.msra.mxu0 %v8702_v56  ;;  %v8759_v56 = vld [vmem:[%s9839_s23 + $0x5e0] ss:$16 sps:$4 sm:$0xff]  }
 0x3d9   : > { %2144 = vmatprep.subr.bf16.mxu0 %v8710_v58  ;;  %v8762_v58 = vld [vmem:[%s9839_s23 + $0x5e8] ss:$16 sps:$4 sm:$0xff]  }
 0x3dc   : > { %2145 = vmatpush1.bf16.msra.mxu0 %v8708_v60 }
 0x3dd   : > { %2146 = vmatprep.subr.bf16.mxu0 %v8716_v63 }
 0x3e0   : > { %2147 = vmatpush1.bf16.msra.mxu0 %v8714_v2 }
 0x3e1   : > { %2447 = vmatprep.subr.bf16.mxu0 %v8719_v3 }
 0x486   : > { %v1769_v4 = vpop.f32.mrb[16].mxu0  ;;  %v1810_v6 = vpop.f32.mrb[16].mxu1 }
 0x487   : > { %v10118_v8 = vadd.f32 %v1769_v4, %v10060_v16  ;;  %v10121_v9 = vadd.f32 %v1810_v6, %v10063_v17  ;;  %v1771_v11 = vpop.f32.mrb[17].mxu0  ;;  %v1812_v12 = vpop.f32.mrb[17].mxu1 }
 0x488   : > { %v10124_v14 = vadd.f32 %v1771_v11, %v10066_v20  ;;  %v10127_v15 = vadd.f32 %v1812_v12, %v10069_v21  ;;  %v1773_v18 = vpop.f32.mrb[18].mxu0  ;;  %v1814_v19 = vpop.f32.mrb[18].mxu1  ;;  %v8723_v20 = vld [vmem:[%s9839_s23 + $0x520] ss:$16 sps:$4 sm:$0xff]   ;;  %v8731_v21 = vld [vmem:[%s9839_s23 + $0x544] ss:$16 sps:$4 sm:$0xff]  }
 0x489   : > { %v1774_v24 = vpop.f32.mrb[19].mxu0  ;;  %v1815_v25 = vpop.f32.mrb[19].mxu1 }
 0x496   : > { %v1892_v16 = vpop.f32.mrb[20].mxu0 }
 0x497   : > { %v1893_v28 = vadd.f32 %v9922_v51, %v1892_v16  ;;  %v7975_v29 = vpop.f32.mrb[21].mxu0 }
 0x498   : > { %v8773_v29 = vld [vmem:[%s9839_s23 + $0x624] ss:$16 sps:$4 sm:$0xff]  }
 0x499   : > { %v1896_v17 = vmax.f32 %v1893_v28, 0.0  ;;  %v8765_v28 = vld [vmem:[%s9839_s23 + $0x600] ss:$16 sps:$4 sm:$0xff]  }
 0x49b   : > { %v1897_v22 = vpack.c.bf16 %v1896_v17, %v1896_v17  ;;  %v8770_v17 = vld [vmem:[%s9839_s23 + $0x60c] ss:$16 sps:$4 sm:$0xff]  }
 0x49d   : > { %2124 = vmatmul.mubr.bf16.vlgmr.msra.gmra.mrb[20].mxu1 %v1897_v22  ;;  %2165 = vmatmul.mubr.bf16.vlgmr.msra.gmra.mrb[24].mxu0 %v1897_v22  ;;  %v2534_v22 = vld [vmem:[#allocation2 + $0xc] sm:$0x3] }
 0x49e   : > { %8247 = vmatpush3.bf16.msra.mxu1 %v9862_v5  ;;  %7992 = vmatprep.mubr.msk.f32.mxu1 %vm9549_vm0, %v9550_v1 }
 0x49f   : > { %8248 = vmatprep.subr.bf16.mxu1 %v9548_v0  ;;  %2448 = vmatpush1.bf16.msra.mxu0 %v8717_v30  ;;  %v8768_v30 = vld [vmem:[%s9839_s23 + $0x608] ss:$16 sps:$4 sm:$0xff]  }
 0x4a0   : > { %2449 = vmatprep.subr.bf16.mxu0 %v8725_v31  ;;  %2479 = vmatprep.mubr.bf16.mxu0 %v9551_v50  ;;  %v8776_v31 = vld [vmem:[%s9839_s23 + $0x62c] ss:$16 sps:$4 sm:$0xff]  }
 0x4a2   : > { %8250 = vmatpush3.bf16.msra.mxu1 %v9865_v7 }
 0x4a3   : > { %8251 = vmatprep.subr.bf16.mxu1 %v9548_v0  ;;  %2450 = vmatpush1.bf16.msra.mxu0 %v8723_v20  ;;  %v8774_v20 = vld [vmem:[%s9839_s23 + $0x628] ss:$16 sps:$4 sm:$0xff]  }
 0x4a4   : > { %2451 = vmatprep.subr.bf16.mxu0 %v8731_v21  ;;  %v8782_v21 = vld [vmem:[%s9839_s23 + $0x64c] ss:$16 sps:$4 sm:$0xff]  }
 0x4a6   : > { %8253 = vmatpush3.bf16.msra.mxu1 %v9871_v10 }
 0x4a7   : > { %8254 = vmatprep.subr.bf16.mxu1 %v9548_v0  ;;  %2452 = vmatpush1.bf16.msra.mxu0 %v8729_v23  ;;  %v8780_v23 = vld [vmem:[%s9839_s23 + $0x648] ss:$16 sps:$4 sm:$0xff]  }
 0x4a8   : > { %2453 = vmatprep.subr.bf16.mxu0 %v8737_v37  ;;  %v8794_v37 = vld [vmem:[%s9839_s23 + $0x68c] ss:$16 sps:$4 sm:$0xff]  }
 0x4aa   : > { %8256 = vmatpush3.bf16.msra.mxu1 %v9877_v13 }
 0x4ab   : > { %2488 = vmatprep.subr.bf16.mxu1 %v8722_v32  ;;  %2454 = vmatpush1.bf16.msra.mxu0 %v8735_v38  ;;  %v8785_v32 = vld [vmem:[%s9839_s23 + $0x664] ss:$16 sps:$4 sm:$0xff]  }
 0x4ac   : > { %2455 = vmatprep.subr.bf16.mxu0 %v8743_v42  ;;  %v8797_v38 = vld [vmem:[%s9839_s23 + $0x6a4] ss:$16 sps:$4 sm:$0xff]  }
 0x4ad   : > { %7993 = vmatmul.mubr.msk.f32.vlgmr.msra.gmra.mrb[24].mxu1 %vm407_vm1, %v2178_v33  ;;  %v8783_v33 = vld [vmem:[%s9839_s23 + $0x660] ss:$16 sps:$4 sm:$0xff]   ;;  %v8803_v42 = vld [vmem:[%s9839_s23 + $0x6c4] ss:$16 sps:$4 sm:$0xff]  }
 0x4ae   : > { %2489 = vmatpush1.bf16.msra.mxu1 %v8720_v34  ;;  %2520 = vmatprep.mubr.bf16.mxu1 %v9551_v50  ;;  %v8788_v34 = vld [vmem:[%s9839_s23 + $0x66c] ss:$16 sps:$4 sm:$0xff]  }
 0x4af   : > { %2490 = vmatprep.subr.bf16.mxu1 %v8728_v26  ;;  %2456 = vmatpush1.bf16.msra.mxu0 %v8741_v41  ;;  %v8786_v26 = vld [vmem:[%s9839_s23 + $0x668] ss:$16 sps:$4 sm:$0xff]  }
 0x4b0   : > { %2457 = vmatprep.subr.bf16.mxu0 %v8749_v45  ;;  %v8798_v41 = vld [vmem:[%s9839_s23 + $0x6a8] ss:$16 sps:$4 sm:$0xff]  }
 0x4b1   : > { %v8804_v45 = vld [vmem:[%s9839_s23 + $0x6c8] ss:$16 sps:$4 sm:$0xff]  }
 0x4b2   : > { %2491 = vmatpush1.bf16.msra.mxu1 %v8726_v27  ;;  %v8789_v27 = vld [vmem:[%s9839_s23 + $0x680] ss:$16 sps:$4 sm:$0xff]  }
 0x4b3   : > { %2492 = vmatprep.subr.bf16.mxu1 %v8734_v35  ;;  %2458 = vmatpush1.bf16.msra.mxu0 %v8747_v47  ;;  %v8791_v35 = vld [vmem:[%s9839_s23 + $0x684] ss:$16 sps:$4 sm:$0xff]   ;;  %v8807_v47 = vld [vmem:[%s9839_s23 + $0x6e0] ss:$16 sps:$4 sm:$0xff]  }
 0x4b4   : > { %2459 = vmatprep.subr.bf16.mxu0 %v8755_v49  ;;  %v8810_v49 = vld [vmem:[%s9839_s23 + $0x6e8] ss:$16 sps:$4 sm:$0xff]  }
 0x4b6   : > { %2493 = vmatpush1.bf16.msra.mxu1 %v8732_v36  ;;  %v8792_v36 = vld [vmem:[%s9839_s23 + $0x688] ss:$16 sps:$4 sm:$0xff]  }
 0x4b7   : > { %2494 = vmatprep.subr.bf16.mxu1 %v8740_v39  ;;  %2460 = vmatpush1.bf16.msra.mxu0 %v8753_v53  ;;  %v8800_v39 = vld [vmem:[%s9839_s23 + $0x6ac] ss:$16 sps:$4 sm:$0xff]  }
 0x4b8   : > { %2461 = vmatprep.subr.bf16.mxu0 %v8761_v55 }
 0x4ba   : > { %2495 = vmatpush1.bf16.msra.mxu1 %v8738_v40  ;;  %v8795_v40 = vld [vmem:[%s9839_s23 + $0x6a0] ss:$16 sps:$4 sm:$0xff]  }
 0x4bb   : > { %2496 = vmatprep.subr.bf16.mxu1 %v8746_v44  ;;  %2462 = vmatpush1.bf16.msra.mxu0 %v8759_v56  ;;  %v8801_v44 = vld [vmem:[%s9839_s23 + $0x6c0] ss:$16 sps:$4 sm:$0xff]  }
 0x4bc   : > { %8257 = vmatprep.subr.bf16.mxu0 %v9548_v0 }
 0x4be   : > { %2497 = vmatpush1.bf16.msra.mxu1 %v8744_v43  ;;  %v8806_v43 = vld [vmem:[%s9839_s23 + $0x6cc] ss:$16 sps:$4 sm:$0xff]  }
 0x4bf   : > { %2498 = vmatprep.subr.bf16.mxu1 %v8752_v46  ;;  %v8809_v46 = vld [vmem:[%s9839_s23 + $0x6e4] ss:$16 sps:$4 sm:$0xff]  }
 0x4c2   : > { %2499 = vmatpush1.bf16.msra.mxu1 %v8750_v48  ;;  %v8812_v48 = vld [vmem:[%s9839_s23 + $0x6ec] ss:$16 sps:$4 sm:$0xff]  }
 0x4c3   : > { %2500 = vmatprep.subr.bf16.mxu1 %v8758_v52  ;;  %v8815_v52 = vld [vmem:[%s9839_s23 + $0x704] ss:$16 sps:$4 sm:$0xff]  }
 0x4c6   : > { %2501 = vmatpush1.bf16.msra.mxu1 %v8756_v54 }
 0x4c7   : > { %2502 = vmatprep.subr.bf16.mxu1 %v8764_v57 }
 0x4ca   : > { %2503 = vmatpush1.bf16.msra.mxu1 %v8762_v58 }
 0x4cb   : > { %2803 = vmatprep.subr.bf16.mxu1 %v8767_v59 }
 0x570   : > { %v2125_v60 = vpop.f32.mrb[20].mxu1  ;;  %v2166_v61 = vpop.f32.mrb[24].mxu0 }
 0x571   : > { %v10176_v62 = vadd.f32 %v2125_v60, %v10118_v8  ;;  %v10179_v63 = vadd.f32 %v2166_v61, %v10121_v9  ;;  %v2127_v2 = vpop.f32.mrb[21].mxu1  ;;  %v2168_v3 = vpop.f32.mrb[25].mxu0 }
 0x572   : > { %v10182_v4 = vadd.f32 %v2127_v2, %v10124_v14  ;;  %v10185_v6 = vadd.f32 %v2168_v3, %v10127_v15  ;;  %v2129_v11 = vpop.f32.mrb[22].mxu1  ;;  %v2170_v12 = vpop.f32.mrb[26].mxu0  ;;  %v8771_v14 = vld [vmem:[%s9839_s23 + $0x620] ss:$16 sps:$4 sm:$0xff]  }
 0x573   : > { %v2130_v18 = vpop.f32.mrb[23].mxu1  ;;  %v2171_v19 = vpop.f32.mrb[27].mxu0  ;;  %v8777_v15 = vld [vmem:[%s9839_s23 + $0x640] ss:$16 sps:$4 sm:$0xff]   ;;  %v10245_v12 = vld [vmem:[#allocation7] ss:$0 sm:$0xff] }
 0x580   : > { %v2248_v8 = vpop.f32.mrb[24].mxu1 }
 0x581   : > { %v2249_v24 = vadd.f32 %v9922_v51, %v2248_v8  ;;  %v7994_v25 = vpop.f32.mrb[25].mxu1  ;;  %v8779_v51 = vld [vmem:[%s9839_s23 + $0x644] ss:$16 sps:$4 sm:$0xff]  }
 0x582   : > { %v8827_v25 = vld [vmem:[%s9839_s23 + $0x744] ss:$16 sps:$4 sm:$0xff]  }
 0x583   : > { %v2252_v9 = vmax.f32 %v2249_v24, 0.0  ;;  %v8821_v24 = vld [vmem:[%s9839_s23 + $0x724] ss:$16 sps:$4 sm:$0xff]  }
 0x585   : > { %v2253_v16 = vpack.c.bf16 %v2252_v9, %v2252_v9  ;;  %v8825_v9 = vld [vmem:[%s9839_s23 + $0x740] ss:$16 sps:$4 sm:$0xff]  }
 0x587   : > { %2480 = vmatmul.mubr.bf16.vlgmr.msra.gmra.mrb[28].mxu0 %v2253_v16  ;;  %2521 = vmatmul.mubr.bf16.vlgmr.msra.gmra.mrb[28].mxu1 %v2253_v16  ;;  %v8818_v16 = vld [vmem:[%s9839_s23 + $0x70c] ss:$16 sps:$4 sm:$0xff]  }
 0x588   : > { %8259 = vmatpush3.bf16.msra.mxu0 %v9862_v5  ;;  %8011 = vmatprep.mubr.msk.f32.mxu0 %vm9549_vm0, %v9550_v1 }
 0x589   : > { %8260 = vmatprep.subr.bf16.mxu0 %v9548_v0  ;;  %2804 = vmatpush1.bf16.msra.mxu1 %v8765_v28  ;;  %v2890_v28 = vld [vmem:[#allocation2 + $0xe] sm:$0x3] }
 0x58a   : > { %2805 = vmatprep.subr.bf16.mxu1 %v8773_v29  ;;  %2835 = vmatprep.mubr.bf16.mxu1 %v9551_v50  ;;  %v8816_v29 = vld [vmem:[%s9839_s23 + $0x708] ss:$16 sps:$4 sm:$0xff]  }
 0x58c   : > { %8262 = vmatpush3.bf16.msra.mxu0 %v9865_v7 }
 0x58d   : > { %8263 = vmatprep.subr.bf16.mxu0 %v9548_v0  ;;  %2806 = vmatpush1.bf16.msra.mxu1 %v8771_v14  ;;  %v8824_v14 = vld [vmem:[%s9839_s23 + $0x72c] ss:$16 sps:$4 sm:$0xff]  }
 0x58e   : > { %2807 = vmatprep.subr.bf16.mxu1 %v8779_v51  ;;  %v8822_v51 = vld [vmem:[%s9839_s23 + $0x728] ss:$16 sps:$4 sm:$0xff]  }
 0x590   : > { %8265 = vmatpush3.bf16.msra.mxu0 %v9871_v10 }
 0x591   : > { %8266 = vmatprep.subr.bf16.mxu0 %v9548_v0  ;;  %2808 = vmatpush1.bf16.msra.mxu1 %v8777_v15  ;;  %v8830_v15 = vld [vmem:[%s9839_s23 + $0x74c] ss:$16 sps:$4 sm:$0xff]  }
 0x592   : > { %2809 = vmatprep.subr.bf16.mxu1 %v8785_v32  ;;  %v8840_v32 = vld [vmem:[%s9839_s23 + $0x788] ss:$16 sps:$4 sm:$0xff]  }
 0x594   : > { %8268 = vmatpush3.bf16.msra.mxu0 %v9877_v13 }
 0x595   : > { %2844 = vmatprep.subr.bf16.mxu0 %v8770_v17  ;;  %2810 = vmatpush1.bf16.msra.mxu1 %v8783_v33  ;;  %v8828_v17 = vld [vmem:[%s9839_s23 + $0x748] ss:$16 sps:$4 sm:$0xff]   ;;  %v8842_v33 = vld [vmem:[%s9839_s23 + $0x78c] ss:$16 sps:$4 sm:$0xff]  }
 0x596   : > { %2811 = vmatprep.subr.bf16.mxu1 %v8791_v35  ;;  %v8846_v35 = vld [vmem:[%s9839_s23 + $0x7a8] ss:$16 sps:$4 sm:$0xff]  }
 0x597   : > { %8012 = vmatmul.mubr.msk.f32.vlgmr.msra.gmra.mrb[22].mxu0 %vm407_vm1, %v2534_v22  ;;  %v8833_v22 = vld [vmem:[%s9839_s23 + $0x764] ss:$16 sps:$4 sm:$0xff]  }
 0x598   : > { %2845 = vmatpush1.bf16.msra.mxu0 %v8768_v30  ;;  %2876 = vmatprep.mubr.bf16.mxu0 %v9551_v50  ;;  %v8831_v30 = vld [vmem:[%s9839_s23 + $0x760] ss:$16 sps:$4 sm:$0xff]  }
 0x599   : > { %2846 = vmatprep.subr.bf16.mxu0 %v8776_v31  ;;  %2812 = vmatpush1.bf16.msra.mxu1 %v8789_v27  ;;  %v8836_v31 = vld [vmem:[%s9839_s23 + $0x76c] ss:$16 sps:$4 sm:$0xff]   ;;  %v8843_v27 = vld [vmem:[%s9839_s23 + $0x7a0] ss:$16 sps:$4 sm:$0xff]  }
 0x59a   : > { %2813 = vmatprep.subr.bf16.mxu1 %v8797_v38  ;;  %v8849_v38 = vld [vmem:[%s9839_s23 + $0x7c0] ss:$16 sps:$4 sm:$0xff]  }
 0x59c   : > { %2847 = vmatpush1.bf16.msra.mxu0 %v8774_v20  ;;  %v8834_v20 = vld [vmem:[%s9839_s23 + $0x768] ss:$16 sps:$4 sm:$0xff]  }
 0x59d   : > { %2848 = vmatprep.subr.bf16.mxu0 %v8782_v21  ;;  %2814 = vmatpush1.bf16.msra.mxu1 %v8795_v40  ;;  %v8837_v21 = vld [vmem:[%s9839_s23 + $0x780] ss:$16 sps:$4 sm:$0xff]   ;;  %v8857_v40 = vld [vmem:[%s9839_s23 + $0x7e4] ss:$16 sps:$4 sm:$0xff]  }
 0x59e   : > { %2815 = vmatprep.subr.bf16.mxu1 %v8803_v42  ;;  %v8860_v42 = vld [vmem:[%s9839_s23 + $0x7ec] ss:$16 sps:$4 sm:$0xff]  }
 0x5a0   : > { %2849 = vmatpush1.bf16.msra.mxu0 %v8780_v23  ;;  %v8839_v23 = vld [vmem:[%s9839_s23 + $0x784] ss:$16 sps:$4 sm:$0xff]  }
 0x5a1   : > { %2850 = vmatprep.subr.bf16.mxu0 %v8788_v34  ;;  %2816 = vmatpush1.bf16.msra.mxu1 %v8801_v44  ;;  %v8845_v34 = vld [vmem:[%s9839_s23 + $0x7a4] ss:$16 sps:$4 sm:$0xff]  }
 0x5a2   : > { %2817 = vmatprep.subr.bf16.mxu1 %v8809_v46  ;;  %v8863_v44 = vld [vmem:[%s9839_s23 + $0x804] ss:$16 sps:$4 sm:$0xff]  }
 0x5a4   : > { %2851 = vmatpush1.bf16.msra.mxu0 %v8786_v26  ;;  %v8848_v26 = vld [vmem:[%s9839_s23 + $0x7ac] ss:$16 sps:$4 sm:$0xff]  }
 0x5a5   : > { %2852 = vmatprep.subr.bf16.mxu0 %v8794_v37  ;;  %2818 = vmatpush1.bf16.msra.mxu1 %v8807_v47  ;;  %v8854_v37 = vld [vmem:[%s9839_s23 + $0x7cc] ss:$16 sps:$4 sm:$0xff]  }
 0x5a6   : > { %8269 = vmatprep.subr.bf16.mxu1 %v9548_v0 }
 0x5a8   : > { %2853 = vmatpush1.bf16.msra.mxu0 %v8792_v36  ;;  %v8851_v36 = vld [vmem:[%s9839_s23 + $0x7c4] ss:$16 sps:$4 sm:$0xff]  }
 0x5a9   : > { %2854 = vmatprep.subr.bf16.mxu0 %v8800_v39  ;;  %v8852_v39 = vld [vmem:[%s9839_s23 + $0x7c8] ss:$16 sps:$4 sm:$0xff]  }
 0x5ac   : > { %2855 = vmatpush1.bf16.msra.mxu0 %v8798_v41  ;;  %v8855_v41 = vld [vmem:[%s9839_s23 + $0x7e0] ss:$16 sps:$4 sm:$0xff]  }
 0x5ad   : > { %2856 = vmatprep.subr.bf16.mxu0 %v8806_v43  ;;  %v8858_v43 = vld [vmem:[%s9839_s23 + $0x7e8] ss:$16 sps:$4 sm:$0xff]  }
 0x5b0   : > { %2857 = vmatpush1.bf16.msra.mxu0 %v8804_v45 }
 0x5b1   : > { %2858 = vmatprep.subr.bf16.mxu0 %v8812_v48 }
 0x5b4   : > { %2859 = vmatpush1.bf16.msra.mxu0 %v8810_v49 }
 0x5b5   : > { %3159 = vmatprep.subr.bf16.mxu0 %v8815_v52 }
 0x65a   : > { %v2481_v53 = vpop.f32.mrb[28].mxu0  ;;  %v2522_v54 = vpop.f32.mrb[28].mxu1 }
 0x65b   : > { %v10234_v55 = vadd.f32 %v2481_v53, %v10176_v62  ;;  %v10237_v56 = vadd.f32 %v2522_v54, %v10179_v63  ;;  %v2483_v57 = vpop.f32.mrb[29].mxu0  ;;  %v2524_v58 = vpop.f32.mrb[29].mxu1 }
 0x65c   : > { %v10240_v59 = vadd.f32 %v2483_v57, %v10182_v4  ;;  %v10243_v60 = vadd.f32 %v2524_v58, %v10185_v6  ;;  %v2485_v61 = vpop.f32.mrb[30].mxu0  ;;  %v2526_v2 = vpop.f32.mrb[30].mxu1  ;;  %v8813_v4 = vld [vmem:[%s9839_s23 + $0x700] ss:$16 sps:$4 sm:$0xff]  }
 0x65d   : > { %v2486_v3 = vpop.f32.mrb[31].mxu0  ;;  %v2527_v11 = vpop.f32.mrb[31].mxu1  ;;  %v8819_v6 = vld [vmem:[%s9839_s23 + $0x720] ss:$16 sps:$4 sm:$0xff]  }
 0x66a   : > { %v2604_v62 = vpop.f32.mrb[22].mxu0 }
 0x66b   : > { %v2605_v63 = vadd.f32 %v10245_v12, %v2604_v62  ;;  %v8013_v18 = vpop.f32.mrb[23].mxu0 }
 0x66c   : > { %v8869_v18 = vld [vmem:[%s9839_s23 + $0x824] ss:$16 sps:$4 sm:$0xff]  }
 0x66d   : > { %v2608_v19 = vmax.f32 %v2605_v63, 0.0  ;;  %v8861_v63 = vld [vmem:[%s9839_s23 + $0x800] ss:$16 sps:$4 sm:$0xff]  }
 0x66f   : > { %v2609_v8 = vpack.c.bf16 %v2608_v19, %v2608_v19  ;;  %v8873_v19 = vld [vmem:[%s9839_s23 + $0x840] ss:$16 sps:$4 sm:$0xff]  }
 0x671   : > { %2836 = vmatmul.mubr.bf16.vlgmr.msra.gmra.mrb[32].mxu1 %v2609_v8  ;;  %2877 = vmatmul.mubr.bf16.vlgmr.msra.gmra.mrb[32].mxu0 %v2609_v8  ;;  %v8866_v8 = vld [vmem:[%s9839_s23 + $0x80c] ss:$16 sps:$4 sm:$0xff]  }
 0x672   : > { %8271 = vmatpush3.bf16.msra.mxu1 %v9862_v5  ;;  %8030 = vmatprep.mubr.msk.f32.mxu1 %vm9549_vm0, %v9550_v1 }
 0x673   : > { %8272 = vmatprep.subr.bf16.mxu1 %v9548_v0  ;;  %3160 = vmatpush1.bf16.msra.mxu0 %v8813_v4  ;;  %v3246_v4 = vld [vmem:[#allocation2 + $0x10] sm:$0x3] }
 0x674   : > { %3161 = vmatprep.subr.bf16.mxu0 %v8821_v24  ;;  %3191 = vmatprep.mubr.bf16.mxu0 %v9551_v50  ;;  %v8864_v24 = vld [vmem:[%s9839_s23 + $0x808] ss:$16 sps:$4 sm:$0xff]  }
 0x676   : > { %8274 = vmatpush3.bf16.msra.mxu1 %v9865_v7 }
 0x677   : > { %8275 = vmatprep.subr.bf16.mxu1 %v9548_v0  ;;  %3162 = vmatpush1.bf16.msra.mxu0 %v8819_v6  ;;  %v8872_v6 = vld [vmem:[%s9839_s23 + $0x82c] ss:$16 sps:$4 sm:$0xff]  }
 0x678   : > { %3163 = vmatprep.subr.bf16.mxu0 %v8827_v25  ;;  %v8870_v25 = vld [vmem:[%s9839_s23 + $0x828] ss:$16 sps:$4 sm:$0xff]  }
 0x67a   : > { %8277 = vmatpush3.bf16.msra.mxu1 %v9871_v10 }
 0x67b   : > { %8278 = vmatprep.subr.bf16.mxu1 %v9548_v0  ;;  %3164 = vmatpush1.bf16.msra.mxu0 %v8825_v9  ;;  %v8878_v9 = vld [vmem:[%s9839_s23 + $0x84c] ss:$16 sps:$4 sm:$0xff]  }
 0x67c   : > { %3165 = vmatprep.subr.bf16.mxu0 %v8833_v22  ;;  %v8888_v22 = vld [vmem:[%s9839_s23 + $0x888] ss:$16 sps:$4 sm:$0xff]  }
 0x67e   : > { %8280 = vmatpush3.bf16.msra.mxu1 %v9877_v13 }
 0x67f   : > { %3200 = vmatprep.subr.bf16.mxu1 %v8818_v16  ;;  %3166 = vmatpush1.bf16.msra.mxu0 %v8831_v30  ;;  %v8876_v16 = vld [vmem:[%s9839_s23 + $0x848] ss:$16 sps:$4 sm:$0xff]   ;;  %v8890_v30 = vld [vmem:[%s9839_s23 + $0x88c] ss:$16 sps:$4 sm:$0xff]  }
 0x680   : > { %3167 = vmatprep.subr.bf16.mxu0 %v8839_v23  ;;  %v8894_v23 = vld [vmem:[%s9839_s23 + $0x8a8] ss:$16 sps:$4 sm:$0xff]  }
 0x681   : > { %8031 = vmatmul.mubr.msk.f32.vlgmr.msra.gmra.mrb[26].mxu1 %vm407_vm1, %v2890_v28  ;;  %v8881_v28 = vld [vmem:[%s9839_s23 + $0x864] ss:$16 sps:$4 sm:$0xff]  }
 0x682   : > { %3201 = vmatpush1.bf16.msra.mxu1 %v8816_v29  ;;  %3232 = vmatprep.mubr.bf16.mxu1 %v9551_v50  ;;  %v8879_v29 = vld [vmem:[%s9839_s23 + $0x860] ss:$16 sps:$4 sm:$0xff]  }
 0x683   : > { %3202 = vmatprep.subr.bf16.mxu1 %v8824_v14  ;;  %3168 = vmatpush1.bf16.msra.mxu0 %v8837_v21  ;;  %v8884_v14 = vld [vmem:[%s9839_s23 + $0x86c] ss:$16 sps:$4 sm:$0xff]   ;;  %v8891_v21 = vld [vmem:[%s9839_s23 + $0x8a0] ss:$16 sps:$4 sm:$0xff]  }
 0x684   : > { %3169 = vmatprep.subr.bf16.mxu0 %v8845_v34  ;;  %v8897_v34 = vld [vmem:[%s9839_s23 + $0x8c0] ss:$16 sps:$4 sm:$0xff]  }
 0x686   : > { %3203 = vmatpush1.bf16.msra.mxu1 %v8822_v51  ;;  %v8882_v51 = vld [vmem:[%s9839_s23 + $0x868] ss:$16 sps:$4 sm:$0xff]  }
 0x687   : > { %3204 = vmatprep.subr.bf16.mxu1 %v8830_v15  ;;  %3170 = vmatpush1.bf16.msra.mxu0 %v8843_v27  ;;  %v8885_v15 = vld [vmem:[%s9839_s23 + $0x880] ss:$16 sps:$4 sm:$0xff]   ;;  %v8905_v27 = vld [vmem:[%s9839_s23 + $0x8e4] ss:$16 sps:$4 sm:$0xff]  }
 0x688   : > { %3171 = vmatprep.subr.bf16.mxu0 %v8851_v36  ;;  %v8908_v36 = vld [vmem:[%s9839_s23 + $0x8ec] ss:$16 sps:$4 sm:$0xff]  }
 0x68a   : > { %3205 = vmatpush1.bf16.msra.mxu1 %v8828_v17  ;;  %v8887_v17 = vld [vmem:[%s9839_s23 + $0x884] ss:$16 sps:$4 sm:$0xff]  }
 0x68b   : > { %3206 = vmatprep.subr.bf16.mxu1 %v8836_v31  ;;  %3172 = vmatpush1.bf16.msra.mxu0 %v8849_v38  ;;  %v8893_v31 = vld [vmem:[%s9839_s23 + $0x8a4] ss:$16 sps:$4 sm:$0xff]  }
 0x68c   : > { %3173 = vmatprep.subr.bf16.mxu0 %v8857_v40  ;;  %v8911_v38 = vld [vmem:[%s9839_s23 + $0x904] ss:$16 sps:$4 sm:$0xff]  }
 0x68e   : > { %3207 = vmatpush1.bf16.msra.mxu1 %v8834_v20  ;;  %v8896_v20 = vld [vmem:[%s9839_s23 + $0x8ac] ss:$16 sps:$4 sm:$0xff]  }
 0x68f   : > { %3208 = vmatprep.subr.bf16.mxu1 %v8842_v33  ;;  %3174 = vmatpush1.bf16.msra.mxu0 %v8855_v41  ;;  %v8902_v33 = vld [vmem:[%s9839_s23 + $0x8cc] ss:$16 sps:$4 sm:$0xff]  }
 0x690   : > { %8281 = vmatprep.subr.bf16.mxu0 %v9548_v0 }
 0x692   : > { %3209 = vmatpush1.bf16.msra.mxu1 %v8840_v32  ;;  %v8899_v32 = vld [vmem:[%s9839_s23 + $0x8c4] ss:$16 sps:$4 sm:$0xff]  }
 0x693   : > { %3210 = vmatprep.subr.bf16.mxu1 %v8848_v26  ;;  %v8900_v26 = vld [vmem:[%s9839_s23 + $0x8c8] ss:$16 sps:$4 sm:$0xff]  }
 0x696   : > { %3211 = vmatpush1.bf16.msra.mxu1 %v8846_v35  ;;  %v8903_v35 = vld [vmem:[%s9839_s23 + $0x8e0] ss:$16 sps:$4 sm:$0xff]  }
 0x697   : > { %3212 = vmatprep.subr.bf16.mxu1 %v8854_v37  ;;  %v8906_v37 = vld [vmem:[%s9839_s23 + $0x8e8] ss:$16 sps:$4 sm:$0xff]  }
 0x69a   : > { %3213 = vmatpush1.bf16.msra.mxu1 %v8852_v39 }
 0x69b   : > { %3214 = vmatprep.subr.bf16.mxu1 %v8860_v42 }
 0x69e   : > { %3215 = vmatpush1.bf16.msra.mxu1 %v8858_v43 }
 0x69f   : > { %3515 = vmatprep.subr.bf16.mxu1 %v8863_v44 }
 0x744   : > { %v2837_v45 = vpop.f32.mrb[32].mxu1  ;;  %v2878_v46 = vpop.f32.mrb[32].mxu0 }
 0x745   : > { %v10294_v47 = vadd.f32 %v2837_v45, %v10234_v55  ;;  %v10297_v48 = vadd.f32 %v2878_v46, %v10237_v56  ;;  %v2839_v49 = vpop.f32.mrb[33].mxu1  ;;  %v2880_v52 = vpop.f32.mrb[33].mxu0 }
 0x746   : > { %v10300_v53 = vadd.f32 %v2839_v49, %v10240_v59  ;;  %v10303_v54 = vadd.f32 %v2880_v52, %v10243_v60  ;;  %v2841_v57 = vpop.f32.mrb[34].mxu1  ;;  %v2882_v58 = vpop.f32.mrb[34].mxu0  ;;  %v8867_v59 = vld [vmem:[%s9839_s23 + $0x820] ss:$16 sps:$4 sm:$0xff]   ;;  %v8875_v60 = vld [vmem:[%s9839_s23 + $0x844] ss:$16 sps:$4 sm:$0xff]  }
 0x747   : > { %v2842_v61 = vpop.f32.mrb[35].mxu1  ;;  %v2883_v2 = vpop.f32.mrb[35].mxu0 }
 0x754   : > { %v2960_v55 = vpop.f32.mrb[26].mxu1 }
 0x755   : > { %v2961_v3 = vadd.f32 %v10245_v12, %v2960_v55  ;;  %v8032_v11 = vpop.f32.mrb[27].mxu1 }
 0x756   : > { %v8917_v11 = vld [vmem:[%s9839_s23 + $0x924] ss:$16 sps:$4 sm:$0xff]  }
 0x757   : > { %v2964_v56 = vmax.f32 %v2961_v3, 0.0  ;;  %v8909_v3 = vld [vmem:[%s9839_s23 + $0x900] ss:$16 sps:$4 sm:$0xff]  }
 0x759   : > { %v2965_v62 = vpack.c.bf16 %v2964_v56, %v2964_v56  ;;  %v8921_v56 = vld [vmem:[%s9839_s23 + $0x940] ss:$16 sps:$4 sm:$0xff]  }
 0x75b   : > { %3192 = vmatmul.mubr.bf16.vlgmr.msra.gmra.mrb[36].mxu0 %v2965_v62  ;;  %3233 = vmatmul.mubr.bf16.vlgmr.msra.gmra.mrb[36].mxu1 %v2965_v62  ;;  %v8914_v62 = vld [vmem:[%s9839_s23 + $0x90c] ss:$16 sps:$4 sm:$0xff]  }
 0x75c   : > { %8283 = vmatpush3.bf16.msra.mxu0 %v9862_v5  ;;  %8049 = vmatprep.mubr.msk.f32.mxu0 %vm9549_vm0, %v9550_v1 }
 0x75d   : > { %8284 = vmatprep.subr.bf16.mxu0 %v9548_v0  ;;  %3516 = vmatpush1.bf16.msra.mxu1 %v8861_v63  ;;  %v3602_v63 = vld [vmem:[#allocation2 + $0x12] sm:$0x3] }
 0x75e   : > { %3517 = vmatprep.subr.bf16.mxu1 %v8869_v18  ;;  %3547 = vmatprep.mubr.bf16.mxu1 %v9551_v50  ;;  %v8912_v18 = vld [vmem:[%s9839_s23 + $0x908] ss:$16 sps:$4 sm:$0xff]  }
 0x760   : > { %8286 = vmatpush3.bf16.msra.mxu0 %v9865_v7 }
 0x761   : > { %8287 = vmatprep.subr.bf16.mxu0 %v9548_v0  ;;  %3518 = vmatpush1.bf16.msra.mxu1 %v8867_v59  ;;  %v8920_v59 = vld [vmem:[%s9839_s23 + $0x92c] ss:$16 sps:$4 sm:$0xff]  }
 0x762   : > { %3519 = vmatprep.subr.bf16.mxu1 %v8875_v60  ;;  %v8918_v60 = vld [vmem:[%s9839_s23 + $0x928] ss:$16 sps:$4 sm:$0xff]  }
 0x764   : > { %8289 = vmatpush3.bf16.msra.mxu0 %v9871_v10 }
 0x765   : > { %8290 = vmatprep.subr.bf16.mxu0 %v9548_v0  ;;  %3520 = vmatpush1.bf16.msra.mxu1 %v8873_v19  ;;  %v8926_v19 = vld [vmem:[%s9839_s23 + $0x94c] ss:$16 sps:$4 sm:$0xff]  }
 0x766   : > { %3521 = vmatprep.subr.bf16.mxu1 %v8881_v28  ;;  %v8936_v28 = vld [vmem:[%s9839_s23 + $0x988] ss:$16 sps:$4 sm:$0xff]  }
 0x768   : > { %8292 = vmatpush3.bf16.msra.mxu0 %v9877_v13 }
 0x769   : > { %3556 = vmatprep.subr.bf16.mxu0 %v8866_v8  ;;  %3522 = vmatpush1.bf16.msra.mxu1 %v8879_v29  ;;  %v8924_v8 = vld [vmem:[%s9839_s23 + $0x948] ss:$16 sps:$4 sm:$0xff]   ;;  %v8938_v29 = vld [vmem:[%s9839_s23 + $0x98c] ss:$16 sps:$4 sm:$0xff]  }
 0x76a   : > { %3523 = vmatprep.subr.bf16.mxu1 %v8887_v17  ;;  %v8942_v17 = vld [vmem:[%s9839_s23 + $0x9a8] ss:$16 sps:$4 sm:$0xff]  }
 0x76b   : > { %8050 = vmatmul.mubr.msk.f32.vlgmr.msra.gmra.mrb[40].mxu0 %vm407_vm1, %v3246_v4  ;;  %v8929_v4 = vld [vmem:[%s9839_s23 + $0x964] ss:$16 sps:$4 sm:$0xff]  }
 0x76c   : > { %3557 = vmatpush1.bf16.msra.mxu0 %v8864_v24  ;;  %3588 = vmatprep.mubr.bf16.mxu0 %v9551_v50  ;;  %v8927_v24 = vld [vmem:[%s9839_s23 + $0x960] ss:$16 sps:$4 sm:$0xff]  }
 0x76d   : > { %3558 = vmatprep.subr.bf16.mxu0 %v8872_v6  ;;  %3524 = vmatpush1.bf16.msra.mxu1 %v8885_v15  ;;  %v8932_v6 = vld [vmem:[%s9839_s23 + $0x96c] ss:$16 sps:$4 sm:$0xff]   ;;  %v8939_v15 = vld [vmem:[%s9839_s23 + $0x9a0] ss:$16 sps:$4 sm:$0xff]  }
 0x76e   : > { %3525 = vmatprep.subr.bf16.mxu1 %v8893_v31  ;;  %v8945_v31 = vld [vmem:[%s9839_s23 + $0x9c0] ss:$16 sps:$4 sm:$0xff]  }
 0x770   : > { %3559 = vmatpush1.bf16.msra.mxu0 %v8870_v25  ;;  %v8930_v25 = vld [vmem:[%s9839_s23 + $0x968] ss:$16 sps:$4 sm:$0xff]  }
 0x771   : > { %3560 = vmatprep.subr.bf16.mxu0 %v8878_v9  ;;  %3526 = vmatpush1.bf16.msra.mxu1 %v8891_v21  ;;  %v8933_v9 = vld [vmem:[%s9839_s23 + $0x980] ss:$16 sps:$4 sm:$0xff]   ;;  %v8953_v21 = vld [vmem:[%s9839_s23 + $0x9e4] ss:$16 sps:$4 sm:$0xff]  }
 0x772   : > { %3527 = vmatprep.subr.bf16.mxu1 %v8899_v32  ;;  %v8956_v32 = vld [vmem:[%s9839_s23 + $0x9ec] ss:$16 sps:$4 sm:$0xff]  }
 0x774   : > { %3561 = vmatpush1.bf16.msra.mxu0 %v8876_v16  ;;  %v8935_v16 = vld [vmem:[%s9839_s23 + $0x984] ss:$16 sps:$4 sm:$0xff]  }
 0x775   : > { %3562 = vmatprep.subr.bf16.mxu0 %v8884_v14  ;;  %3528 = vmatpush1.bf16.msra.mxu1 %v8897_v34  ;;  %v8941_v14 = vld [vmem:[%s9839_s23 + $0x9a4] ss:$16 sps:$4 sm:$0xff]  }
 0x776   : > { %3529 = vmatprep.subr.bf16.mxu1 %v8905_v27  ;;  %v8959_v34 = vld [vmem:[%s9839_s23 + $0xa04] ss:$16 sps:$4 sm:$0xff]  }
 0x778   : > { %3563 = vmatpush1.bf16.msra.mxu0 %v8882_v51  ;;  %v8944_v51 = vld [vmem:[%s9839_s23 + $0x9ac] ss:$16 sps:$4 sm:$0xff]  }
 0x779   : > { %3564 = vmatprep.subr.bf16.mxu0 %v8890_v30  ;;  %3530 = vmatpush1.bf16.msra.mxu1 %v8903_v35  ;;  %v8950_v30 = vld [vmem:[%s9839_s23 + $0x9cc] ss:$16 sps:$4 sm:$0xff]  }
 0x77a   : > { %8293 = vmatprep.subr.bf16.mxu1 %v9548_v0 }
 0x77c   : > { %3565 = vmatpush1.bf16.msra.mxu0 %v8888_v22  ;;  %v8947_v22 = vld [vmem:[%s9839_s23 + $0x9c4] ss:$16 sps:$4 sm:$0xff]  }
 0x77d   : > { %3566 = vmatprep.subr.bf16.mxu0 %v8896_v20  ;;  %v8948_v20 = vld [vmem:[%s9839_s23 + $0x9c8] ss:$16 sps:$4 sm:$0xff]  }
 0x780   : > { %3567 = vmatpush1.bf16.msra.mxu0 %v8894_v23  ;;  %v8951_v23 = vld [vmem:[%s9839_s23 + $0x9e0] ss:$16 sps:$4 sm:$0xff]  }
 0x781   : > { %3568 = vmatprep.subr.bf16.mxu0 %v8902_v33  ;;  %v8954_v33 = vld [vmem:[%s9839_s23 + $0x9e8] ss:$16 sps:$4 sm:$0xff]  }
 0x784   : > { %3569 = vmatpush1.bf16.msra.mxu0 %v8900_v26 }
 0x785   : > { %3570 = vmatprep.subr.bf16.mxu0 %v8908_v36 }
 0x788   : > { %3571 = vmatpush1.bf16.msra.mxu0 %v8906_v37 }
 0x789   : > { %3871 = vmatprep.subr.bf16.mxu0 %v8911_v38 }
 0x82e   : > { %v3193_v39 = vpop.f32.mrb[36].mxu0  ;;  %v3234_v40 = vpop.f32.mrb[36].mxu1 }
 0x82f   : > { %v10352_v41 = vadd.f32 %v3193_v39, %v10294_v47  ;;  %v10355_v42 = vadd.f32 %v3234_v40, %v10297_v48  ;;  %v3195_v43 = vpop.f32.mrb[37].mxu0  ;;  %v3236_v44 = vpop.f32.mrb[37].mxu1 }
 0x830   : > { %v10358_v45 = vadd.f32 %v3195_v43, %v10300_v53  ;;  %v10361_v46 = vadd.f32 %v3236_v44, %v10303_v54  ;;  %v3197_v49 = vpop.f32.mrb[38].mxu0  ;;  %v3238_v52 = vpop.f32.mrb[38].mxu1  ;;  %v8915_v53 = vld [vmem:[%s9839_s23 + $0x920] ss:$16 sps:$4 sm:$0xff]   ;;  %v8923_v54 = vld [vmem:[%s9839_s23 + $0x944] ss:$16 sps:$4 sm:$0xff]  }
 0x831   : > { %v3198_v57 = vpop.f32.mrb[39].mxu0  ;;  %v3239_v58 = vpop.f32.mrb[39].mxu1 }
 0x83e   : > { %v3316_v47 = vpop.f32.mrb[40].mxu0 }
 0x83f   : > { %v3317_v61 = vadd.f32 %v10245_v12, %v3316_v47  ;;  %v8051_v2 = vpop.f32.mrb[41].mxu0 }
 0x840   : > { %v8965_v2 = vld [vmem:[%s9839_s23 + $0xa24] ss:$16 sps:$4 sm:$0xff]  }
 0x841   : > { %v3320_v48 = vmax.f32 %v3317_v61, 0.0  ;;  %v8957_v61 = vld [vmem:[%s9839_s23 + $0xa00] ss:$16 sps:$4 sm:$0xff]  }
 0x843   : > { %v3321_v55 = vpack.c.bf16 %v3320_v48, %v3320_v48  ;;  %v8969_v48 = vld [vmem:[%s9839_s23 + $0xa40] ss:$16 sps:$4 sm:$0xff]  }
 0x845   : > { %3548 = vmatmul.mubr.bf16.vlgmr.msra.gmra.mrb[40].mxu1 %v3321_v55  ;;  %3589 = vmatmul.mubr.bf16.vlgmr.msra.gmra.mrb[44].mxu0 %v3321_v55  ;;  %v8962_v55 = vld [vmem:[%s9839_s23 + $0xa0c] ss:$16 sps:$4 sm:$0xff]  }
 0x846   : > { %8295 = vmatpush3.bf16.msra.mxu1 %v9862_v5  ;;  %8068 = vmatprep.mubr.msk.f32.mxu1 %vm9549_vm0, %v9550_v1 }
 0x847   : > { %8296 = vmatprep.subr.bf16.mxu1 %v9548_v0  ;;  %3872 = vmatpush1.bf16.msra.mxu0 %v8909_v3  ;;  %v3958_v3 = vld [vmem:[#allocation2 + $0x14] sm:$0x3] }
 0x848   : > { %3873 = vmatprep.subr.bf16.mxu0 %v8917_v11  ;;  %3903 = vmatprep.mubr.bf16.mxu0 %v9551_v50  ;;  %v8960_v11 = vld [vmem:[%s9839_s23 + $0xa08] ss:$16 sps:$4 sm:$0xff]  }
 0x84a   : > { %8298 = vmatpush3.bf16.msra.mxu1 %v9865_v7 }
 0x84b   : > { %8299 = vmatprep.subr.bf16.mxu1 %v9548_v0  ;;  %3874 = vmatpush1.bf16.msra.mxu0 %v8915_v53  ;;  %v8968_v53 = vld [vmem:[%s9839_s23 + $0xa2c] ss:$16 sps:$4 sm:$0xff]  }
 0x84c   : > { %3875 = vmatprep.subr.bf16.mxu0 %v8923_v54  ;;  %v8966_v54 = vld [vmem:[%s9839_s23 + $0xa28] ss:$16 sps:$4 sm:$0xff]  }
 0x84e   : > { %8301 = vmatpush3.bf16.msra.mxu1 %v9871_v10 }
 0x84f   : > { %8302 = vmatprep.subr.bf16.mxu1 %v9548_v0  ;;  %3876 = vmatpush1.bf16.msra.mxu0 %v8921_v56  ;;  %v8974_v56 = vld [vmem:[%s9839_s23 + $0xa4c] ss:$16 sps:$4 sm:$0xff]  }
 0x850   : > { %3877 = vmatprep.subr.bf16.mxu0 %v8929_v4  ;;  %v8984_v4 = vld [vmem:[%s9839_s23 + $0xa88] ss:$16 sps:$4 sm:$0xff]  }
 0x852   : > { %8304 = vmatpush3.bf16.msra.mxu1 %v9877_v13 }
 0x853   : > { %3912 = vmatprep.subr.bf16.mxu1 %v8914_v62  ;;  %3878 = vmatpush1.bf16.msra.mxu0 %v8927_v24  ;;  %v8972_v62 = vld [vmem:[%s9839_s23 + $0xa48] ss:$16 sps:$4 sm:$0xff]   ;;  %v8986_v24 = vld [vmem:[%s9839_s23 + $0xa8c] ss:$16 sps:$4 sm:$0xff]  }
 0x854   : > { %3879 = vmatprep.subr.bf16.mxu0 %v8935_v16  ;;  %v8990_v16 = vld [vmem:[%s9839_s23 + $0xaa8] ss:$16 sps:$4 sm:$0xff]  }
 0x855   : > { %8069 = vmatmul.mubr.msk.f32.vlgmr.msra.gmra.mrb[44].mxu1 %vm407_vm1, %v3602_v63  ;;  %v8977_v63 = vld [vmem:[%s9839_s23 + $0xa64] ss:$16 sps:$4 sm:$0xff]  }
 0x856   : > { %3913 = vmatpush1.bf16.msra.mxu1 %v8912_v18  ;;  %3944 = vmatprep.mubr.bf16.mxu1 %v9551_v50  ;;  %v8975_v18 = vld [vmem:[%s9839_s23 + $0xa60] ss:$16 sps:$4 sm:$0xff]  }
 0x857   : > { %3914 = vmatprep.subr.bf16.mxu1 %v8920_v59  ;;  %3880 = vmatpush1.bf16.msra.mxu0 %v8933_v9  ;;  %v8980_v59 = vld [vmem:[%s9839_s23 + $0xa6c] ss:$16 sps:$4 sm:$0xff]   ;;  %v8987_v9 = vld [vmem:[%s9839_s23 + $0xaa0] ss:$16 sps:$4 sm:$0xff]  }
 0x858   : > { %3881 = vmatprep.subr.bf16.mxu0 %v8941_v14  ;;  %v8993_v14 = vld [vmem:[%s9839_s23 + $0xac0] ss:$16 sps:$4 sm:$0xff]  }
 0x85a   : > { %3915 = vmatpush1.bf16.msra.mxu1 %v8918_v60  ;;  %v8978_v60 = vld [vmem:[%s9839_s23 + $0xa68] ss:$16 sps:$4 sm:$0xff]  }
 0x85b   : > { %3916 = vmatprep.subr.bf16.mxu1 %v8926_v19  ;;  %3882 = vmatpush1.bf16.msra.mxu0 %v8939_v15  ;;  %v8981_v19 = vld [vmem:[%s9839_s23 + $0xa80] ss:$16 sps:$4 sm:$0xff]   ;;  %v9001_v15 = vld [vmem:[%s9839_s23 + $0xae4] ss:$16 sps:$4 sm:$0xff]  }
 0x85c   : > { %3883 = vmatprep.subr.bf16.mxu0 %v8947_v22  ;;  %v9004_v22 = vld [vmem:[%s9839_s23 + $0xaec] ss:$16 sps:$4 sm:$0xff]  }
 0x85e   : > { %3917 = vmatpush1.bf16.msra.mxu1 %v8924_v8  ;;  %v8983_v8 = vld [vmem:[%s9839_s23 + $0xa84] ss:$16 sps:$4 sm:$0xff]  }
 0x85f   : > { %3918 = vmatprep.subr.bf16.mxu1 %v8932_v6  ;;  %3884 = vmatpush1.bf16.msra.mxu0 %v8945_v31  ;;  %v8989_v6 = vld [vmem:[%s9839_s23 + $0xaa4] ss:$16 sps:$4 sm:$0xff]  }
 0x860   : > { %3885 = vmatprep.subr.bf16.mxu0 %v8953_v21  ;;  %v9007_v31 = vld [vmem:[%s9839_s23 + $0xb04] ss:$16 sps:$4 sm:$0xff]  }
 0x862   : > { %3919 = vmatpush1.bf16.msra.mxu1 %v8930_v25  ;;  %v8992_v25 = vld [vmem:[%s9839_s23 + $0xaac] ss:$16 sps:$4 sm:$0xff]  }
 0x863   : > { %3920 = vmatprep.subr.bf16.mxu1 %v8938_v29  ;;  %3886 = vmatpush1.bf16.msra.mxu0 %v8951_v23  ;;  %v8998_v29 = vld [vmem:[%s9839_s23 + $0xacc] ss:$16 sps:$4 sm:$0xff]  }
 0x864   : > { %8305 = vmatprep.subr.bf16.mxu0 %v9548_v0 }
 0x866   : > { %3921 = vmatpush1.bf16.msra.mxu1 %v8936_v28  ;;  %v8995_v28 = vld [vmem:[%s9839_s23 + $0xac4] ss:$16 sps:$4 sm:$0xff]  }
 0x867   : > { %3922 = vmatprep.subr.bf16.mxu1 %v8944_v51  ;;  %v8996_v51 = vld [vmem:[%s9839_s23 + $0xac8] ss:$16 sps:$4 sm:$0xff]  }
 0x86a   : > { %3923 = vmatpush1.bf16.msra.mxu1 %v8942_v17  ;;  %v8999_v17 = vld [vmem:[%s9839_s23 + $0xae0] ss:$16 sps:$4 sm:$0xff]  }
 0x86b   : > { %3924 = vmatprep.subr.bf16.mxu1 %v8950_v30  ;;  %v9002_v30 = vld [vmem:[%s9839_s23 + $0xae8] ss:$16 sps:$4 sm:$0xff]  }
 0x86e   : > { %3925 = vmatpush1.bf16.msra.mxu1 %v8948_v20 }
 0x86f   : > { %3926 = vmatprep.subr.bf16.mxu1 %v8956_v32 }
 0x872   : > { %3927 = vmatpush1.bf16.msra.mxu1 %v8954_v33 }
 0x873   : > { %4227 = vmatprep.subr.bf16.mxu1 %v8959_v34 }
 0x918   : > { %v3549_v26 = vpop.f32.mrb[40].mxu1  ;;  %v3590_v27 = vpop.f32.mrb[44].mxu0 }
 0x919   : > { %v10410_v35 = vadd.f32 %v3549_v26, %v10352_v41  ;;  %v10413_v36 = vadd.f32 %v3590_v27, %v10355_v42  ;;  %v3551_v37 = vpop.f32.mrb[41].mxu1  ;;  %v3592_v38 = vpop.f32.mrb[45].mxu0 }
 0x91a   : > { %v10416_v39 = vadd.f32 %v3551_v37, %v10358_v45  ;;  %v10419_v40 = vadd.f32 %v3592_v38, %v10361_v46  ;;  %v3553_v43 = vpop.f32.mrb[42].mxu1  ;;  %v3594_v44 = vpop.f32.mrb[46].mxu0  ;;  %v8963_v45 = vld [vmem:[%s9839_s23 + $0xa20] ss:$16 sps:$4 sm:$0xff]   ;;  %v8971_v46 = vld [vmem:[%s9839_s23 + $0xa44] ss:$16 sps:$4 sm:$0xff]  }
 0x91b   : > { %v3554_v49 = vpop.f32.mrb[43].mxu1  ;;  %v3595_v52 = vpop.f32.mrb[47].mxu0 }
 0x928   : > { %v3672_v41 = vpop.f32.mrb[44].mxu1 }
 0x929   : > { %v3673_v57 = vadd.f32 %v10245_v12, %v3672_v41  ;;  %v8070_v58 = vpop.f32.mrb[45].mxu1 }
 0x92a   : > { %v9013_v58 = vld [vmem:[%s9839_s23 + $0xb24] ss:$16 sps:$4 sm:$0xff]  }
 0x92b   : > { %v3676_v42 = vmax.f32 %v3673_v57, 0.0  ;;  %v9005_v57 = vld [vmem:[%s9839_s23 + $0xb00] ss:$16 sps:$4 sm:$0xff]  }
 0x92d   : > { %v3677_v47 = vpack.c.bf16 %v3676_v42, %v3676_v42  ;;  %v9017_v42 = vld [vmem:[%s9839_s23 + $0xb40] ss:$16 sps:$4 sm:$0xff]  }
 0x92f   : > { %3904 = vmatmul.mubr.bf16.vlgmr.msra.gmra.mrb[48].mxu0 %v3677_v47  ;;  %3945 = vmatmul.mubr.bf16.vlgmr.msra.gmra.mrb[48].mxu1 %v3677_v47  ;;  %v9010_v47 = vld [vmem:[%s9839_s23 + $0xb0c] ss:$16 sps:$4 sm:$0xff]  }
 0x930   : > { %8307 = vmatpush3.bf16.msra.mxu0 %v9862_v5  ;;  %8087 = vmatprep.mubr.msk.f32.mxu0 %vm9549_vm0, %v9550_v1 }
 0x931   : > { %8308 = vmatprep.subr.bf16.mxu0 %v9548_v0  ;;  %4228 = vmatpush1.bf16.msra.mxu1 %v8957_v61  ;;  %v4314_v61 = vld [vmem:[#allocation2 + $0x16] sm:$0x3] }
 0x932   : > { %4229 = vmatprep.subr.bf16.mxu1 %v8965_v2  ;;  %4259 = vmatprep.mubr.bf16.mxu1 %v9551_v50  ;;  %v9008_v2 = vld [vmem:[%s9839_s23 + $0xb08] ss:$16 sps:$4 sm:$0xff]  }
 0x934   : > { %8310 = vmatpush3.bf16.msra.mxu0 %v9865_v7 }
 0x935   : > { %8311 = vmatprep.subr.bf16.mxu0 %v9548_v0  ;;  %4230 = vmatpush1.bf16.msra.mxu1 %v8963_v45  ;;  %v9016_v45 = vld [vmem:[%s9839_s23 + $0xb2c] ss:$16 sps:$4 sm:$0xff]  }
 0x936   : > { %4231 = vmatprep.subr.bf16.mxu1 %v8971_v46  ;;  %v9014_v46 = vld [vmem:[%s9839_s23 + $0xb28] ss:$16 sps:$4 sm:$0xff]  }
 0x938   : > { %8313 = vmatpush3.bf16.msra.mxu0 %v9871_v10 }
 0x939   : > { %8314 = vmatprep.subr.bf16.mxu0 %v9548_v0  ;;  %4232 = vmatpush1.bf16.msra.mxu1 %v8969_v48  ;;  %v9022_v48 = vld [vmem:[%s9839_s23 + $0xb4c] ss:$16 sps:$4 sm:$0xff]  }
 0x93a   : > { %4233 = vmatprep.subr.bf16.mxu1 %v8977_v63  ;;  %v9032_v63 = vld [vmem:[%s9839_s23 + $0xb88] ss:$16 sps:$4 sm:$0xff]  }
 0x93c   : > { %8316 = vmatpush3.bf16.msra.mxu0 %v9877_v13 }
 0x93d   : > { %4268 = vmatprep.subr.bf16.mxu0 %v8962_v55  ;;  %4234 = vmatpush1.bf16.msra.mxu1 %v8975_v18  ;;  %v9020_v55 = vld [vmem:[%s9839_s23 + $0xb48] ss:$16 sps:$4 sm:$0xff]   ;;  %v9034_v18 = vld [vmem:[%s9839_s23 + $0xb8c] ss:$16 sps:$4 sm:$0xff]  }
 0x93e   : > { %4235 = vmatprep.subr.bf16.mxu1 %v8983_v8  ;;  %v9038_v8 = vld [vmem:[%s9839_s23 + $0xba8] ss:$16 sps:$4 sm:$0xff]  }
 0x93f   : > { %8088 = vmatmul.mubr.msk.f32.vlgmr.msra.gmra.mrb[42].mxu0 %vm407_vm1, %v3958_v3  ;;  %v9025_v3 = vld [vmem:[%s9839_s23 + $0xb64] ss:$16 sps:$4 sm:$0xff]  }
 0x940   : > { %4269 = vmatpush1.bf16.msra.mxu0 %v8960_v11  ;;  %4300 = vmatprep.mubr.bf16.mxu0 %v9551_v50  ;;  %v9023_v11 = vld [vmem:[%s9839_s23 + $0xb60] ss:$16 sps:$4 sm:$0xff]  }
 0x941   : > { %4270 = vmatprep.subr.bf16.mxu0 %v8968_v53  ;;  %4236 = vmatpush1.bf16.msra.mxu1 %v8981_v19  ;;  %v9028_v53 = vld [vmem:[%s9839_s23 + $0xb6c] ss:$16 sps:$4 sm:$0xff]   ;;  %v9035_v19 = vld [vmem:[%s9839_s23 + $0xba0] ss:$16 sps:$4 sm:$0xff]  }
 0x942   : > { %4237 = vmatprep.subr.bf16.mxu1 %v8989_v6  ;;  %v9041_v6 = vld [vmem:[%s9839_s23 + $0xbc0] ss:$16 sps:$4 sm:$0xff]  }
 0x944   : > { %4271 = vmatpush1.bf16.msra.mxu0 %v8966_v54  ;;  %v9026_v54 = vld [vmem:[%s9839_s23 + $0xb68] ss:$16 sps:$4 sm:$0xff]  }
 0x945   : > { %4272 = vmatprep.subr.bf16.mxu0 %v8974_v56  ;;  %4238 = vmatpush1.bf16.msra.mxu1 %v8987_v9  ;;  %v9029_v56 = vld [vmem:[%s9839_s23 + $0xb80] ss:$16 sps:$4 sm:$0xff]   ;;  %v9049_v9 = vld [vmem:[%s9839_s23 + $0xbe4] ss:$16 sps:$4 sm:$0xff]  }
 0x946   : > { %4239 = vmatprep.subr.bf16.mxu1 %v8995_v28  ;;  %v9052_v28 = vld [vmem:[%s9839_s23 + $0xbec] ss:$16 sps:$4 sm:$0xff]  }
 0x948   : > { %4273 = vmatpush1.bf16.msra.mxu0 %v8972_v62  ;;  %v9031_v62 = vld [vmem:[%s9839_s23 + $0xb84] ss:$16 sps:$4 sm:$0xff]  }
 0x949   : > { %4274 = vmatprep.subr.bf16.mxu0 %v8980_v59  ;;  %4240 = vmatpush1.bf16.msra.mxu1 %v8993_v14  ;;  %v9037_v59 = vld [vmem:[%s9839_s23 + $0xba4] ss:$16 sps:$4 sm:$0xff]  }
 0x94a   : > { %4241 = vmatprep.subr.bf16.mxu1 %v9001_v15  ;;  %v9055_v14 = vld [vmem:[%s9839_s23 + $0xc04] ss:$16 sps:$4 sm:$0xff]  }
 0x94c   : > { %4275 = vmatpush1.bf16.msra.mxu0 %v8978_v60  ;;  %v9040_v60 = vld [vmem:[%s9839_s23 + $0xbac] ss:$16 sps:$4 sm:$0xff]  }
 0x94d   : > { %4276 = vmatprep.subr.bf16.mxu0 %v8986_v24  ;;  %4242 = vmatpush1.bf16.msra.mxu1 %v8999_v17  ;;  %v9046_v24 = vld [vmem:[%s9839_s23 + $0xbcc] ss:$16 sps:$4 sm:$0xff]  }
 0x94e   : > { %8317 = vmatprep.subr.bf16.mxu1 %v9548_v0 }
 0x950   : > { %4277 = vmatpush1.bf16.msra.mxu0 %v8984_v4  ;;  %v9043_v4 = vld [vmem:[%s9839_s23 + $0xbc4] ss:$16 sps:$4 sm:$0xff]  }
 0x951   : > { %4278 = vmatprep.subr.bf16.mxu0 %v8992_v25  ;;  %v9044_v25 = vld [vmem:[%s9839_s23 + $0xbc8] ss:$16 sps:$4 sm:$0xff]  }
 0x954   : > { %4279 = vmatpush1.bf16.msra.mxu0 %v8990_v16  ;;  %v9047_v16 = vld [vmem:[%s9839_s23 + $0xbe0] ss:$16 sps:$4 sm:$0xff]  }
 0x955   : > { %4280 = vmatprep.subr.bf16.mxu0 %v8998_v29  ;;  %v9050_v29 = vld [vmem:[%s9839_s23 + $0xbe8] ss:$16 sps:$4 sm:$0xff]  }
 0x958   : > { %4281 = vmatpush1.bf16.msra.mxu0 %v8996_v51 }
 0x959   : > { %4282 = vmatprep.subr.bf16.mxu0 %v9004_v22 }
 0x95c   : > { %4283 = vmatpush1.bf16.msra.mxu0 %v9002_v30 }
 0x95d   : > { %4583 = vmatprep.subr.bf16.mxu0 %v9007_v31 }
 0xa02   : > { %v3905_v20 = vpop.f32.mrb[48].mxu0  ;;  %v3946_v21 = vpop.f32.mrb[48].mxu1 }
 0xa03   : > { %v10468_v23 = vadd.f32 %v3905_v20, %v10410_v35  ;;  %v10471_v32 = vadd.f32 %v3946_v21, %v10413_v36  ;;  %v3907_v33 = vpop.f32.mrb[49].mxu0  ;;  %v3948_v34 = vpop.f32.mrb[49].mxu1 }
 0xa04   : > { %v10474_v26 = vadd.f32 %v3907_v33, %v10416_v39  ;;  %v10477_v27 = vadd.f32 %v3948_v34, %v10419_v40  ;;  %v3909_v37 = vpop.f32.mrb[50].mxu0  ;;  %v3950_v38 = vpop.f32.mrb[50].mxu1  ;;  %v9011_v39 = vld [vmem:[%s9839_s23 + $0xb20] ss:$16 sps:$4 sm:$0xff]   ;;  %v9019_v40 = vld [vmem:[%s9839_s23 + $0xb44] ss:$16 sps:$4 sm:$0xff]  }
 0xa05   : > { %v3910_v43 = vpop.f32.mrb[51].mxu0  ;;  %v3951_v44 = vpop.f32.mrb[51].mxu1 }
 0xa12   : > { %v4028_v35 = vpop.f32.mrb[42].mxu0 }
 0xa13   : > { %v4029_v49 = vadd.f32 %v10245_v12, %v4028_v35  ;;  %v8089_v52 = vpop.f32.mrb[43].mxu0 }
 0xa14   : > { %v9061_v52 = vld [vmem:[%s9839_s23 + $0xc24] ss:$16 sps:$4 sm:$0xff]  }
 0xa15   : > { %v4032_v36 = vmax.f32 %v4029_v49, 0.0  ;;  %v9053_v49 = vld [vmem:[%s9839_s23 + $0xc00] ss:$16 sps:$4 sm:$0xff]  }
 0xa17   : > { %v4033_v41 = vpack.c.bf16 %v4032_v36, %v4032_v36  ;;  %v9058_v36 = vld [vmem:[%s9839_s23 + $0xc0c] ss:$16 sps:$4 sm:$0xff]  }
 0xa19   : > { %4260 = vmatmul.mubr.bf16.vlgmr.msra.gmra.mrb[52].mxu1 %v4033_v41  ;;  %4301 = vmatmul.mubr.bf16.vlgmr.msra.gmra.mrb[52].mxu0 %v4033_v41  ;;  %v4670_v41 = vld [vmem:[#allocation2 + $0x18] sm:$0x3] }
 0xa1a   : > { %8319 = vmatpush3.bf16.msra.mxu1 %v9862_v5  ;;  %8106 = vmatprep.mubr.msk.f32.mxu1 %vm9549_vm0, %v9550_v1 }
 0xa1b   : > { %8320 = vmatprep.subr.bf16.mxu1 %v9548_v0  ;;  %4584 = vmatpush1.bf16.msra.mxu0 %v9005_v57  ;;  %v9056_v57 = vld [vmem:[%s9839_s23 + $0xc08] ss:$16 sps:$4 sm:$0xff]  }
 0xa1c   : > { %4585 = vmatprep.subr.bf16.mxu0 %v9013_v58  ;;  %4615 = vmatprep.mubr.bf16.mxu0 %v9551_v50  ;;  %v9064_v58 = vld [vmem:[%s9839_s23 + $0xc2c] ss:$16 sps:$4 sm:$0xff]  }
 0xa1e   : > { %8322 = vmatpush3.bf16.msra.mxu1 %v9865_v7 }
 0xa1f   : > { %8323 = vmatprep.subr.bf16.mxu1 %v9548_v0  ;;  %4586 = vmatpush1.bf16.msra.mxu0 %v9011_v39  ;;  %v9062_v39 = vld [vmem:[%s9839_s23 + $0xc28] ss:$16 sps:$4 sm:$0xff]  }
 0xa20   : > { %4587 = vmatprep.subr.bf16.mxu0 %v9019_v40  ;;  %v9070_v40 = vld [vmem:[%s9839_s23 + $0xc4c] ss:$16 sps:$4 sm:$0xff]  }
 0xa22   : > { %8325 = vmatpush3.bf16.msra.mxu1 %v9871_v10 }
 0xa23   : > { %8326 = vmatprep.subr.bf16.mxu1 %v9548_v0  ;;  %4588 = vmatpush1.bf16.msra.mxu0 %v9017_v42  ;;  %v9068_v42 = vld [vmem:[%s9839_s23 + $0xc48] ss:$16 sps:$4 sm:$0xff]  }
 0xa24   : > { %4589 = vmatprep.subr.bf16.mxu0 %v9025_v3  ;;  %v9082_v3 = vld [vmem:[%s9839_s23 + $0xc8c] ss:$16 sps:$4 sm:$0xff]  }
 0xa26   : > { %8328 = vmatpush3.bf16.msra.mxu1 %v9877_v13 }
 0xa27   : > { %4624 = vmatprep.subr.bf16.mxu1 %v9010_v47  ;;  %4590 = vmatpush1.bf16.msra.mxu0 %v9023_v11  ;;  %v9073_v47 = vld [vmem:[%s9839_s23 + $0xc64] ss:$16 sps:$4 sm:$0xff]  }
 0xa28   : > { %4591 = vmatprep.subr.bf16.mxu0 %v9031_v62  ;;  %v9085_v11 = vld [vmem:[%s9839_s23 + $0xca4] ss:$16 sps:$4 sm:$0xff]  }
 0xa29   : > { %8107 = vmatmul.mubr.msk.f32.vlgmr.msra.gmra.mrb[46].mxu1 %vm407_vm1, %v4314_v61  ;;  %v9071_v61 = vld [vmem:[%s9839_s23 + $0xc60] ss:$16 sps:$4 sm:$0xff]   ;;  %v9091_v62 = vld [vmem:[%s9839_s23 + $0xcc4] ss:$16 sps:$4 sm:$0xff]  }
 0xa2a   : > { %4625 = vmatpush1.bf16.msra.mxu1 %v9008_v2  ;;  %4656 = vmatprep.mubr.bf16.mxu1 %v9551_v50  ;;  %v9076_v2 = vld [vmem:[%s9839_s23 + $0xc6c] ss:$16 sps:$4 sm:$0xff]  }
 0xa2b   : > { %4626 = vmatprep.subr.bf16.mxu1 %v9016_v45  ;;  %4592 = vmatpush1.bf16.msra.mxu0 %v9029_v56  ;;  %v9074_v45 = vld [vmem:[%s9839_s23 + $0xc68] ss:$16 sps:$4 sm:$0xff]  }
 0xa2c   : > { %4593 = vmatprep.subr.bf16.mxu0 %v9037_v59  ;;  %v9086_v56 = vld [vmem:[%s9839_s23 + $0xca8] ss:$16 sps:$4 sm:$0xff]  }
 0xa2d   : > { %v9092_v59 = vld [vmem:[%s9839_s23 + $0xcc8] ss:$16 sps:$4 sm:$0xff]  }
 0xa2e   : > { %4627 = vmatpush1.bf16.msra.mxu1 %v9014_v46  ;;  %v9077_v46 = vld [vmem:[%s9839_s23 + $0xc80] ss:$16 sps:$4 sm:$0xff]  }
 0xa2f   : > { %4628 = vmatprep.subr.bf16.mxu1 %v9022_v48  ;;  %4594 = vmatpush1.bf16.msra.mxu0 %v9035_v19  ;;  %v9079_v48 = vld [vmem:[%s9839_s23 + $0xc84] ss:$16 sps:$4 sm:$0xff]   ;;  %v9095_v19 = vld [vmem:[%s9839_s23 + $0xce0] ss:$16 sps:$4 sm:$0xff]  }
 0xa30   : > { %4595 = vmatprep.subr.bf16.mxu0 %v9043_v4  ;;  %v9098_v4 = vld [vmem:[%s9839_s23 + $0xce8] ss:$16 sps:$4 sm:$0xff]  }
 0xa32   : > { %4629 = vmatpush1.bf16.msra.mxu1 %v9020_v55  ;;  %v9080_v55 = vld [vmem:[%s9839_s23 + $0xc88] ss:$16 sps:$4 sm:$0xff]  }
 0xa33   : > { %4630 = vmatprep.subr.bf16.mxu1 %v9028_v53  ;;  %4596 = vmatpush1.bf16.msra.mxu0 %v9041_v6  ;;  %v9088_v53 = vld [vmem:[%s9839_s23 + $0xcac] ss:$16 sps:$4 sm:$0xff]  }
 0xa34   : > { %4597 = vmatprep.subr.bf16.mxu0 %v9049_v9 }
 0xa36   : > { %4631 = vmatpush1.bf16.msra.mxu1 %v9026_v54  ;;  %v9083_v54 = vld [vmem:[%s9839_s23 + $0xca0] ss:$16 sps:$4 sm:$0xff]  }
 0xa37   : > { %4632 = vmatprep.subr.bf16.mxu1 %v9034_v18  ;;  %4598 = vmatpush1.bf16.msra.mxu0 %v9047_v16  ;;  %v9089_v18 = vld [vmem:[%s9839_s23 + $0xcc0] ss:$16 sps:$4 sm:$0xff]  }
 0xa38   : > { %8329 = vmatprep.subr.bf16.mxu0 %v9548_v0 }
 0xa3a   : > { %4633 = vmatpush1.bf16.msra.mxu1 %v9032_v63  ;;  %v9094_v63 = vld [vmem:[%s9839_s23 + $0xccc] ss:$16 sps:$4 sm:$0xff]  }
 0xa3b   : > { %4634 = vmatprep.subr.bf16.mxu1 %v9040_v60  ;;  %v9097_v60 = vld [vmem:[%s9839_s23 + $0xce4] ss:$16 sps:$4 sm:$0xff]  }
 0xa3e   : > { %4635 = vmatpush1.bf16.msra.mxu1 %v9038_v8  ;;  %v9100_v8 = vld [vmem:[%s9839_s23 + $0xcec] ss:$16 sps:$4 sm:$0xff]  }
 0xa3f   : > { %4636 = vmatprep.subr.bf16.mxu1 %v9046_v24  ;;  %v9103_v24 = vld [vmem:[%s9839_s23 + $0xd04] ss:$16 sps:$4 sm:$0xff]  }
 0xa42   : > { %4637 = vmatpush1.bf16.msra.mxu1 %v9044_v25 }
 0xa43   : > { %4638 = vmatprep.subr.bf16.mxu1 %v9052_v28 }
 0xa46   : > { %4639 = vmatpush1.bf16.msra.mxu1 %v9050_v29 }
 0xa47   : > { %4939 = vmatprep.subr.bf16.mxu1 %v9055_v14 }
 0xaec   : > { %v4261_v51 = vpop.f32.mrb[52].mxu1  ;;  %v4302_v15 = vpop.f32.mrb[52].mxu0 }
 0xaed   : > { %v10526_v17 = vadd.f32 %v4261_v51, %v10468_v23  ;;  %v10529_v22 = vadd.f32 %v4302_v15, %v10471_v32  ;;  %v4263_v30 = vpop.f32.mrb[53].mxu1  ;;  %v4304_v31 = vpop.f32.mrb[53].mxu0 }
 0xaee   : > { %v10532_v20 = vadd.f32 %v4263_v30, %v10474_v26  ;;  %v10535_v21 = vadd.f32 %v4304_v31, %v10477_v27  ;;  %v4265_v33 = vpop.f32.mrb[54].mxu1  ;;  %v4306_v34 = vpop.f32.mrb[54].mxu0  ;;  %v9059_v26 = vld [vmem:[%s9839_s23 + $0xc20] ss:$16 sps:$4 sm:$0xff]  }
 0xaef   : > { %v4266_v37 = vpop.f32.mrb[55].mxu1  ;;  %v4307_v38 = vpop.f32.mrb[55].mxu0  ;;  %v9065_v27 = vld [vmem:[%s9839_s23 + $0xc40] ss:$16 sps:$4 sm:$0xff]   ;;  %v10595_v34 = vld [vmem:[#allocation7] ss:$0 sm:$0xff] }
 0xafc   : > { %v4384_v23 = vpop.f32.mrb[46].mxu1 }
 0xafd   : > { %v4385_v43 = vadd.f32 %v10245_v12, %v4384_v23  ;;  %v8108_v44 = vpop.f32.mrb[47].mxu1  ;;  %v9067_v12 = vld [vmem:[%s9839_s23 + $0xc44] ss:$16 sps:$4 sm:$0xff]  }
 0xafe   : > { %v9115_v44 = vld [vmem:[%s9839_s23 + $0xd44] ss:$16 sps:$4 sm:$0xff]  }
 0xaff   : > { %v4388_v32 = vmax.f32 %v4385_v43, 0.0  ;;  %v9109_v43 = vld [vmem:[%s9839_s23 + $0xd24] ss:$16 sps:$4 sm:$0xff]  }
 0xb01   : > { %v4389_v35 = vpack.c.bf16 %v4388_v32, %v4388_v32  ;;  %v9113_v32 = vld [vmem:[%s9839_s23 + $0xd40] ss:$16 sps:$4 sm:$0xff]  }
 0xb03   : > { %4616 = vmatmul.mubr.bf16.vlgmr.msra.gmra.mrb[56].mxu0 %v4389_v35  ;;  %4657 = vmatmul.mubr.bf16.vlgmr.msra.gmra.mrb[56].mxu1 %v4389_v35  ;;  %v9106_v35 = vld [vmem:[%s9839_s23 + $0xd0c] ss:$16 sps:$4 sm:$0xff]  }
 0xb04   : > { %8331 = vmatpush3.bf16.msra.mxu0 %v9862_v5  ;;  %8125 = vmatprep.mubr.msk.f32.mxu0 %vm9549_vm0, %v9550_v1 }
 0xb05   : > { %8332 = vmatprep.subr.bf16.mxu0 %v9548_v0  ;;  %4940 = vmatpush1.bf16.msra.mxu1 %v9053_v49  ;;  %v5026_v49 = vld [vmem:[#allocation2 + $0x1a] sm:$0x3] }
 0xb06   : > { %4941 = vmatprep.subr.bf16.mxu1 %v9061_v52  ;;  %4971 = vmatprep.mubr.bf16.mxu1 %v9551_v50  ;;  %v9104_v52 = vld [vmem:[%s9839_s23 + $0xd08] ss:$16 sps:$4 sm:$0xff]  }
 0xb08   : > { %8334 = vmatpush3.bf16.msra.mxu0 %v9865_v7 }
 0xb09   : > { %8335 = vmatprep.subr.bf16.mxu0 %v9548_v0  ;;  %4942 = vmatpush1.bf16.msra.mxu1 %v9059_v26  ;;  %v9112_v26 = vld [vmem:[%s9839_s23 + $0xd2c] ss:$16 sps:$4 sm:$0xff]  }
 0xb0a   : > { %4943 = vmatprep.subr.bf16.mxu1 %v9067_v12  ;;  %v9110_v12 = vld [vmem:[%s9839_s23 + $0xd28] ss:$16 sps:$4 sm:$0xff]  }
 0xb0c   : > { %8337 = vmatpush3.bf16.msra.mxu0 %v9871_v10 }
 0xb0d   : > { %8338 = vmatprep.subr.bf16.mxu0 %v9548_v0  ;;  %4944 = vmatpush1.bf16.msra.mxu1 %v9065_v27  ;;  %v9118_v27 = vld [vmem:[%s9839_s23 + $0xd4c] ss:$16 sps:$4 sm:$0xff]  }
 0xb0e   : > { %4945 = vmatprep.subr.bf16.mxu1 %v9073_v47  ;;  %v9128_v47 = vld [vmem:[%s9839_s23 + $0xd88] ss:$16 sps:$4 sm:$0xff]  }
 0xb10   : > { %8340 = vmatpush3.bf16.msra.mxu0 %v9877_v13 }
 0xb11   : > { %4980 = vmatprep.subr.bf16.mxu0 %v9058_v36  ;;  %4946 = vmatpush1.bf16.msra.mxu1 %v9071_v61  ;;  %v9116_v36 = vld [vmem:[%s9839_s23 + $0xd48] ss:$16 sps:$4 sm:$0xff]   ;;  %v9130_v61 = vld [vmem:[%s9839_s23 + $0xd8c] ss:$16 sps:$4 sm:$0xff]  }
 0xb12   : > { %4947 = vmatprep.subr.bf16.mxu1 %v9079_v48  ;;  %v9134_v48 = vld [vmem:[%s9839_s23 + $0xda8] ss:$16 sps:$4 sm:$0xff]  }
 0xb13   : > { %8126 = vmatmul.mubr.msk.f32.vlgmr.msra.gmra.mrb[60].mxu0 %vm407_vm1, %v4670_v41  ;;  %v9121_v41 = vld [vmem:[%s9839_s23 + $0xd64] ss:$16 sps:$4 sm:$0xff]  }
 0xb14   : > { %4981 = vmatpush1.bf16.msra.mxu0 %v9056_v57  ;;  %5012 = vmatprep.mubr.bf16.mxu0 %v9551_v50  ;;  %v9119_v57 = vld [vmem:[%s9839_s23 + $0xd60] ss:$16 sps:$4 sm:$0xff]  }
 0xb15   : > { %4982 = vmatprep.subr.bf16.mxu0 %v9064_v58  ;;  %4948 = vmatpush1.bf16.msra.mxu1 %v9077_v46  ;;  %v9124_v58 = vld [vmem:[%s9839_s23 + $0xd6c] ss:$16 sps:$4 sm:$0xff]   ;;  %v9131_v46 = vld [vmem:[%s9839_s23 + $0xda0] ss:$16 sps:$4 sm:$0xff]  }
 0xb16   : > { %4949 = vmatprep.subr.bf16.mxu1 %v9085_v11  ;;  %v9137_v11 = vld [vmem:[%s9839_s23 + $0xdc0] ss:$16 sps:$4 sm:$0xff]  }
 0xb18   : > { %4983 = vmatpush1.bf16.msra.mxu0 %v9062_v39  ;;  %v9122_v39 = vld [vmem:[%s9839_s23 + $0xd68] ss:$16 sps:$4 sm:$0xff]  }
 0xb19   : > { %4984 = vmatprep.subr.bf16.mxu0 %v9070_v40  ;;  %4950 = vmatpush1.bf16.msra.mxu1 %v9083_v54  ;;  %v9125_v40 = vld [vmem:[%s9839_s23 + $0xd80] ss:$16 sps:$4 sm:$0xff]   ;;  %v9145_v54 = vld [vmem:[%s9839_s23 + $0xde4] ss:$16 sps:$4 sm:$0xff]  }
 0xb1a   : > { %4951 = vmatprep.subr.bf16.mxu1 %v9091_v62  ;;  %v9148_v62 = vld [vmem:[%s9839_s23 + $0xdec] ss:$16 sps:$4 sm:$0xff]  }
 0xb1c   : > { %4985 = vmatpush1.bf16.msra.mxu0 %v9068_v42  ;;  %v9127_v42 = vld [vmem:[%s9839_s23 + $0xd84] ss:$16 sps:$4 sm:$0xff]  }
 0xb1d   : > { %4986 = vmatprep.subr.bf16.mxu0 %v9076_v2  ;;  %4952 = vmatpush1.bf16.msra.mxu1 %v9089_v18  ;;  %v9133_v2 = vld [vmem:[%s9839_s23 + $0xda4] ss:$16 sps:$4 sm:$0xff]  }
 0xb1e   : > { %4953 = vmatprep.subr.bf16.mxu1 %v9097_v60  ;;  %v9151_v18 = vld [vmem:[%s9839_s23 + $0xe04] ss:$16 sps:$4 sm:$0xff]  }
 0xb20   : > { %4987 = vmatpush1.bf16.msra.mxu0 %v9074_v45  ;;  %v9136_v45 = vld [vmem:[%s9839_s23 + $0xdac] ss:$16 sps:$4 sm:$0xff]  }
 0xb21   : > { %4988 = vmatprep.subr.bf16.mxu0 %v9082_v3  ;;  %4954 = vmatpush1.bf16.msra.mxu1 %v9095_v19  ;;  %v9142_v3 = vld [vmem:[%s9839_s23 + $0xdcc] ss:$16 sps:$4 sm:$0xff]  }
 0xb22   : > { %8341 = vmatprep.subr.bf16.mxu1 %v9548_v0 }
 0xb24   : > { %4989 = vmatpush1.bf16.msra.mxu0 %v9080_v55  ;;  %v9139_v55 = vld [vmem:[%s9839_s23 + $0xdc4] ss:$16 sps:$4 sm:$0xff]  }
 0xb25   : > { %4990 = vmatprep.subr.bf16.mxu0 %v9088_v53  ;;  %v9140_v53 = vld [vmem:[%s9839_s23 + $0xdc8] ss:$16 sps:$4 sm:$0xff]  }
 0xb28   : > { %4991 = vmatpush1.bf16.msra.mxu0 %v9086_v56  ;;  %v9143_v56 = vld [vmem:[%s9839_s23 + $0xde0] ss:$16 sps:$4 sm:$0xff]  }
 0xb29   : > { %4992 = vmatprep.subr.bf16.mxu0 %v9094_v63  ;;  %v9146_v63 = vld [vmem:[%s9839_s23 + $0xde8] ss:$16 sps:$4 sm:$0xff]  }
 0xb2c   : > { %4993 = vmatpush1.bf16.msra.mxu0 %v9092_v59 }
 0xb2d   : > { %4994 = vmatprep.subr.bf16.mxu0 %v9100_v8 }
 0xb30   : > { %4995 = vmatpush1.bf16.msra.mxu0 %v9098_v4 }
 0xb31   : > { %5295 = vmatprep.subr.bf16.mxu0 %v9103_v24 }
 0xbd6   : > { %v4617_v6 = vpop.f32.mrb[56].mxu0  ;;  %v4658_v25 = vpop.f32.mrb[56].mxu1 }
 0xbd7   : > { %v10584_v9 = vadd.f32 %v4617_v6, %v10526_v17  ;;  %v10587_v16 = vadd.f32 %v4658_v25, %v10529_v22  ;;  %v4619_v28 = vpop.f32.mrb[57].mxu0  ;;  %v4660_v29 = vpop.f32.mrb[57].mxu1 }
 0xbd8   : > { %v10590_v14 = vadd.f32 %v4619_v28, %v10532_v20  ;;  %v10593_v51 = vadd.f32 %v4660_v29, %v10535_v21  ;;  %v4621_v15 = vpop.f32.mrb[58].mxu0  ;;  %v4662_v30 = vpop.f32.mrb[58].mxu1  ;;  %v9101_v20 = vld [vmem:[%s9839_s23 + $0xd00] ss:$16 sps:$4 sm:$0xff]  }
 0xbd9   : > { %v4622_v31 = vpop.f32.mrb[59].mxu0  ;;  %v4663_v33 = vpop.f32.mrb[59].mxu1  ;;  %v9107_v21 = vld [vmem:[%s9839_s23 + $0xd20] ss:$16 sps:$4 sm:$0xff]  }
 0xbe6   : > { %v4740_v17 = vpop.f32.mrb[60].mxu0 }
 0xbe7   : > { %v4741_v22 = vadd.f32 %v10595_v34, %v4740_v17  ;;  %v8127_v37 = vpop.f32.mrb[61].mxu0 }
 0xbe8   : > { %v9157_v37 = vld [vmem:[%s9839_s23 + $0xe24] ss:$16 sps:$4 sm:$0xff]  }
 0xbe9   : > { %v4744_v38 = vmax.f32 %v4741_v22, 0.0  ;;  %v9149_v22 = vld [vmem:[%s9839_s23 + $0xe00] ss:$16 sps:$4 sm:$0xff]  }
 0xbeb   : > { %v4745_v23 = vpack.c.bf16 %v4744_v38, %v4744_v38  ;;  %v9161_v38 = vld [vmem:[%s9839_s23 + $0xe40] ss:$16 sps:$4 sm:$0xff]  }
 0xbed   : > { %4972 = vmatmul.mubr.bf16.vlgmr.msra.gmra.mrb[60].mxu1 %v4745_v23  ;;  %5013 = vmatmul.mubr.bf16.vlgmr.msra.gmra.mrb[64].mxu0 %v4745_v23  ;;  %v9154_v23 = vld [vmem:[%s9839_s23 + $0xe0c] ss:$16 sps:$4 sm:$0xff]  }
 0xbee   : > { %8343 = vmatpush3.bf16.msra.mxu1 %v9862_v5  ;;  %8144 = vmatprep.mubr.msk.f32.mxu1 %vm9549_vm0, %v9550_v1 }
 0xbef   : > { %8344 = vmatprep.subr.bf16.mxu1 %v9548_v0  ;;  %5296 = vmatpush1.bf16.msra.mxu0 %v9101_v20  ;;  %v5382_v20 = vld [vmem:[#allocation2 + $0x1c] sm:$0x3] }
 0xbf0   : > { %5297 = vmatprep.subr.bf16.mxu0 %v9109_v43  ;;  %5327 = vmatprep.mubr.bf16.mxu0 %v9551_v50  ;;  %v9152_v43 = vld [vmem:[%s9839_s23 + $0xe08] ss:$16 sps:$4 sm:$0xff]  }
 0xbf2   : > { %8346 = vmatpush3.bf16.msra.mxu1 %v9865_v7 }
 0xbf3   : > { %8347 = vmatprep.subr.bf16.mxu1 %v9548_v0  ;;  %5298 = vmatpush1.bf16.msra.mxu0 %v9107_v21  ;;  %v9160_v21 = vld [vmem:[%s9839_s23 + $0xe2c] ss:$16 sps:$4 sm:$0xff]  }
 0xbf4   : > { %5299 = vmatprep.subr.bf16.mxu0 %v9115_v44  ;;  %v9158_v44 = vld [vmem:[%s9839_s23 + $0xe28] ss:$16 sps:$4 sm:$0xff]  }
 0xbf6   : > { %8349 = vmatpush3.bf16.msra.mxu1 %v9871_v10 }
 0xbf7   : > { %8350 = vmatprep.subr.bf16.mxu1 %v9548_v0  ;;  %5300 = vmatpush1.bf16.msra.mxu0 %v9113_v32  ;;  %v9166_v32 = vld [vmem:[%s9839_s23 + $0xe4c] ss:$16 sps:$4 sm:$0xff]  }
 0xbf8   : > { %5301 = vmatprep.subr.bf16.mxu0 %v9121_v41  ;;  %v9176_v41 = vld [vmem:[%s9839_s23 + $0xe88] ss:$16 sps:$4 sm:$0xff]  }
 0xbfa   : > { %8352 = vmatpush3.bf16.msra.mxu1 %v9877_v13 }
 0xbfb   : > { %5336 = vmatprep.subr.bf16.mxu1 %v9106_v35  ;;  %5302 = vmatpush1.bf16.msra.mxu0 %v9119_v57  ;;  %v9164_v35 = vld [vmem:[%s9839_s23 + $0xe48] ss:$16 sps:$4 sm:$0xff]   ;;  %v9178_v57 = vld [vmem:[%s9839_s23 + $0xe8c] ss:$16 sps:$4 sm:$0xff]  }
 0xbfc   : > { %5303 = vmatprep.subr.bf16.mxu0 %v9127_v42  ;;  %v9182_v42 = vld [vmem:[%s9839_s23 + $0xea8] ss:$16 sps:$4 sm:$0xff]  }
 0xbfd   : > { %8145 = vmatmul.mubr.msk.f32.vlgmr.msra.gmra.mrb[64].mxu1 %vm407_vm1, %v5026_v49  ;;  %v9169_v49 = vld [vmem:[%s9839_s23 + $0xe64] ss:$16 sps:$4 sm:$0xff]  }
 0xbfe   : > { %5337 = vmatpush1.bf16.msra.mxu1 %v9104_v52  ;;  %5368 = vmatprep.mubr.bf16.mxu1 %v9551_v50  ;;  %v9167_v52 = vld [vmem:[%s9839_s23 + $0xe60] ss:$16 sps:$4 sm:$0xff]  }
 0xbff   : > { %5338 = vmatprep.subr.bf16.mxu1 %v9112_v26  ;;  %5304 = vmatpush1.bf16.msra.mxu0 %v9125_v40  ;;  %v9172_v26 = vld [vmem:[%s9839_s23 + $0xe6c] ss:$16 sps:$4 sm:$0xff]   ;;  %v9179_v40 = vld [vmem:[%s9839_s23 + $0xea0] ss:$16 sps:$4 sm:$0xff]  }
 0xc00   : > { %5305 = vmatprep.subr.bf16.mxu0 %v9133_v2  ;;  %v9185_v2 = vld [vmem:[%s9839_s23 + $0xec0] ss:$16 sps:$4 sm:$0xff]  }
 0xc02   : > { %5339 = vmatpush1.bf16.msra.mxu1 %v9110_v12  ;;  %v9170_v12 = vld [vmem:[%s9839_s23 + $0xe68] ss:$16 sps:$4 sm:$0xff]  }
 0xc03   : > { %5340 = vmatprep.subr.bf16.mxu1 %v9118_v27  ;;  %5306 = vmatpush1.bf16.msra.mxu0 %v9131_v46  ;;  %v9173_v27 = vld [vmem:[%s9839_s23 + $0xe80] ss:$16 sps:$4 sm:$0xff]   ;;  %v9193_v46 = vld [vmem:[%s9839_s23 + $0xee4] ss:$16 sps:$4 sm:$0xff]  }
 0xc04   : > { %5307 = vmatprep.subr.bf16.mxu0 %v9139_v55  ;;  %v9196_v55 = vld [vmem:[%s9839_s23 + $0xeec] ss:$16 sps:$4 sm:$0xff]  }
 0xc06   : > { %5341 = vmatpush1.bf16.msra.mxu1 %v9116_v36  ;;  %v9175_v36 = vld [vmem:[%s9839_s23 + $0xe84] ss:$16 sps:$4 sm:$0xff]  }
 0xc07   : > { %5342 = vmatprep.subr.bf16.mxu1 %v9124_v58  ;;  %5308 = vmatpush1.bf16.msra.mxu0 %v9137_v11  ;;  %v9181_v58 = vld [vmem:[%s9839_s23 + $0xea4] ss:$16 sps:$4 sm:$0xff]  }
 0xc08   : > { %5309 = vmatprep.subr.bf16.mxu0 %v9145_v54  ;;  %v9199_v11 = vld [vmem:[%s9839_s23 + $0xf04] ss:$16 sps:$4 sm:$0xff]  }
 0xc0a   : > { %5343 = vmatpush1.bf16.msra.mxu1 %v9122_v39  ;;  %v9184_v39 = vld [vmem:[%s9839_s23 + $0xeac] ss:$16 sps:$4 sm:$0xff]  }
 0xc0b   : > { %5344 = vmatprep.subr.bf16.mxu1 %v9130_v61  ;;  %5310 = vmatpush1.bf16.msra.mxu0 %v9143_v56  ;;  %v9190_v61 = vld [vmem:[%s9839_s23 + $0xecc] ss:$16 sps:$4 sm:$0xff]  }
 0xc0c   : > { %8353 = vmatprep.subr.bf16.mxu0 %v9548_v0 }
 0xc0e   : > { %5345 = vmatpush1.bf16.msra.mxu1 %v9128_v47  ;;  %v9187_v47 = vld [vmem:[%s9839_s23 + $0xec4] ss:$16 sps:$4 sm:$0xff]  }
 0xc0f   : > { %5346 = vmatprep.subr.bf16.mxu1 %v9136_v45  ;;  %v9188_v45 = vld [vmem:[%s9839_s23 + $0xec8] ss:$16 sps:$4 sm:$0xff]  }
 0xc12   : > { %5347 = vmatpush1.bf16.msra.mxu1 %v9134_v48  ;;  %v9191_v48 = vld [vmem:[%s9839_s23 + $0xee0] ss:$16 sps:$4 sm:$0xff]  }
 0xc13   : > { %5348 = vmatprep.subr.bf16.mxu1 %v9142_v3  ;;  %v9194_v3 = vld [vmem:[%s9839_s23 + $0xee8] ss:$16 sps:$4 sm:$0xff]  }
 0xc16   : > { %5349 = vmatpush1.bf16.msra.mxu1 %v9140_v53 }
 0xc17   : > { %5350 = vmatprep.subr.bf16.mxu1 %v9148_v62 }
 0xc1a   : > { %5351 = vmatpush1.bf16.msra.mxu1 %v9146_v63 }
 0xc1b   : > { %5651 = vmatprep.subr.bf16.mxu1 %v9151_v18 }
 0xcc0   : > { %v4973_v59 = vpop.f32.mrb[60].mxu1  ;;  %v5014_v60 = vpop.f32.mrb[64].mxu0 }
 0xcc1   : > { %v10644_v19 = vadd.f32 %v4973_v59, %v10584_v9  ;;  %v10647_v8 = vadd.f32 %v5014_v60, %v10587_v16  ;;  %v4975_v4 = vpop.f32.mrb[61].mxu1  ;;  %v5016_v24 = vpop.f32.mrb[65].mxu0 }
 0xcc2   : > { %v10650_v6 = vadd.f32 %v4975_v4, %v10590_v14  ;;  %v10653_v25 = vadd.f32 %v5016_v24, %v10593_v51  ;;  %v4977_v28 = vpop.f32.mrb[62].mxu1  ;;  %v5018_v29 = vpop.f32.mrb[66].mxu0  ;;  %v9155_v14 = vld [vmem:[%s9839_s23 + $0xe20] ss:$16 sps:$4 sm:$0xff]   ;;  %v9163_v51 = vld [vmem:[%s9839_s23 + $0xe44] ss:$16 sps:$4 sm:$0xff]  }
 0xcc3   : > { %v4978_v15 = vpop.f32.mrb[63].mxu1  ;;  %v5019_v30 = vpop.f32.mrb[67].mxu0 }
 0xcd0   : > { %v5096_v9 = vpop.f32.mrb[64].mxu1 }
 0xcd1   : > { %v5097_v31 = vadd.f32 %v10595_v34, %v5096_v9  ;;  %v8146_v33 = vpop.f32.mrb[65].mxu1 }
 0xcd2   : > { %v9205_v33 = vld [vmem:[%s9839_s23 + $0xf24] ss:$16 sps:$4 sm:$0xff]  }
 0xcd3   : > { %v5100_v16 = vmax.f32 %v5097_v31, 0.0  ;;  %v9197_v31 = vld [vmem:[%s9839_s23 + $0xf00] ss:$16 sps:$4 sm:$0xff]  }
 0xcd5   : > { %v5101_v17 = vpack.c.bf16 %v5100_v16, %v5100_v16  ;;  %v5738_v16 = vld [vmem:[#allocation2 + $0x1e] sm:$0x3] }
 0xcd7   : > { %5328 = vmatmul.mubr.bf16.vlgmr.msra.gmra.mrb[68].mxu0 %v5101_v17  ;;  %5369 = vmatmul.mubr.bf16.vlgmr.msra.gmra.mrb[68].mxu1 %v5101_v17  ;;  %v9208_v17 = vld [vmem:[%s9839_s23 + $0xf2c] ss:$16 sps:$4 sm:$0xff]  }
 0xcd8   : > { %8355 = vmatpush3.bf16.msra.mxu0 %v9862_v5  ;;  %8163 = vmatprep.mubr.msk.f32.mxu0 %vm9549_vm0, %v9550_v1 }
 0xcd9   : > { %8356 = vmatprep.subr.bf16.mxu0 %v9548_v0  ;;  %5652 = vmatpush1.bf16.msra.mxu1 %v9149_v22  ;;  %v9217_v22 = vld [vmem:[%s9839_s23 + $0xf64] ss:$16 sps:$4 sm:$0xff]  }
 0xcda   : > { %5653 = vmatprep.subr.bf16.mxu1 %v9157_v37  ;;  %5683 = vmatprep.mubr.bf16.mxu1 %v9551_v50  ;;  %v9220_v37 = vld [vmem:[%s9839_s23 + $0xf6c] ss:$16 sps:$4 sm:$0xff]  }
 0xcdc   : > { %8358 = vmatpush3.bf16.msra.mxu0 %v9865_v7 }
 0xcdd   : > { %8359 = vmatprep.subr.bf16.mxu0 %v9548_v0  ;;  %5654 = vmatpush1.bf16.msra.mxu1 %v9155_v14  ;;  %v9215_v14 = vld [vmem:[%s9839_s23 + $0xf60] ss:$16 sps:$4 sm:$0xff]  }
 0xcde   : > { %5655 = vmatprep.subr.bf16.mxu1 %v9163_v51  ;;  %v9218_v51 = vld [vmem:[%s9839_s23 + $0xf68] ss:$16 sps:$4 sm:$0xff]  }
 0xce0   : > { %8361 = vmatpush3.bf16.msra.mxu0 %v9871_v10 }
 0xce1   : > { %8362 = vmatprep.subr.bf16.mxu0 %v9548_v0  ;;  %5656 = vmatpush1.bf16.msra.mxu1 %v9161_v38  ;;  %v9221_v38 = vld [vmem:[%s9839_s23 + $0xf80] ss:$16 sps:$4 sm:$0xff]  }
 0xce2   : > { %5657 = vmatprep.subr.bf16.mxu1 %v9169_v49  ;;  %v9238_v49 = vld [vmem:[%s9839_s23 + $0xfcc] ss:$16 sps:$4 sm:$0xff]  }
 0xce4   : > { %8364 = vmatpush3.bf16.msra.mxu0 %v9877_v13 }
 0xce5   : > { %5692 = vmatprep.subr.bf16.mxu0 %v9154_v23  ;;  %5658 = vmatpush1.bf16.msra.mxu1 %v9167_v52  ;;  %v9224_v23 = vld [vmem:[%s9839_s23 + $0xf88] ss:$16 sps:$4 sm:$0xff]   ;;  %v9233_v52 = vld [vmem:[%s9839_s23 + $0xfc0] ss:$16 sps:$4 sm:$0xff]  }
 0xce6   : > { %5659 = vmatprep.subr.bf16.mxu1 %v9175_v36  ;;  %v9239_v36 = vld [vmem:[%s9839_s23 + $0xfe0] ss:$16 sps:$4 sm:$0xff]  }
 0xce7   : > { %8164 = vmatmul.mubr.msk.f32.vlgmr.msra.gmra.mrb[62].mxu0 %vm407_vm1, %v5382_v20  ;;  %v9226_v20 = vld [vmem:[%s9839_s23 + $0xf8c] ss:$16 sps:$4 sm:$0xff]  }
 0xce8   : > { %5693 = vmatpush1.bf16.msra.mxu0 %v9152_v43  ;;  %5724 = vmatprep.mubr.bf16.mxu0 %v9551_v50  ;;  %v9229_v43 = vld [vmem:[%s9839_s23 + $0xfa4] ss:$16 sps:$4 sm:$0xff]  }
 0xce9   : > { %5694 = vmatprep.subr.bf16.mxu0 %v9160_v21  ;;  %5660 = vmatpush1.bf16.msra.mxu1 %v9173_v27  ;;  %v9232_v21 = vld [vmem:[%s9839_s23 + $0xfac] ss:$16 sps:$4 sm:$0xff]  }
 0xcea   : > { %5661 = vmatprep.subr.bf16.mxu1 %v9181_v58  ;;  %v9244_v27 = vld [vmem:[%s9839_s23 + $0xfec] ss:$16 sps:$4 sm:$0xff]  }
 0xceb   : > { %v9246_v58 = vld [vmem:[%s9850_s27 + $0xc0] sm:$0xff]  }
 0xcec   : > { %5695 = vmatpush1.bf16.msra.mxu0 %v9158_v44  ;;  %v9227_v44 = vld [vmem:[%s9839_s23 + $0xfa0] ss:$16 sps:$4 sm:$0xff]  }
 0xced   : > { %5696 = vmatprep.subr.bf16.mxu0 %v9166_v32  ;;  %5662 = vmatpush1.bf16.msra.mxu1 %v9179_v40  ;;  %v9230_v32 = vld [vmem:[%s9839_s23 + $0xfa8] ss:$16 sps:$4 sm:$0xff]  }
 0xcee   : > { %5663 = vmatprep.subr.bf16.mxu1 %v9187_v47 }
 0xcf0   : > { %5697 = vmatpush1.bf16.msra.mxu0 %v9164_v35  ;;  %v9235_v35 = vld [vmem:[%s9839_s23 + $0xfc4] ss:$16 sps:$4 sm:$0xff]  }
 0xcf1   : > { %5698 = vmatprep.subr.bf16.mxu0 %v9172_v26  ;;  %5664 = vmatpush1.bf16.msra.mxu1 %v9185_v2  ;;  %v9236_v26 = vld [vmem:[%s9839_s23 + $0xfc8] ss:$16 sps:$4 sm:$0xff]  }
 0xcf2   : > { %5665 = vmatprep.subr.bf16.mxu1 %v9193_v46 }
 0xcf4   : > { %5699 = vmatpush1.bf16.msra.mxu0 %v9170_v12  ;;  %v9241_v12 = vld [vmem:[%s9839_s23 + $0xfe4] ss:$16 sps:$4 sm:$0xff]  }
 0xcf5   : > { %5700 = vmatprep.subr.bf16.mxu0 %v9178_v57  ;;  %5666 = vmatpush1.bf16.msra.mxu1 %v9191_v48  ;;  %v9245_v57 = vld [vmem:[%s9850_s27 + $0x40] sm:$0xff]  }
 0xcf6   : > { %8365 = vmatprep.subr.bf16.mxu1 %v9548_v0 }
 0xcf8   : > { %5701 = vmatpush1.bf16.msra.mxu0 %v9176_v41  ;;  %v9242_v41 = vld [vmem:[%s9839_s23 + $0xfe8] ss:$16 sps:$4 sm:$0xff]  }
 0xcf9   : > { %5702 = vmatprep.subr.bf16.mxu0 %v9184_v39 }
 0xcfc   : > { %5703 = vmatpush1.bf16.msra.mxu0 %v9182_v42 }
 0xcfd   : > { %5704 = vmatprep.subr.bf16.mxu0 %v9190_v61 }
 0xd00   : > { %5705 = vmatpush1.bf16.msra.mxu0 %v9188_v45 }
 0xd01   : > { %5706 = vmatprep.subr.bf16.mxu0 %v9196_v55 }
 0xd04   : > { %5707 = vmatpush1.bf16.msra.mxu0 %v9194_v3 }
 0xd05   : > { %6007 = vmatprep.subr.bf16.mxu0 %v9199_v11 }
 0xdaa   : > { %v5329_v53 = vpop.f32.mrb[68].mxu0  ;;  %v5370_v54 = vpop.f32.mrb[68].mxu1 }
 0xdab   : > { %v10702_v56 = vadd.f32 %v5329_v53, %v10644_v19  ;;  %v10705_v62 = vadd.f32 %v5370_v54, %v10647_v8  ;;  %v5331_v63 = vpop.f32.mrb[69].mxu0  ;;  %v5372_v18 = vpop.f32.mrb[69].mxu1 }
 0xdac   : > { %v10708_v59 = vadd.f32 %v5331_v63, %v10650_v6  ;;  %v10711_v60 = vadd.f32 %v5372_v18, %v10653_v25  ;;  %v5333_v4 = vpop.f32.mrb[70].mxu0  ;;  %v5374_v24 = vpop.f32.mrb[70].mxu1  ;;  %v9203_v6 = vld [vmem:[%s9839_s23 + $0xf20] ss:$16 sps:$4 sm:$0xff]   ;;  %v9211_v25 = vld [vmem:[%s9839_s23 + $0xf44] ss:$16 sps:$4 sm:$0xff]  }
 0xdad   : > { %v5334_v28 = vpop.f32.mrb[71].mxu0  ;;  %v5375_v29 = vpop.f32.mrb[71].mxu1  ;;  %v9247_v63 = vld [vmem:[%s9850_s27] sm:$0xff]   ;;  %v9250_v4 = vld [vmem:[%s9850_s27 + $0xc8] sm:$0xff]  }
 0xdae   : > { %v9248_v18 = vld [vmem:[%s9850_s27 + $0x80] sm:$0xff]   ;;  %v9251_v24 = vld [vmem:[%s9850_s27 + $0x8] sm:$0xff]   ;;  %v9253_v28 = vld [vmem:[%s9850_s27 + $0x50] sm:$0xff]  }
 0xdaf   : > { %v9254_v29 = vld [vmem:[%s9850_s27 + $0xd0] sm:$0xff]  }
 0xdba   : > { %v5452_v19 = vpop.f32.mrb[62].mxu0 }
 0xdbb   : > { %v5453_v15 = vadd.f32 %v10595_v34, %v5452_v19  ;;  %v8165_v30 = vpop.f32.mrb[63].mxu0  ;;  %v9255_v19 = vld [vmem:[%s9850_s27 + $0x10] sm:$0xff]  }
 0xdbc   : > { %v9257_v30 = vld [vmem:[%s9850_s27 + $0x58] sm:$0xff]  }
 0xdbd   : > { %v5456_v8 = vmax.f32 %v5453_v15, 0.0  ;;  %v9256_v15 = vld [vmem:[%s9850_s27 + $0x90] sm:$0xff]  }
 0xdbf   : > { %v5457_v9 = vpack.c.bf16 %v5456_v8, %v5456_v8  ;;  %v9258_v8 = vld [vmem:[%s9850_s27 + $0xd8] sm:$0xff]  }
 0xdc1   : > { %5684 = vmatmul.mubr.bf16.vlgmr.msra.gmra.mrb[72].mxu1 %v5457_v9  ;;  %5725 = vmatmul.mubr.bf16.vlgmr.msra.gmra.mrb[72].mxu0 %v5457_v9  ;;  %v9259_v9 = vld [vmem:[%s9850_s27 + $0x18] sm:$0xff]  }
 0xdc2   : > { %8367 = vmatpush3.bf16.msra.mxu1 %v9862_v5  ;;  %8182 = vmatprep.mubr.msk.f32.mxu1 %vm9549_vm0, %v9550_v1  ;;  %v9209_v5 = vld [vmem:[%s9839_s23 + $0xf40] ss:$16 sps:$4 sm:$0xff]   ;;  %v9202_v1 = vld [vmem:[%s9839_s23 + $0xf0c] ss:$16 sps:$4 sm:$0xff]  }
 0xdc3   : > { %8368 = vmatprep.subr.bf16.mxu1 %v9548_v0  ;;  %6008 = vmatpush1.bf16.msra.mxu0 %v9197_v31  ;;  %v9260_v31 = vld [vmem:[%s9850_s27 + $0x98] sm:$0xff]  }
 0xdc4   : > { %6009 = vmatprep.subr.bf16.mxu0 %v9205_v33  ;;  %6039 = vmatprep.mubr.bf16.mxu0 %v9551_v50  ;;  %v9261_v33 = vld [vmem:[%s9850_s27 + $0x60] sm:$0xff]  }
 0xdc6   : > { %8370 = vmatpush3.bf16.msra.mxu1 %v9865_v7  ;;  %v9200_v7 = vld [vmem:[%s9839_s23 + $0xf08] ss:$16 sps:$4 sm:$0xff]  }
 0xdc7   : > { %8371 = vmatprep.subr.bf16.mxu1 %v9548_v0  ;;  %6010 = vmatpush1.bf16.msra.mxu0 %v9203_v6  ;;  %v9262_v6 = vld [vmem:[%s9850_s27 + $0xe0] sm:$0xff]  }
 0xdc8   : > { %6011 = vmatprep.subr.bf16.mxu0 %v9211_v25  ;;  %v9263_v25 = vld [vmem:[%s9850_s27 + $0x20] sm:$0xff]  }
 0xdca   : > { %8373 = vmatpush3.bf16.msra.mxu1 %v9871_v10  ;;  %v9206_v10 = vld [vmem:[%s9839_s23 + $0xf28] ss:$16 sps:$4 sm:$0xff]  }
 0xdcb   : > { %8374 = vmatprep.subr.bf16.mxu1 %v9548_v0  ;;  %6012 = vmatpush1.bf16.msra.mxu0 %v9209_v5  ;;  %v9214_v0 = vld [vmem:[%s9839_s23 + $0xf4c] ss:$16 sps:$4 sm:$0xff]  }
 0xdcc   : > { %6013 = vmatprep.subr.bf16.mxu0 %v9217_v22  ;;  %v9264_v5 = vld [vmem:[%s9850_s27 + $0xa0] sm:$0xff]   ;;  %v9272_v22 = vld [vmem:[%s9850_s27 + $0xb0] sm:$0xff]  }
 0xdce   : > { %8376 = vmatpush3.bf16.msra.mxu1 %v9877_v13  ;;  %v9212_v13 = vld [vmem:[%s9839_s23 + $0xf48] ss:$16 sps:$4 sm:$0xff]  }
 0xdcf   : > { %6048 = vmatprep.subr.bf16.mxu1 %v9202_v1  ;;  %6014 = vmatpush1.bf16.msra.mxu0 %v9215_v14  ;;  %v9265_v1 = vld [vmem:[%s9850_s27 + $0x68] sm:$0xff]   ;;  %v9274_v14 = vld [vmem:[%s9850_s27 + $0xf8] sm:$0xff]  }
 0xdd1   : > { %8183 = vmatmul.mubr.msk.f32.vlgmr.msra.gmra.mrb[66].mxu1 %vm407_vm1, %v5738_v16  ;;  %v9266_v16 = vld [vmem:[%s9850_s27 + $0xe8] sm:$0xff]  }
 0xdd2   : > { %6049 = vmatpush1.bf16.msra.mxu1 %v9200_v7  ;;  %6080 = vmatprep.mubr.bf16.mxu1 %v9551_v50  ;;  %v9223_v50 = vld [vmem:[%s9839_s23 + $0xf84] ss:$16 sps:$4 sm:$0xff]  }
 0xdd3   : > { %6050 = vmatprep.subr.bf16.mxu1 %v9208_v17  ;;  %6015 = vmatprep.subr.bf16.mxu0 %v9223_v50  ;;  %v9267_v7 = vld [vmem:[%s9850_s27 + $0x28] sm:$0xff]   ;;  %v9276_v50 = vld [vmem:[%s9850_s27 + $0xb8] sm:$0xff]  }
 0xdd4   : > { %6016 = vmatpush1.bf16.msra.mxu0 %v9221_v38  ;;  %v9268_v17 = vld [vmem:[%s9850_s27 + $0xa8] sm:$0xff]   ;;  %v6095_v38 = vlaneseq }
 0xdd5   : > { %6017 = vmatprep.subr.bf16.mxu0 %v9229_v43 }
 0xdd6   : > { %6051 = vmatpush1.bf16.msra.mxu1 %v9206_v10  ;;  %v9269_v10 = vld [vmem:[%s9850_s27 + $0x70] sm:$0xff]  }
 0xdd7   : > { %6052 = vmatprep.subr.bf16.mxu1 %v9214_v0  ;;  %v9270_v0 = vld [vmem:[%s9850_s27 + $0xf0] sm:$0xff]  }
 0xdd8   : > { %6018 = vmatpush1.bf16.msra.mxu0 %v9227_v44 }
 0xdd9   : > { %6019 = vmatprep.subr.bf16.mxu0 %v9235_v35 }
 0xdda   : > { %6053 = vmatpush1.bf16.msra.mxu1 %v9212_v13  ;;  %v9271_v13 = vld [vmem:[%s9850_s27 + $0x30] sm:$0xff]  }
 0xddb   : > { %6054 = vmatprep.subr.bf16.mxu1 %v9220_v37  ;;  %v9273_v37 = vld [vmem:[%s9850_s27 + $0x78] sm:$0xff]  }
 0xddc   : > { %6020 = vmatpush1.bf16.msra.mxu0 %v9233_v52 }
 0xddd   : > { %6021 = vmatprep.subr.bf16.mxu0 %v9241_v12 }
 0xdde   : > { %6055 = vmatpush1.bf16.msra.mxu1 %v9218_v51  ;;  %v9275_v51 = vld [vmem:[%s9850_s27 + $0x38] sm:$0xff]  }
 0xddf   : > { %6056 = vmatprep.subr.bf16.mxu1 %v9226_v20 }
 0xde0   : > { %6022 = vmatpush1.bf16.msra.mxu0 %v9239_v36 }
 0xde1   : > { %7837 = vmatprep.subr.bf16.mxu0 %v9245_v57 }
 0xde2   : > { %6057 = vmatpush1.bf16.msra.mxu1 %v9224_v23  ;;  %v6096_v23 = vshrl.u32 %v6095_v38, 7 }
 0xde3   : > { %6058 = vmatprep.subr.bf16.mxu1 %v9232_v21  ;;  %v6093_v21 = vld [vmem:[%s9847_s15] sm:$0xf] }
 0xde4   : > { %v6097_v20 = vsub.s32 0, %v6096_v23  ;;  %v6105_v43 = vsub.s32 2, %v6096_v23  ;;  %v6101_v44 = vsub.s32 1, %v6096_v23 }
 0xde6   : > { %6059 = vmatpush1.bf16.msra.mxu1 %v9230_v32  ;;  %v6109_v32 = vsub.s32 3, %v6096_v23  ;;  %v6098_v35 = vrot.slane %v6093_v21, %v6097_v20  ;;  %v6102_v12 = vrot.slane %v6093_v21, %v6101_v44 }
 0xde7   : > { %6060 = vmatprep.subr.bf16.mxu1 %v9238_v49  ;;  %v6106_v49 = vrot.slane %v6093_v21, %v6105_v43 }
 0xdea   : > { %6061 = vmatpush1.bf16.msra.mxu1 %v9236_v26 }
 0xdeb   : > { %6062 = vmatprep.subr.bf16.mxu1 %v9244_v27  ;;  %v6110_v27 = vrot.slane %v6093_v21, %v6109_v32 }
 0xdee   : > { %6063 = vmatpush1.bf16.msra.mxu1 %v9242_v41 }
 0xdef   : > { %7859 = vmatprep.subr.bf16.mxu1 %v9246_v58 }
 0xe94   : > { %v5685_v39 = vpop.f32.mrb[72].mxu1  ;;  %v5726_v40 = vpop.f32.mrb[72].mxu0 }
 0xe95   : > { %v10760_v42 = vadd.f32 %v5685_v39, %v10702_v56  ;;  %v10763_v47 = vadd.f32 %v5726_v40, %v10705_v62  ;;  %v5687_v61 = vpop.f32.mrb[73].mxu1  ;;  %v5728_v2 = vpop.f32.mrb[73].mxu0 }
 0xe96   : > { %v10766_v45 = vadd.f32 %v5687_v61, %v10708_v59  ;;  %v10769_v46 = vadd.f32 %v5728_v2, %v10711_v60  ;;  %v5689_v48 = vpop.f32.mrb[74].mxu1  ;;  %v5730_v55 = vpop.f32.mrb[74].mxu0  ;;  %v9249_v60 = vld [vmem:[%s9850_s27 + $0x48] sm:$0xff]  }
 0xe97   : > { %v5690_v3 = vpop.f32.mrb[75].mxu1  ;;  %v5731_v11 = vpop.f32.mrb[75].mxu0 }
 0xea4   : > { %v5808_v53 = vpop.f32.mrb[66].mxu1 }
 0xea5   : > { %v5809_v54 = vadd.f32 %v10595_v34, %v5808_v53  ;;  %v8184_v56 = vpop.f32.mrb[67].mxu1  ;;  %v9252_v34 = vld [vmem:[%s9850_s27 + $0x88] sm:$0xff]  }
 0xea7   : > { %v5812_v62 = vmax.f32 %v5809_v54, 0.0 }
 0xea9   : > { %v5813_v59 = vpack.c.bf16 %v5812_v62, %v5812_v62 }
 0xeab   : > { %6040 = vmatmul.mubr.bf16.vlgmr.msra.gmra.mrb[76].mxu0 %v5813_v59  ;;  %6081 = vmatmul.mubr.bf16.vlgmr.msra.gmra.mrb[76].mxu1 %v5813_v59 }
 0xeac   : > { %7838 = vmatpush3.bf16.msra.mxu0 %v9247_v63  ;;  %7860 = vmatpush3.bf16.msra.mxu1 %v9248_v18 }
 0xead   : > { %7839 = vmatprep.subr.bf16.mxu0 %v9249_v60  ;;  %7861 = vmatprep.subr.bf16.mxu1 %v9250_v4 }
 0xeb0   : > { %7840 = vmatpush3.bf16.msra.mxu0 %v9251_v24  ;;  %7862 = vmatpush3.bf16.msra.mxu1 %v9252_v34 }
 0xeb1   : > { %7841 = vmatprep.subr.bf16.mxu0 %v9253_v28  ;;  %7863 = vmatprep.subr.bf16.mxu1 %v9254_v29 }
 0xeb4   : > { %7842 = vmatpush3.bf16.msra.mxu0 %v9255_v19  ;;  %7864 = vmatpush3.bf16.msra.mxu1 %v9256_v15 }
 0xeb5   : > { %7843 = vmatprep.subr.bf16.mxu0 %v9257_v30  ;;  %7865 = vmatprep.subr.bf16.mxu1 %v9258_v8 }
 0xeb8   : > { %7844 = vmatpush3.bf16.msra.mxu0 %v9259_v9  ;;  %7866 = vmatpush3.bf16.msra.mxu1 %v9260_v31 }
 0xeb9   : > { %7845 = vmatprep.subr.bf16.mxu0 %v9261_v33  ;;  %7867 = vmatprep.subr.bf16.mxu1 %v9262_v6 }
 0xebc   : > { %7846 = vmatpush3.bf16.msra.mxu0 %v9263_v25  ;;  %7868 = vmatpush3.bf16.msra.mxu1 %v9264_v5 }
 0xebd   : > { %7847 = vmatprep.subr.bf16.mxu0 %v9265_v1  ;;  %7869 = vmatprep.subr.bf16.mxu1 %v9266_v16 }
 0xec0   : > { %7848 = vmatpush3.bf16.msra.mxu0 %v9267_v7  ;;  %7870 = vmatpush3.bf16.msra.mxu1 %v9268_v17 }
 0xec1   : > { %7849 = vmatprep.subr.bf16.mxu0 %v9269_v10  ;;  %7871 = vmatprep.subr.bf16.mxu1 %v9270_v0 }
 0xec4   : > { %7850 = vmatpush3.bf16.msra.mxu0 %v9271_v13  ;;  %7872 = vmatpush3.bf16.msra.mxu1 %v9272_v22 }
 0xec5   : > { %7851 = vmatprep.subr.bf16.mxu0 %v9273_v37  ;;  %7873 = vmatprep.subr.bf16.mxu1 %v9274_v14 }
 0xec8   : > { %7852 = vmatpush3.bf16.msra.mxu0 %v9275_v51  ;;  %7874 = vmatpush3.bf16.msra.mxu1 %v9276_v50 }
 0xf7e   : > { %v6041_v52 = vpop.f32.mrb[76].mxu0  ;;  %v6082_v26 = vpop.f32.mrb[76].mxu1 }
 0xf7f   : > { %v6089_v36 = vadd.f32 %v6041_v52, %v10760_v42  ;;  %v6091_v41 = vadd.f32 %v6082_v26, %v10763_v47  ;;  %v6043_v57 = vpop.f32.mrb[77].mxu0  ;;  %v6084_v58 = vpop.f32.mrb[77].mxu1 }
 0xf80   : > { %v6090_v39 = vadd.f32 %v6043_v57, %v10766_v45  ;;  %v6092_v40 = vadd.f32 %v6084_v58, %v10769_v46  ;;  %v6045_v61 = vpop.f32.mrb[78].mxu0  ;;  %v6086_v2 = vpop.f32.mrb[78].mxu1 }
 0xf81   : > { %v6115_v48 = vadd.f32 %v6098_v35, %v6089_v36  ;;  %v6117_v55 = vadd.f32 %v6106_v49, %v6091_v41  ;;  %v6046_v3 = vpop.f32.mrb[79].mxu0  ;;  %v6087_v11 = vpop.f32.mrb[79].mxu1 }
 0xf82   : > { %v6116_v53 = vadd.f32 %v6102_v12, %v6090_v39  ;;  %v6118_v54 = vadd.f32 %v6110_v27, %v6092_v40 }
 0xf83   : > { %v6119_v56 = vmax.f32 %v6115_v48, 0.0  ;;  %v6121_v62 = vmax.f32 %v6117_v55, 0.0 }
 0xf84   : > { %v6120_v42 = vmax.f32 %v6116_v53, 0.0  ;;  %v6122_v47 = vmax.f32 %v6118_v54, 0.0 }
 0xf85   : > { %v6123_v59 = vpack.c.bf16 %v6119_v56, %v6119_v56  ;;  %v6125_v45 = vpack.c.bf16 %v6121_v62, %v6121_v62 }
 0xf86   : > { %v6124_v63 = vpack.c.bf16 %v6120_v42, %v6120_v42  ;;  %v6126_v18 = vpack.c.bf16 %v6122_v47, %v6122_v47 }
 0xf88   : > { %6415 = vmatprep.mubr.bf16.mxu0 %v6124_v63  ;;  %6455 = vmatprep.mubr.bf16.mxu1 %v6126_v18 }
 0xf89   : > { %6416 = vmatmul.mubr.bf16.vlgmr.msra.gmra.mrb[80].mxu0 %v6123_v59  ;;  %6456 = vmatmul.mubr.bf16.vlgmr.msra.gmra.mrb[80].mxu1 %v6125_v45 }
0x105c   : > { %v7853_v46 = vpop.f32.mrb[80].mxu0  ;;  %v7875_v60 = vpop.f32.mrb[80].mxu1 }
0x105d   : > { %v7854_v4 = vpop.f32.mrb[81].mxu0  ;;  %v7876_v24 = vpop.f32.mrb[81].mxu1 }
0x105e   : > { %v7855_v34 = vadd.f32 %v7854_v4, %v7853_v46  ;;  %v7877_v28 = vadd.f32 %v7876_v24, %v7875_v60  ;;  %v7856_v29 = vpop.f32.mrb[82].mxu0  ;;  %v7878_v19 = vpop.f32.mrb[82].mxu1 }
0x105f   : > { %v7857_v15 = vpop.f32.mrb[83].mxu0  ;;  %v7879_v30 = vpop.f32.mrb[83].mxu1 }
0x1060   : > { %v6458_v8 = vadd.f32 %v7877_v28, %v7855_v34 }
0x1062   : > { %6463 = vst [vmem:[%s386_s16] sm:$0x3] %v6458_v8 }
0x1063   : > { %9466 = shalt.err (!%p9463_p4)
}
0x1064   : > { %s9467_s6 = scalar_lea.hbm %s10812_s19, 32  ;;  %s9471_s11 = scalar_lea.hbm %s10912_s1, 64 }
0x1065   : > { %p9468_p3 = scmp.ne.s32.totalorder %s10812_s19, %s9467_s6  ;;  %p9472_p11 = scmp.lt.u32.totalorder %s10812_s19, %s10912_s1 }
0x1066   : > { %p9473_p13 = scmp.lt.u32.totalorder %s9471_s11, %s9467_s6  ;;  %p9475_p7 = scmp.lt.u32.totalorder %s9467_s6, %s10812_s19 }
0x1067   : > { %p9469_p1 = pnand %p9468_p3, %p10913_p8 }
0x1068   : > { %p9474_p9 = por %p9473_p13, %p9472_p11 }
0x1069   : > { %p9470_p5 = pneg %p9469_p1 }
0x106a   : > { %p9476_p6 = por %p9475_p7, %p9474_p9 }
0x106c   : > { %p9477_p2 = pnand %p9476_p6, %p9470_p5 }
0x106e   : > { %9480 = shalt.err (!%p9477_p2)
}
0x106f   : > { %8395 = dma.vmem_to_hbm [thread:$0]  (%p10913_p8), %s10814_s17, 32, %s10812_s19, %s6465_s25  }
0x1070 PF: > { %s10914_s26 = sld [smem:[#allocation19_spill]]  ;;  %s10915_s12 = sld [smem:[#allocation23_spill]] }
0x1071   : > { %p10917_p10 = scmp.ge.s32.totalorder %s9531_s24, 2 }
0x1076   : > { %s6490_s15 = sand.u32 1, %s10914_s26   ;;  %p10916_p12 = scmp.ne.s32.totalorder %s10915_s12, 0 }
0x1077   : > { %s6491_s14 = scalar_lea.sflag [#allocation4], %s6490_s15 }
0x1078   : > { %p8418_p0 = pnand %p10917_p10, %p10916_p12 }
0x107a   : > { %9514 = dma.done.wait (!%p8418_p0), %s6491_s14, 32  }
0x107b   : > { %9516 = vsyncadd (!%p8418_p0), %s6491_s14, 4294967264  ;;  %s10918_s24 = sld [smem:[#allocation21_spill]]  ;;  %s10919_s27 = sld [smem:[#allocation20_spill]] }
0x107c   : > { %s10920_s23 = sld [smem:[#allocation22_spill]]  ;;  %s10921_s21 = smov %s9523_s22 }
0x1081   : > { %p24_p4 = scmp.ge.s32.totalorder %s10918_s24, 4   ;;  %s10922_s22 = smov %s10919_s27 }
0x1083   :  { %26 = sbr.rel (!%p24_p4) target bundleno = 13 (0xd), region = 156 }
0x108a   :  { %6496 = vsyncpa [#allocation3], 1 }
0x108b   :  { %6498 = vsyncpa [#allocation3 + $0x1], 1 }
0x108c   :  { %6499 = vsyncpa [#allocation6], 1 }
0x108d   :  { %6500 = vsyncpa [#allocation9], 1 }
0x108e   :  { %6502 = vsyncpa [#allocation9 + $0x1], 1 }
0x108f   :  { %6503 = vsyncpa [#allocation12], 1 }
0x1090   :  { %6505 = vsyncpa [#allocation12 + $0x1], 1 }
0x1091   :  { %6506 = vsyncpa [#allocation4], 1 }
0x1092   :  { %6508 = vsyncpa [#allocation4 + $0x1], 1 }

</bundles_post_ra>
